<compile_context>
chip_gen: v5e
topology: v5e:2x2
jax: 0.10.0
libtpu: 0.0.40
codegen_flags: <defaults>
</compile_context>

<pallas_src>
import functools

import jax
import jax.numpy as jnp
from jax import lax
from jax.experimental import pallas as pl
from jax.experimental.pallas import tpu as pltpu

_EPS = 1e-10                       # lpips.normalize_tensor eps
_LANE = 128
_TARGET_BLOCK_BYTES = 1 << 20      # ~1 MiB bf16 per feature block
_MIN_TILE_LANES = 512
_MAX_TILE_LANES = 4096


# ---------------------------------------------------------------------------
# Pallas kernel: per-layer LPIPS distance head.
#   out[b] += sum_c w[c] * (f0n[b,c,s] - f1n[b,c,s])**2   (per spatial lane s)
#   fXn = fX / (sqrt(sum_c fX^2) + eps)
# ---------------------------------------------------------------------------
def _lpips_dist_kernel(f0_ref, f1_ref, w8_ref, out_ref, *, s_total):
    # f0_ref / f1_ref: (1, C, s_tile) bf16; w8_ref: (8, C) f32; out: (1, 8, s_tile) f32
    s_tile = f0_ref.shape[-1]
    tile = pl.program_id(1)

    @pl.when(tile == 0)
    def _():
        out_ref[...] = jnp.zeros_like(out_ref)

    f0 = f0_ref[0].astype(jnp.float32)            # (C, s_tile), f32 math (v5e-safe)
    f1 = f1_ref[0].astype(jnp.float32)

    # lpips.normalize_tensor: x / (sqrt(sum_c x^2) + eps).
    # Reciprocal only on the (1, s_tile) norm row (EUP), then VPU multiplies.
    n0 = jnp.sqrt(jnp.sum(f0 * f0, axis=0, keepdims=True))
    n1 = jnp.sqrt(jnp.sum(f1 * f1, axis=0, keepdims=True))
    r0 = pl.reciprocal(n0 + _EPS, approx=True)
    r1 = pl.reciprocal(n1 + _EPS, approx=True)

    d = f0 * r0 - f1 * r1
    dsq = d * d                                    # (C, s_tile)

    # Learned 1x1 "lin" weighting + channel contraction on the idle MXU.
    # Row 0 of w8 holds the lin weights; rows 1..7 are zero.
    part = jnp.dot(w8_ref[...], dsq,
                   preferred_element_type=jnp.float32)   # (8, s_tile)

    # Mask the ragged tail of the last spatial tile (undefined / possibly
    # Inf-NaN data); select-based masking cannot leak NaN into valid lanes.
    lane = lax.broadcasted_iota(jnp.int32, (1, s_tile), 1)
    part = jnp.where(lane < (s_total - tile * s_tile), part, 0.0)

    out_ref[...] += part[None]                     # lane-wide resident accumulator


def _layer_distance(feats, w, batch):
    """feats: (2*batch, C, S) bf16 — rows [0:batch]=pred feats, [batch:]=gt feats.
    w: (C,) lin weights.  Returns (batch,) spatially-averaged weighted distances."""
    two_b, C, S = feats.shape
    assert two_b == 2 * batch

    if S < _LANE:
        # Tiny feature maps: pad to one full 128-lane tile (zeros contribute 0).
        feats = jnp.pad(feats, ((0, 0), (0, 0), (0, _LANE - S)))
        s_tile = _LANE
    else:
        # ~1 MiB bf16 per input block, clamped; keep s_tile a multiple of 128
        # and <= S so only the *last* grid tile is ragged.
        target = max(_MIN_TILE_LANES,
                     min(_MAX_TILE_LANES, _TARGET_BLOCK_BYTES // (C * 2)))
        target = (target // _LANE) * _LANE
        s_tile = min(target, (S // _LANE) * _LANE)
    n_tiles = pl.cdiv(S, s_tile)

    # (8, C) weight slab for the MXU contraction: row 0 = lin weights.
    w8 = jnp.zeros((8, C), jnp.float32).at[0].set(w.astype(jnp.float32))

    out = pl.pallas_call(
        functools.partial(_lpips_dist_kernel, s_total=S),
        out_shape=jax.ShapeDtypeStruct((batch, 8, s_tile), jnp.float32),
        grid_spec=pltpu.PrefetchScalarGridSpec(
            num_scalar_prefetch=0,
            grid=(batch, n_tiles),
            in_specs=[
                # pred half and gt half of the same (2B, C, S) array: no slice copy.
                pl.BlockSpec((1, C, s_tile), lambda b, s: (b, 0, s)),
                pl.BlockSpec((1, C, s_tile), lambda b, s: (b + batch, 0, s)),
                pl.BlockSpec((8, C), lambda b, s: (0, 0)),
            ],
            out_specs=pl.BlockSpec((1, 8, s_tile), lambda b, s: (b, 0, 0)),
        ),
        compiler_params=pltpu.CompilerParams(
            dimension_semantics=("parallel", "arbitrary"),
            vmem_limit_bytes=32 * 1024 * 1024),
    )(feats, feats, w8)

    # Rows 1..7 and masked lanes are exact zeros; true spatial mean uses S.
    return jnp.sum(out, axis=(1, 2)) / jnp.float32(S)


# ---------------------------------------------------------------------------
# AlexNet-style backbone (plain JAX / XLA, NHWC).
# ---------------------------------------------------------------------------
_ALEX_CFG = [
    # (out_ch, kernel, stride, pad, maxpool_after_tap)
    (64, 11, 4, 2, True),
    (192, 5, 1, 2, True),
    (384, 3, 1, 1, False),
    (256, 3, 1, 1, False),
    (256, 3, 1, 1, False),
]

_SHIFT = jnp.array([-0.030, -0.088, -0.188], jnp.float32)   # lpips ScalingLayer
_SCALE = jnp.array([0.458, 0.448, 0.450], jnp.float32)


def init_lpips_params(key):
    params = {"convs": [], "lins": []}
    in_ch = 3
    for (out_ch, k, _s, _p, _pool) in _ALEX_CFG:
        key, kw, kl = jax.random.split(key, 3)
        fan_in = in_ch * k * k
        w = jax.random.normal(kw, (k, k, in_ch, out_ch), jnp.float32) * jnp.sqrt(2.0 / fan_in)
        b = jnp.full((out_ch,), 0.01, jnp.float32)
        params["convs"].append((w, b))
        # NetLinLayer: 1x1 conv to one channel, no bias, non-negative weights.
        params["lins"].append(jnp.abs(jax.random.normal(kl, (out_ch,), jnp.float32)) * 0.1)
        in_ch = out_ch
    return params


def _conv2d(x, w, b, stride, padding):
    y = lax.conv_general_dilated(
        x, w, window_strides=(stride, stride),
        padding=[(padding, padding), (padding, padding)],
        dimension_numbers=("NHWC", "HWIO", "NHWC"))
    return y + b


def _maxpool(x, k=3, s=2):
    return lax.reduce_window(x, -jnp.inf, lax.max,
                             window_dimensions=(1, k, k, 1),
                             window_strides=(1, s, s, 1),
                             padding="VALID")


def _alex_features(x_nhwc, params):
    """Returns the 5 ReLU taps as (N, C, H*W) bf16 arrays (kernel layout)."""
    feats = []
    h = x_nhwc
    for (out_ch, k, s, p, pool), (w, b) in zip(_ALEX_CFG, params["convs"]):
        h = _conv2d(h, w, b, s, p)
        h = jnp.maximum(h, 0.0)
        n, hh, ww, c = h.shape
        feats.append(
            jnp.transpose(h.astype(jnp.bfloat16), (0, 3, 1, 2)).reshape(n, c, hh * ww))
        if pool:
            h = _maxpool(h)
    return feats


def lpips_forward(pred, gt, params, boundary_ignore=None, bgr2rgb=False):
    """Equivalent of LPIPS(boundary_ignore, type='alex', bgr2rgb).forward(pred, gt)."""
    if bgr2rgb:
        pred = pred[:, ::-1, :, :]
        gt = gt[:, ::-1, :, :]
    if boundary_ignore is not None:
        pred = pred[..., boundary_ignore:-boundary_ignore,
                    boundary_ignore:-boundary_ignore]
        gt = gt[..., boundary_ignore:-boundary_ignore,
                boundary_ignore:-boundary_ignore]

    batch = pred.shape[0]
    # One concatenated 2B backbone pass; NCHW -> NHWC once at the input.
    x = jnp.concatenate([pred, gt], axis=0).astype(jnp.float32)
    x = jnp.transpose(x, (0, 2, 3, 1))
    x = (x - _SHIFT) / _SCALE                       # ScalingLayer
    feats = _alex_features(x, params)

    per_sample = jnp.zeros((batch,), jnp.float32)
    for f, lin in zip(feats, params["lins"]):
        per_sample = per_sample + _layer_distance(f, lin, batch)
    return jnp.mean(per_sample)                     # loss.mean()


# ---------------------------------------------------------------------------
# Pure-JAX reference for the distance head (shares the exact same bf16 taps).
# ---------------------------------------------------------------------------
def _layer_distance_ref(feats, w, batch):
    f = feats.astype(jnp.float32)
    f0, f1 = f[:batch], f[batch:]
    n0 = jnp.sqrt(jnp.sum(f0 * f0, axis=1, keepdims=True))
    n1 = jnp.sqrt(jnp.sum(f1 * f1, axis=1, keepdims=True))
    d = f0 / (n0 + _EPS) - f1 / (n1 + _EPS)
    return jnp.mean(jnp.sum(w[None, :, None] * d * d, axis=1), axis=-1)


def lpips_forward_ref(pred, gt, params):
    batch = pred.shape[0]
    x = jnp.concatenate([pred, gt], axis=0).astype(jnp.float32)
    x = jnp.transpose(x, (0, 2, 3, 1))
    x = (x - _SHIFT) / _SCALE
    feats = _alex_features(x, params)
    per_sample = jnp.zeros((batch,), jnp.float32)
    for f, lin in zip(feats, params["lins"]):
        per_sample = per_sample + _layer_distance_ref(f, lin, batch)
    return jnp.mean(per_sample)


if __name__ == "__main__":
    key = jax.random.PRNGKey(0)
    kp, k1, k2 = jax.random.split(key, 3)

    # 64x64 RGB: layer1 (S=225) exercises the ragged-tail mask path,
    # layers 2-5 (S<=49) the tiny-map path.
    B, C, H, W = 2, 3, 64, 64
    pred = jax.random.uniform(k1, (B, C, H, W), jnp.float32) * 2.0 - 1.0
    gt = jax.random.uniform(k2, (B, C, H, W), jnp.float32) * 2.0 - 1.0

    params = init_lpips_params(kp)

    out = jax.block_until_ready(jax.jit(lpips_forward)(pred, gt, params))
    ref = jax.block_until_ready(jax.jit(lpips_forward_ref)(pred, gt, params))

    assert jnp.isfinite(out), out
    # Tolerance covers pl.reciprocal(approx=True) and MXU matmul precision.
    assert jnp.allclose(out, ref, rtol=2e-2, atol=1e-4), (out, ref)

    print("KERNEL_OK")
</pallas_src>

<mosaic_0001>
module attributes {stable_mosaic.version = 11 : i64} {
  func.func @_lpips_dist_kernel(%arg0: i32, %arg1: i32, %arg2: memref<1x256x128xbf16, #tpu.memory_space<vmem>>, %arg3: memref<1x256x128xbf16, #tpu.memory_space<vmem>>, %arg4: memref<8x256xf32, #tpu.memory_space<vmem>>, %arg5: memref<1x8x128xf32, #tpu.memory_space<vmem>>) attributes {dimension_semantics = [#tpu.dimension_semantics<parallel>, #tpu.dimension_semantics<arbitrary>], iteration_bounds = array<i64: 2, 1>, scalar_prefetch = 0 : i64, scratch_operands = 0 : i64, tpu.core_type = #tpu.core_type<tc>, window_params = [{transform_indices = @transform_0, window_bounds = array<i64: 1, 256, 128>}, {transform_indices = @transform_1, window_bounds = array<i64: 1, 256, 128>}, {pipeline_mode = #tpu.pipeline_mode<synchronous>, transform_indices = @transform_2, window_bounds = array<i64: 8, 256>}, {transform_indices = @transform_3, window_bounds = array<i64: 1, 8, 128>}]} {
    %c0_i32 = arith.constant 0 : i32
    %0 = arith.cmpi eq, %arg1, %c0_i32 : i32
    %1 = arith.extui %0 : i1 to i32
    %c0_i32_0 = arith.constant 0 : i32
    %2 = arith.cmpi ne, %1, %c0_i32_0 : i32
    scf.if %2 {
      %cst_19 = arith.constant 0.000000e+00 : f32
      %44 = vector.broadcast %cst_19 : f32 to vector<1x8x128xf32>
      %c0_20 = arith.constant 0 : index
      %c0_21 = arith.constant 0 : index
      %c0_22 = arith.constant 0 : index
      %45 = vector.load %arg5[%c0_20, %c0_21, %c0_22] : memref<1x8x128xf32, #tpu.memory_space<vmem>>, vector<1x8x128xf32>
      tpu.vector_store %arg5[%c0_20, %c0_21, %c0_22], %44 {strides = array<i32>} : memref<1x8x128xf32, #tpu.memory_space<vmem>>, vector<1x8x128xf32>,
    } else {
    }
    %c0 = arith.constant 0 : index
    %c0_1 = arith.constant 0 : index
    %c0_2 = arith.constant 0 : index
    %3 = vector.load %arg2[%c0, %c0_1, %c0_2] : memref<1x256x128xbf16, #tpu.memory_space<vmem>>, vector<1x256x128xbf16>
    %4 = vector.shape_cast %3 : vector<1x256x128xbf16> to vector<256x128xbf16>
    %5 = arith.extf %4 : vector<256x128xbf16> to vector<256x128xf32>
    %c0_3 = arith.constant 0 : index
    %c0_4 = arith.constant 0 : index
    %c0_5 = arith.constant 0 : index
    %6 = vector.load %arg3[%c0_3, %c0_4, %c0_5] : memref<1x256x128xbf16, #tpu.memory_space<vmem>>, vector<1x256x128xbf16>
    %7 = vector.shape_cast %6 : vector<1x256x128xbf16> to vector<256x128xbf16>
    %8 = arith.extf %7 : vector<256x128xbf16> to vector<256x128xf32>
    %9 = arith.mulf %5, %5 : vector<256x128xf32>
    %cst = arith.constant dense<0.000000e+00> : vector<128xf32>
    %10 = vector.multi_reduction <add>, %9, %cst [0] : vector<256x128xf32> to vector<128xf32>
    %11 = vector.shape_cast %10 : vector<128xf32> to vector<1x128xf32>
    %12 = math.sqrt %11 : vector<1x128xf32>
    %13 = arith.mulf %8, %8 : vector<256x128xf32>
    %cst_6 = arith.constant dense<0.000000e+00> : vector<128xf32>
    %14 = vector.multi_reduction <add>, %13, %cst_6 [0] : vector<256x128xf32> to vector<128xf32>
    %15 = vector.shape_cast %14 : vector<128xf32> to vector<1x128xf32>
    %16 = math.sqrt %15 : vector<1x128xf32>
    %cst_7 = arith.constant 1.000000e-10 : f32
    %17 = vector.broadcast %cst_7 : f32 to vector<1x128xf32>
    %18 = arith.addf %12, %17 : vector<1x128xf32>
    %19 = tpu.reciprocal %18 {approx = true} : vector<1x128xf32> -> vector<1x128xf32>
    %cst_8 = arith.constant 1.000000e-10 : f32
    %20 = vector.broadcast %cst_8 : f32 to vector<1x128xf32>
    %21 = arith.addf %16, %20 : vector<1x128xf32>
    %22 = tpu.reciprocal %21 {approx = true} : vector<1x128xf32> -> vector<1x128xf32>
    %23 = vector.broadcast %19 : vector<1x128xf32> to vector<256x128xf32>
    %24 = arith.mulf %5, %23 : vector<256x128xf32>
    %25 = vector.broadcast %22 : vector<1x128xf32> to vector<256x128xf32>
    %26 = arith.mulf %8, %25 : vector<256x128xf32>
    %27 = arith.subf %24, %26 : vector<256x128xf32>
    %28 = arith.mulf %27, %27 : vector<256x128xf32>
    %c0_9 = arith.constant 0 : index
    %c0_10 = arith.constant 0 : index
    %29 = vector.load %arg4[%c0_9, %c0_10] : memref<8x256xf32, #tpu.memory_space<vmem>>, vector<8x256xf32>
    %cst_11 = arith.constant dense<0.000000e+00> : vector<8x128xf32>
    %30 = tpu.matmul %29, %28, %cst_11 {dimension_numbers = #tpu.dot_dimension_numbers<[1], [0], [0], [1], [0, 0, 1, 1], [], []>} : vector<8x256xf32>, vector<256x128xf32>, vector<8x128xf32> -> vector<8x128xf32>
    %31 = tpu.iota {dimensions = array<i32: 1>} : vector<1x128xi32>
    %c128_i32 = arith.constant 128 : i32
    %32 = arith.muli %arg1, %c128_i32 : i32
    %c9_i32 = arith.constant 9 : i32
    %33 = arith.subi %c9_i32, %32 : i32
    %34 = vector.broadcast %33 : i32 to vector<1x128xi32>
    %35 = arith.cmpi slt, %31, %34 : vector<1x128xi32>
    %cst_12 = arith.constant 0.000000e+00 : f32
    %36 = vector.shape_cast %35 : vector<1x128xi1> to vector<1x128xi1>
    %37 = vector.broadcast %36 : vector<1x128xi1> to vector<8x128xi1>
    %38 = vector.broadcast %cst_12 : f32 to vector<8x128xf32>
    %39 = arith.select %37, %30, %38 : vector<8x128xi1>, vector<8x128xf32>
    %c0_13 = arith.constant 0 : index
    %c0_14 = arith.constant 0 : index
    %c0_15 = arith.constant 0 : index
    %40 = vector.load %arg5[%c0_13, %c0_14, %c0_15] : memref<1x8x128xf32, #tpu.memory_space<vmem>>, vector<1x8x128xf32>
    %41 = vector.shape_cast %39 : vector<8x128xf32> to vector<1x8x128xf32>
    %42 = arith.addf %40, %41 : vector<1x8x128xf32>
    %c0_16 = arith.constant 0 : index
    %c0_17 = arith.constant 0 : index
    %c0_18 = arith.constant 0 : index
    %43 = vector.load %arg5[%c0_16, %c0_17, %c0_18] : memref<1x8x128xf32, #tpu.memory_space<vmem>>, vector<1x8x128xf32>
    tpu.vector_store %arg5[%c0_16, %c0_17, %c0_18], %42 {strides = array<i32>} : memref<1x8x128xf32, #tpu.memory_space<vmem>>, vector<1x8x128xf32>,
    return
  }
  func.func @transform_0(%arg0: i32, %arg1: i32) -> (i32, i32, i32) {
    %c0_i32 = arith.constant 0 : i32
    %c0_i32_0 = arith.constant 0 : i32
    return %arg0, %c0_i32, %arg1 : i32, i32, i32
  }
  func.func @transform_1(%arg0: i32, %arg1: i32) -> (i32, i32, i32) {
    %c2_i32 = arith.constant 2 : i32
    %0 = arith.addi %arg0, %c2_i32 : i32
    %c0_i32 = arith.constant 0 : i32
    %c0_i32_0 = arith.constant 0 : i32
    return %0, %c0_i32, %arg1 : i32, i32, i32
  }
  func.func @transform_2(%arg0: i32, %arg1: i32) -> (i32, i32) {
    %c0_i32 = arith.constant 0 : i32
    %c0_i32_0 = arith.constant 0 : i32
    %c0_i32_1 = arith.constant 0 : i32
    return %c0_i32, %c0_i32_0 : i32, i32
  }
  func.func @transform_3(%arg0: i32, %arg1: i32) -> (i32, i32, i32) {
    %c0_i32 = arith.constant 0 : i32
    %c0_i32_0 = arith.constant 0 : i32
    %c0_i32_1 = arith.constant 0 : i32
    return %arg0, %c0_i32, %c0_i32_0 : i32, i32, i32
  }
}

module attributes {stable_mosaic.version = 11 : i64} {
  func.func @_lpips_dist_kernel(%arg0: i32, %arg1: i32, %arg2: memref<1x384x128xbf16, #tpu.memory_space<vmem>>, %arg3: memref<1x384x128xbf16, #tpu.memory_space<vmem>>, %arg4: memref<8x384xf32, #tpu.memory_space<vmem>>, %arg5: memref<1x8x128xf32, #tpu.memory_space<vmem>>) attributes {dimension_semantics = [#tpu.dimension_semantics<parallel>, #tpu.dimension_semantics<arbitrary>], iteration_bounds = array<i64: 2, 1>, scalar_prefetch = 0 : i64, scratch_operands = 0 : i64, tpu.core_type = #tpu.core_type<tc>, window_params = [{transform_indices = @transform_0, window_bounds = array<i64: 1, 384, 128>}, {transform_indices = @transform_1, window_bounds = array<i64: 1, 384, 128>}, {pipeline_mode = #tpu.pipeline_mode<synchronous>, transform_indices = @transform_2, window_bounds = array<i64: 8, 384>}, {transform_indices = @transform_3, window_bounds = array<i64: 1, 8, 128>}]} {
    %c0_i32 = arith.constant 0 : i32
    %0 = arith.cmpi eq, %arg1, %c0_i32 : i32
    %1 = arith.extui %0 : i1 to i32
    %c0_i32_0 = arith.constant 0 : i32
    %2 = arith.cmpi ne, %1, %c0_i32_0 : i32
    scf.if %2 {
      %cst_19 = arith.constant 0.000000e+00 : f32
      %44 = vector.broadcast %cst_19 : f32 to vector<1x8x128xf32>
      %c0_20 = arith.constant 0 : index
      %c0_21 = arith.constant 0 : index
      %c0_22 = arith.constant 0 : index
      %45 = vector.load %arg5[%c0_20, %c0_21, %c0_22] : memref<1x8x128xf32, #tpu.memory_space<vmem>>, vector<1x8x128xf32>
      tpu.vector_store %arg5[%c0_20, %c0_21, %c0_22], %44 {strides = array<i32>} : memref<1x8x128xf32, #tpu.memory_space<vmem>>, vector<1x8x128xf32>,
    } else {
    }
    %c0 = arith.constant 0 : index
    %c0_1 = arith.constant 0 : index
    %c0_2 = arith.constant 0 : index
    %3 = vector.load %arg2[%c0, %c0_1, %c0_2] : memref<1x384x128xbf16, #tpu.memory_space<vmem>>, vector<1x384x128xbf16>
    %4 = vector.shape_cast %3 : vector<1x384x128xbf16> to vector<384x128xbf16>
    %5 = arith.extf %4 : vector<384x128xbf16> to vector<384x128xf32>
    %c0_3 = arith.constant 0 : index
    %c0_4 = arith.constant 0 : index
    %c0_5 = arith.constant 0 : index
    %6 = vector.load %arg3[%c0_3, %c0_4, %c0_5] : memref<1x384x128xbf16, #tpu.memory_space<vmem>>, vector<1x384x128xbf16>
    %7 = vector.shape_cast %6 : vector<1x384x128xbf16> to vector<384x128xbf16>
    %8 = arith.extf %7 : vector<384x128xbf16> to vector<384x128xf32>
    %9 = arith.mulf %5, %5 : vector<384x128xf32>
    %cst = arith.constant dense<0.000000e+00> : vector<128xf32>
    %10 = vector.multi_reduction <add>, %9, %cst [0] : vector<384x128xf32> to vector<128xf32>
    %11 = vector.shape_cast %10 : vector<128xf32> to vector<1x128xf32>
    %12 = math.sqrt %11 : vector<1x128xf32>
    %13 = arith.mulf %8, %8 : vector<384x128xf32>
    %cst_6 = arith.constant dense<0.000000e+00> : vector<128xf32>
    %14 = vector.multi_reduction <add>, %13, %cst_6 [0] : vector<384x128xf32> to vector<128xf32>
    %15 = vector.shape_cast %14 : vector<128xf32> to vector<1x128xf32>
    %16 = math.sqrt %15 : vector<1x128xf32>
    %cst_7 = arith.constant 1.000000e-10 : f32
    %17 = vector.broadcast %cst_7 : f32 to vector<1x128xf32>
    %18 = arith.addf %12, %17 : vector<1x128xf32>
    %19 = tpu.reciprocal %18 {approx = true} : vector<1x128xf32> -> vector<1x128xf32>
    %cst_8 = arith.constant 1.000000e-10 : f32
    %20 = vector.broadcast %cst_8 : f32 to vector<1x128xf32>
    %21 = arith.addf %16, %20 : vector<1x128xf32>
    %22 = tpu.reciprocal %21 {approx = true} : vector<1x128xf32> -> vector<1x128xf32>
    %23 = vector.broadcast %19 : vector<1x128xf32> to vector<384x128xf32>
    %24 = arith.mulf %5, %23 : vector<384x128xf32>
    %25 = vector.broadcast %22 : vector<1x128xf32> to vector<384x128xf32>
    %26 = arith.mulf %8, %25 : vector<384x128xf32>
    %27 = arith.subf %24, %26 : vector<384x128xf32>
    %28 = arith.mulf %27, %27 : vector<384x128xf32>
    %c0_9 = arith.constant 0 : index
    %c0_10 = arith.constant 0 : index
    %29 = vector.load %arg4[%c0_9, %c0_10] : memref<8x384xf32, #tpu.memory_space<vmem>>, vector<8x384xf32>
    %cst_11 = arith.constant dense<0.000000e+00> : vector<8x128xf32>
    %30 = tpu.matmul %29, %28, %cst_11 {dimension_numbers = #tpu.dot_dimension_numbers<[1], [0], [0], [1], [0, 0, 1, 1], [], []>} : vector<8x384xf32>, vector<384x128xf32>, vector<8x128xf32> -> vector<8x128xf32>
    %31 = tpu.iota {dimensions = array<i32: 1>} : vector<1x128xi32>
    %c128_i32 = arith.constant 128 : i32
    %32 = arith.muli %arg1, %c128_i32 : i32
    %c9_i32 = arith.constant 9 : i32
    %33 = arith.subi %c9_i32, %32 : i32
    %34 = vector.broadcast %33 : i32 to vector<1x128xi32>
    %35 = arith.cmpi slt, %31, %34 : vector<1x128xi32>
    %cst_12 = arith.constant 0.000000e+00 : f32
    %36 = vector.shape_cast %35 : vector<1x128xi1> to vector<1x128xi1>
    %37 = vector.broadcast %36 : vector<1x128xi1> to vector<8x128xi1>
    %38 = vector.broadcast %cst_12 : f32 to vector<8x128xf32>
    %39 = arith.select %37, %30, %38 : vector<8x128xi1>, vector<8x128xf32>
    %c0_13 = arith.constant 0 : index
    %c0_14 = arith.constant 0 : index
    %c0_15 = arith.constant 0 : index
    %40 = vector.load %arg5[%c0_13, %c0_14, %c0_15] : memref<1x8x128xf32, #tpu.memory_space<vmem>>, vector<1x8x128xf32>
    %41 = vector.shape_cast %39 : vector<8x128xf32> to vector<1x8x128xf32>
    %42 = arith.addf %40, %41 : vector<1x8x128xf32>
    %c0_16 = arith.constant 0 : index
    %c0_17 = arith.constant 0 : index
    %c0_18 = arith.constant 0 : index
    %43 = vector.load %arg5[%c0_16, %c0_17, %c0_18] : memref<1x8x128xf32, #tpu.memory_space<vmem>>, vector<1x8x128xf32>
    tpu.vector_store %arg5[%c0_16, %c0_17, %c0_18], %42 {strides = array<i32>} : memref<1x8x128xf32, #tpu.memory_space<vmem>>, vector<1x8x128xf32>,
    return
  }
  func.func @transform_0(%arg0: i32, %arg1: i32) -> (i32, i32, i32) {
    %c0_i32 = arith.constant 0 : i32
    %c0_i32_0 = arith.constant 0 : i32
    return %arg0, %c0_i32, %arg1 : i32, i32, i32
  }
  func.func @transform_1(%arg0: i32, %arg1: i32) -> (i32, i32, i32) {
    %c2_i32 = arith.constant 2 : i32
    %0 = arith.addi %arg0, %c2_i32 : i32
    %c0_i32 = arith.constant 0 : i32
    %c0_i32_0 = arith.constant 0 : i32
    return %0, %c0_i32, %arg1 : i32, i32, i32
  }
  func.func @transform_2(%arg0: i32, %arg1: i32) -> (i32, i32) {
    %c0_i32 = arith.constant 0 : i32
    %c0_i32_0 = arith.constant 0 : i32
    %c0_i32_1 = arith.constant 0 : i32
    return %c0_i32, %c0_i32_0 : i32, i32
  }
  func.func @transform_3(%arg0: i32, %arg1: i32) -> (i32, i32, i32) {
    %c0_i32 = arith.constant 0 : i32
    %c0_i32_0 = arith.constant 0 : i32
    %c0_i32_1 = arith.constant 0 : i32
    return %arg0, %c0_i32, %c0_i32_0 : i32, i32, i32
  }
}

module attributes {stable_mosaic.version = 11 : i64} {
  func.func @_lpips_dist_kernel(%arg0: i32, %arg1: i32, %arg2: memref<1x64x128xbf16, #tpu.memory_space<vmem>>, %arg3: memref<1x64x128xbf16, #tpu.memory_space<vmem>>, %arg4: memref<8x64xf32, #tpu.memory_space<vmem>>, %arg5: memref<1x8x128xf32, #tpu.memory_space<vmem>>) attributes {dimension_semantics = [#tpu.dimension_semantics<parallel>, #tpu.dimension_semantics<arbitrary>], iteration_bounds = array<i64: 2, 2>, scalar_prefetch = 0 : i64, scratch_operands = 0 : i64, tpu.core_type = #tpu.core_type<tc>, window_params = [{transform_indices = @transform_0, window_bounds = array<i64: 1, 64, 128>}, {transform_indices = @transform_1, window_bounds = array<i64: 1, 64, 128>}, {pipeline_mode = #tpu.pipeline_mode<synchronous>, transform_indices = @transform_2, window_bounds = array<i64: 8, 64>}, {transform_indices = @transform_3, window_bounds = array<i64: 1, 8, 128>}]} {
    %c0_i32 = arith.constant 0 : i32
    %0 = arith.cmpi eq, %arg1, %c0_i32 : i32
    %1 = arith.extui %0 : i1 to i32
    %c0_i32_0 = arith.constant 0 : i32
    %2 = arith.cmpi ne, %1, %c0_i32_0 : i32
    scf.if %2 {
      %cst_19 = arith.constant 0.000000e+00 : f32
      %44 = vector.broadcast %cst_19 : f32 to vector<1x8x128xf32>
      %c0_20 = arith.constant 0 : index
      %c0_21 = arith.constant 0 : index
      %c0_22 = arith.constant 0 : index
      %45 = vector.load %arg5[%c0_20, %c0_21, %c0_22] : memref<1x8x128xf32, #tpu.memory_space<vmem>>, vector<1x8x128xf32>
      tpu.vector_store %arg5[%c0_20, %c0_21, %c0_22], %44 {strides = array<i32>} : memref<1x8x128xf32, #tpu.memory_space<vmem>>, vector<1x8x128xf32>,
    } else {
    }
    %c0 = arith.constant 0 : index
    %c0_1 = arith.constant 0 : index
    %c0_2 = arith.constant 0 : index
    %3 = vector.load %arg2[%c0, %c0_1, %c0_2] : memref<1x64x128xbf16, #tpu.memory_space<vmem>>, vector<1x64x128xbf16>
    %4 = vector.shape_cast %3 : vector<1x64x128xbf16> to vector<64x128xbf16>
    %5 = arith.extf %4 : vector<64x128xbf16> to vector<64x128xf32>
    %c0_3 = arith.constant 0 : index
    %c0_4 = arith.constant 0 : index
    %c0_5 = arith.constant 0 : index
    %6 = vector.load %arg3[%c0_3, %c0_4, %c0_5] : memref<1x64x128xbf16, #tpu.memory_space<vmem>>, vector<1x64x128xbf16>
    %7 = vector.shape_cast %6 : vector<1x64x128xbf16> to vector<64x128xbf16>
    %8 = arith.extf %7 : vector<64x128xbf16> to vector<64x128xf32>
    %9 = arith.mulf %5, %5 : vector<64x128xf32>
    %cst = arith.constant dense<0.000000e+00> : vector<128xf32>
    %10 = vector.multi_reduction <add>, %9, %cst [0] : vector<64x128xf32> to vector<128xf32>
    %11 = vector.shape_cast %10 : vector<128xf32> to vector<1x128xf32>
    %12 = math.sqrt %11 : vector<1x128xf32>
    %13 = arith.mulf %8, %8 : vector<64x128xf32>
    %cst_6 = arith.constant dense<0.000000e+00> : vector<128xf32>
    %14 = vector.multi_reduction <add>, %13, %cst_6 [0] : vector<64x128xf32> to vector<128xf32>
    %15 = vector.shape_cast %14 : vector<128xf32> to vector<1x128xf32>
    %16 = math.sqrt %15 : vector<1x128xf32>
    %cst_7 = arith.constant 1.000000e-10 : f32
    %17 = vector.broadcast %cst_7 : f32 to vector<1x128xf32>
    %18 = arith.addf %12, %17 : vector<1x128xf32>
    %19 = tpu.reciprocal %18 {approx = true} : vector<1x128xf32> -> vector<1x128xf32>
    %cst_8 = arith.constant 1.000000e-10 : f32
    %20 = vector.broadcast %cst_8 : f32 to vector<1x128xf32>
    %21 = arith.addf %16, %20 : vector<1x128xf32>
    %22 = tpu.reciprocal %21 {approx = true} : vector<1x128xf32> -> vector<1x128xf32>
    %23 = vector.broadcast %19 : vector<1x128xf32> to vector<64x128xf32>
    %24 = arith.mulf %5, %23 : vector<64x128xf32>
    %25 = vector.broadcast %22 : vector<1x128xf32> to vector<64x128xf32>
    %26 = arith.mulf %8, %25 : vector<64x128xf32>
    %27 = arith.subf %24, %26 : vector<64x128xf32>
    %28 = arith.mulf %27, %27 : vector<64x128xf32>
    %c0_9 = arith.constant 0 : index
    %c0_10 = arith.constant 0 : index
    %29 = vector.load %arg4[%c0_9, %c0_10] : memref<8x64xf32, #tpu.memory_space<vmem>>, vector<8x64xf32>
    %cst_11 = arith.constant dense<0.000000e+00> : vector<8x128xf32>
    %30 = tpu.matmul %29, %28, %cst_11 {dimension_numbers = #tpu.dot_dimension_numbers<[1], [0], [0], [1], [0, 0, 1, 1], [], []>} : vector<8x64xf32>, vector<64x128xf32>, vector<8x128xf32> -> vector<8x128xf32>
    %31 = tpu.iota {dimensions = array<i32: 1>} : vector<1x128xi32>
    %c128_i32 = arith.constant 128 : i32
    %32 = arith.muli %arg1, %c128_i32 : i32
    %c225_i32 = arith.constant 225 : i32
    %33 = arith.subi %c225_i32, %32 : i32
    %34 = vector.broadcast %33 : i32 to vector<1x128xi32>
    %35 = arith.cmpi slt, %31, %34 : vector<1x128xi32>
    %cst_12 = arith.constant 0.000000e+00 : f32
    %36 = vector.shape_cast %35 : vector<1x128xi1> to vector<1x128xi1>
    %37 = vector.broadcast %36 : vector<1x128xi1> to vector<8x128xi1>
    %38 = vector.broadcast %cst_12 : f32 to vector<8x128xf32>
    %39 = arith.select %37, %30, %38 : vector<8x128xi1>, vector<8x128xf32>
    %c0_13 = arith.constant 0 : index
    %c0_14 = arith.constant 0 : index
    %c0_15 = arith.constant 0 : index
    %40 = vector.load %arg5[%c0_13, %c0_14, %c0_15] : memref<1x8x128xf32, #tpu.memory_space<vmem>>, vector<1x8x128xf32>
    %41 = vector.shape_cast %39 : vector<8x128xf32> to vector<1x8x128xf32>
    %42 = arith.addf %40, %41 : vector<1x8x128xf32>
    %c0_16 = arith.constant 0 : index
    %c0_17 = arith.constant 0 : index
    %c0_18 = arith.constant 0 : index
    %43 = vector.load %arg5[%c0_16, %c0_17, %c0_18] : memref<1x8x128xf32, #tpu.memory_space<vmem>>, vector<1x8x128xf32>
    tpu.vector_store %arg5[%c0_16, %c0_17, %c0_18], %42 {strides = array<i32>} : memref<1x8x128xf32, #tpu.memory_space<vmem>>, vector<1x8x128xf32>,
    return
  }
  func.func @transform_0(%arg0: i32, %arg1: i32) -> (i32, i32, i32) {
    %c0_i32 = arith.constant 0 : i32
    %c0_i32_0 = arith.constant 0 : i32
    return %arg0, %c0_i32, %arg1 : i32, i32, i32
  }
  func.func @transform_1(%arg0: i32, %arg1: i32) -> (i32, i32, i32) {
    %c2_i32 = arith.constant 2 : i32
    %0 = arith.addi %arg0, %c2_i32 : i32
    %c0_i32 = arith.constant 0 : i32
    %c0_i32_0 = arith.constant 0 : i32
    return %0, %c0_i32, %arg1 : i32, i32, i32
  }
  func.func @transform_2(%arg0: i32, %arg1: i32) -> (i32, i32) {
    %c0_i32 = arith.constant 0 : i32
    %c0_i32_0 = arith.constant 0 : i32
    %c0_i32_1 = arith.constant 0 : i32
    return %c0_i32, %c0_i32_0 : i32, i32
  }
  func.func @transform_3(%arg0: i32, %arg1: i32) -> (i32, i32, i32) {
    %c0_i32 = arith.constant 0 : i32
    %c0_i32_0 = arith.constant 0 : i32
    %c0_i32_1 = arith.constant 0 : i32
    return %arg0, %c0_i32, %c0_i32_0 : i32, i32, i32
  }
}

module attributes {stable_mosaic.version = 11 : i64} {
  func.func @_lpips_dist_kernel(%arg0: i32, %arg1: i32, %arg2: memref<1x192x128xbf16, #tpu.memory_space<vmem>>, %arg3: memref<1x192x128xbf16, #tpu.memory_space<vmem>>, %arg4: memref<8x192xf32, #tpu.memory_space<vmem>>, %arg5: memref<1x8x128xf32, #tpu.memory_space<vmem>>) attributes {dimension_semantics = [#tpu.dimension_semantics<parallel>, #tpu.dimension_semantics<arbitrary>], iteration_bounds = array<i64: 2, 1>, scalar_prefetch = 0 : i64, scratch_operands = 0 : i64, tpu.core_type = #tpu.core_type<tc>, window_params = [{transform_indices = @transform_0, window_bounds = array<i64: 1, 192, 128>}, {transform_indices = @transform_1, window_bounds = array<i64: 1, 192, 128>}, {pipeline_mode = #tpu.pipeline_mode<synchronous>, transform_indices = @transform_2, window_bounds = array<i64: 8, 192>}, {transform_indices = @transform_3, window_bounds = array<i64: 1, 8, 128>}]} {
    %c0_i32 = arith.constant 0 : i32
    %0 = arith.cmpi eq, %arg1, %c0_i32 : i32
    %1 = arith.extui %0 : i1 to i32
    %c0_i32_0 = arith.constant 0 : i32
    %2 = arith.cmpi ne, %1, %c0_i32_0 : i32
    scf.if %2 {
      %cst_19 = arith.constant 0.000000e+00 : f32
      %44 = vector.broadcast %cst_19 : f32 to vector<1x8x128xf32>
      %c0_20 = arith.constant 0 : index
      %c0_21 = arith.constant 0 : index
      %c0_22 = arith.constant 0 : index
      %45 = vector.load %arg5[%c0_20, %c0_21, %c0_22] : memref<1x8x128xf32, #tpu.memory_space<vmem>>, vector<1x8x128xf32>
      tpu.vector_store %arg5[%c0_20, %c0_21, %c0_22], %44 {strides = array<i32>} : memref<1x8x128xf32, #tpu.memory_space<vmem>>, vector<1x8x128xf32>,
    } else {
    }
    %c0 = arith.constant 0 : index
    %c0_1 = arith.constant 0 : index
    %c0_2 = arith.constant 0 : index
    %3 = vector.load %arg2[%c0, %c0_1, %c0_2] : memref<1x192x128xbf16, #tpu.memory_space<vmem>>, vector<1x192x128xbf16>
    %4 = vector.shape_cast %3 : vector<1x192x128xbf16> to vector<192x128xbf16>
    %5 = arith.extf %4 : vector<192x128xbf16> to vector<192x128xf32>
    %c0_3 = arith.constant 0 : index
    %c0_4 = arith.constant 0 : index
    %c0_5 = arith.constant 0 : index
    %6 = vector.load %arg3[%c0_3, %c0_4, %c0_5] : memref<1x192x128xbf16, #tpu.memory_space<vmem>>, vector<1x192x128xbf16>
    %7 = vector.shape_cast %6 : vector<1x192x128xbf16> to vector<192x128xbf16>
    %8 = arith.extf %7 : vector<192x128xbf16> to vector<192x128xf32>
    %9 = arith.mulf %5, %5 : vector<192x128xf32>
    %cst = arith.constant dense<0.000000e+00> : vector<128xf32>
    %10 = vector.multi_reduction <add>, %9, %cst [0] : vector<192x128xf32> to vector<128xf32>
    %11 = vector.shape_cast %10 : vector<128xf32> to vector<1x128xf32>
    %12 = math.sqrt %11 : vector<1x128xf32>
    %13 = arith.mulf %8, %8 : vector<192x128xf32>
    %cst_6 = arith.constant dense<0.000000e+00> : vector<128xf32>
    %14 = vector.multi_reduction <add>, %13, %cst_6 [0] : vector<192x128xf32> to vector<128xf32>
    %15 = vector.shape_cast %14 : vector<128xf32> to vector<1x128xf32>
    %16 = math.sqrt %15 : vector<1x128xf32>
    %cst_7 = arith.constant 1.000000e-10 : f32
    %17 = vector.broadcast %cst_7 : f32 to vector<1x128xf32>
    %18 = arith.addf %12, %17 : vector<1x128xf32>
    %19 = tpu.reciprocal %18 {approx = true} : vector<1x128xf32> -> vector<1x128xf32>
    %cst_8 = arith.constant 1.000000e-10 : f32
    %20 = vector.broadcast %cst_8 : f32 to vector<1x128xf32>
    %21 = arith.addf %16, %20 : vector<1x128xf32>
    %22 = tpu.reciprocal %21 {approx = true} : vector<1x128xf32> -> vector<1x128xf32>
    %23 = vector.broadcast %19 : vector<1x128xf32> to vector<192x128xf32>
    %24 = arith.mulf %5, %23 : vector<192x128xf32>
    %25 = vector.broadcast %22 : vector<1x128xf32> to vector<192x128xf32>
    %26 = arith.mulf %8, %25 : vector<192x128xf32>
    %27 = arith.subf %24, %26 : vector<192x128xf32>
    %28 = arith.mulf %27, %27 : vector<192x128xf32>
    %c0_9 = arith.constant 0 : index
    %c0_10 = arith.constant 0 : index
    %29 = vector.load %arg4[%c0_9, %c0_10] : memref<8x192xf32, #tpu.memory_space<vmem>>, vector<8x192xf32>
    %cst_11 = arith.constant dense<0.000000e+00> : vector<8x128xf32>
    %30 = tpu.matmul %29, %28, %cst_11 {dimension_numbers = #tpu.dot_dimension_numbers<[1], [0], [0], [1], [0, 0, 1, 1], [], []>} : vector<8x192xf32>, vector<192x128xf32>, vector<8x128xf32> -> vector<8x128xf32>
    %31 = tpu.iota {dimensions = array<i32: 1>} : vector<1x128xi32>
    %c128_i32 = arith.constant 128 : i32
    %32 = arith.muli %arg1, %c128_i32 : i32
    %c49_i32 = arith.constant 49 : i32
    %33 = arith.subi %c49_i32, %32 : i32
    %34 = vector.broadcast %33 : i32 to vector<1x128xi32>
    %35 = arith.cmpi slt, %31, %34 : vector<1x128xi32>
    %cst_12 = arith.constant 0.000000e+00 : f32
    %36 = vector.shape_cast %35 : vector<1x128xi1> to vector<1x128xi1>
    %37 = vector.broadcast %36 : vector<1x128xi1> to vector<8x128xi1>
    %38 = vector.broadcast %cst_12 : f32 to vector<8x128xf32>
    %39 = arith.select %37, %30, %38 : vector<8x128xi1>, vector<8x128xf32>
    %c0_13 = arith.constant 0 : index
    %c0_14 = arith.constant 0 : index
    %c0_15 = arith.constant 0 : index
    %40 = vector.load %arg5[%c0_13, %c0_14, %c0_15] : memref<1x8x128xf32, #tpu.memory_space<vmem>>, vector<1x8x128xf32>
    %41 = vector.shape_cast %39 : vector<8x128xf32> to vector<1x8x128xf32>
    %42 = arith.addf %40, %41 : vector<1x8x128xf32>
    %c0_16 = arith.constant 0 : index
    %c0_17 = arith.constant 0 : index
    %c0_18 = arith.constant 0 : index
    %43 = vector.load %arg5[%c0_16, %c0_17, %c0_18] : memref<1x8x128xf32, #tpu.memory_space<vmem>>, vector<1x8x128xf32>
    tpu.vector_store %arg5[%c0_16, %c0_17, %c0_18], %42 {strides = array<i32>} : memref<1x8x128xf32, #tpu.memory_space<vmem>>, vector<1x8x128xf32>,
    return
  }
  func.func @transform_0(%arg0: i32, %arg1: i32) -> (i32, i32, i32) {
    %c0_i32 = arith.constant 0 : i32
    %c0_i32_0 = arith.constant 0 : i32
    return %arg0, %c0_i32, %arg1 : i32, i32, i32
  }
  func.func @transform_1(%arg0: i32, %arg1: i32) -> (i32, i32, i32) {
    %c2_i32 = arith.constant 2 : i32
    %0 = arith.addi %arg0, %c2_i32 : i32
    %c0_i32 = arith.constant 0 : i32
    %c0_i32_0 = arith.constant 0 : i32
    return %0, %c0_i32, %arg1 : i32, i32, i32
  }
  func.func @transform_2(%arg0: i32, %arg1: i32) -> (i32, i32) {
    %c0_i32 = arith.constant 0 : i32
    %c0_i32_0 = arith.constant 0 : i32
    %c0_i32_1 = arith.constant 0 : i32
    return %c0_i32, %c0_i32_0 : i32, i32
  }
  func.func @transform_3(%arg0: i32, %arg1: i32) -> (i32, i32, i32) {
    %c0_i32 = arith.constant 0 : i32
    %c0_i32_0 = arith.constant 0 : i32
    %c0_i32_1 = arith.constant 0 : i32
    return %arg0, %c0_i32, %c0_i32_0 : i32, i32, i32
  }
}

</mosaic_0001>

<bundles_post_ra>
// kernel: lpips_forward.9
= control target key start
LH: loop header
LB: loop body
LE: loop exit
PB: predicated region body
PF: predicated region fallthrough
CT: control target
= control target key end

     0   :  { %s1045_s12 = smov 0   ;;  %s1047_s13 = smov 0   ;;  %s1530_s0 = inlined_call_operand.vmem [shape: bf16[4,256,128], index: 0, kind: input, shape index: {}, may-alias: {0,1}]   ;;  %s1531_s1 = inlined_call_operand.vmem [shape: bf16[4,256,128], index: 1, kind: input, shape index: {}, may-alias: {0,1}]   ;;  %s1532_s2 = inlined_call_operand.vmem [shape: f32[8,256], index: 2, kind: input, shape index: {}]   ;;  %s1533_s3 = inlined_call_operand.vmem [shape: f32[2,8,128], index: 3, kind: output, shape index: {}]  }
   0x1   :  { %s1049_s14 = smov 0  }
   0x2 LB: > { %s25_s15 = sadd.s32 1, %s1019_s13  ;;  %p800_p0 = scmp.ge.s32.totalorder %s1023_s14, 1  ;;  %s1023_s14 = sphi %s1049_s14, %s13_s14   ;;  %s1019_s13 = sphi %s1047_s13, %s1604_s13   ;;  %s1015_s12 = sphi %s1045_s12, %s1603_s12  }
   0x3   : > { %p27_p1 = scmp.ge.s32.totalorder %s25_s15, 2  ;;  %p173_p2 = scmp.lt.s32.totalorder %s1023_s14, 3 }
   0x5   : > { %s1606_s15 = smov (%p27_p1, %s25_s15), 0  ;;  %p174_p3 = pnand %p800_p0, %p173_p2 }
   0x7   : > { %177 = sbr.rel (%p174_p3) target bundleno = 299 (0x12b), region = 32 }
   0xc   : > { %p208_p4 = scmp.lt.s32.totalorder %s1015_s12, 3  ;;  %s216_s16 = sadd.s32 2, %s1015_s12 }
   0xd   : > { %p217_p5 = scmp.lt.s32.totalorder %s216_s16, 3  ;;  %p226_p6 = scmp.lt.s32.totalorder %s1015_s12, 1 }
   0xe   : > { %s209_s17 = scalar_select %p208_p4, %s1015_s12, 3 }
   0xf   : > { %s1608_s16 = smov (!%p217_p5, %s216_s16), 3  ;;  %s1610_s12 = smov (!%p226_p6, %s1015_s12), 1 }
  0x10   : > { %s808_s18 = sshll.u32 %s209_s17, 7  ;;  %s809_s22 = sshll.u32 %s1608_s16, 7 }
  0x11   : > { %s1071_s21 = scalar_lea.vmem %s1530_s0, %s808_s18  ;;  %s1077_s25 = scalar_lea.vmem %s1531_s1, %s809_s22 }
  0x12   : > { %v811_v0 = vld [vmem:[%s1071_s21] sm:$0xff]   ;;  %v938_v1 = vld [vmem:[%s1071_s21 + $0x8] sm:$0xff]   ;;  %v939_v6 = vld [vmem:[%s1071_s21 + $0x10] sm:$0xff]   ;;  %s805_s30 = sshll.u32 %s1610_s12, 3 }
  0x13   : > { %v1080_v2 = vunpack.c.l.bf16 %v811_v0  ;;  %v1082_v3 = vunpack.c.h.bf16 %v811_v0  ;;  %v1084_v4 = vunpack.c.l.bf16 %v938_v1  ;;  %v875_v5 = vld [vmem:[%s1077_s25] sm:$0xff]   ;;  %v1088_v7 = vunpack.c.h.bf16 %v938_v1  ;;  %v953_v8 = vld [vmem:[%s1077_s25 + $0x8] sm:$0xff]   ;;  %v940_v15 = vld [vmem:[%s1071_s21 + $0x18] sm:$0xff]   ;;  %s229_s6 = scalar_lea.vmem %s1533_s3, %s805_s30 }
  0x14   : > { %v1095_v11 = vunpack.c.l.bf16 %v875_v5  ;;  %v1097_v12 = vunpack.c.h.bf16 %v875_v5  ;;  %v1099_v13 = vunpack.c.l.bf16 %v939_v6  ;;  %v1104_v16 = vunpack.c.l.bf16 %v953_v8  ;;  %v954_v18 = vld [vmem:[%s1077_s25 + $0x10] sm:$0xff]   ;;  %v941_v27 = vld [vmem:[%s1071_s21 + $0x20] sm:$0xff]   ;;  %v955_v31 = vld [vmem:[%s1077_s25 + $0x18] sm:$0xff]  }
  0x15   : > { %1557 = vst [vmem:[#allocation2_spill] sm:$0xff] %v1080_v2  ;;  %v363_v9 = vmul.f32 %v1080_v2, %v1080_v2  ;;  %v364_v10 = vmul.f32 %v1082_v3, %v1082_v3  ;;  %v365_v14 = vmul.f32 %v1084_v4, %v1084_v4  ;;  %v1106_v17 = vunpack.c.h.bf16 %v939_v6  ;;  %v942_v40 = vld [vmem:[%s1071_s21 + $0x28] sm:$0xff]   ;;  %v956_v45 = vld [vmem:[%s1077_s25 + $0x20] sm:$0xff]   ;;  %v943_v54 = vld [vmem:[%s1071_s21 + $0x30] sm:$0xff]  }
  0x16   : > { %1558 = vst [vmem:[#allocation3_spill] sm:$0xff] %v1082_v3  ;;  %v366_v19 = vmul.f32 %v1088_v7, %v1088_v7  ;;  %v1111_v21 = vunpack.c.h.bf16 %v953_v8  ;;  %v444_v22 = vmul.f32 %v1095_v11, %v1095_v11  ;;  %v445_v23 = vmul.f32 %v1097_v12, %v1097_v12  ;;  %v957_v59 = vld [vmem:[%s1077_s25 + $0x28] sm:$0xff]   ;;  %v944_v8 = vld [vmem:[%s1071_s21 + $0x38] sm:$0xff]  }
  0x17   : > { %1559 = vst [vmem:[#allocation4_spill] sm:$0xff] %v1084_v4  ;;  %v395_v20 = vadd.f32 %v364_v10, %v363_v9  ;;  %v1117_v24 = vunpack.c.l.bf16 %v940_v15  ;;  %v367_v25 = vmul.f32 %v1099_v13, %v1099_v13  ;;  %v1122_v28 = vunpack.c.l.bf16 %v954_v18 }
  0x18   : > { %1560 = vst [vmem:[#allocation5_spill] sm:$0xff] %v1088_v7  ;;  %v446_v29 = vmul.f32 %v1104_v16, %v1104_v16  ;;  %v1126_v30 = vunpack.c.h.bf16 %v940_v15  ;;  %v368_v32 = vmul.f32 %v1106_v17, %v1106_v17  ;;  %v1131_v34 = vunpack.c.h.bf16 %v954_v18  ;;  %v958_v18 = vld [vmem:[%s1077_s25 + $0x30] sm:$0xff]  }
  0x19   : > { %1561 = vst [vmem:[#allocation6_spill] sm:$0xff] %v1095_v11  ;;  %v396_v26 = vadd.f32 %v395_v20, %v365_v14  ;;  %v447_v35 = vmul.f32 %v1111_v21, %v1111_v21  ;;  %v476_v36 = vadd.f32 %v445_v23, %v444_v22  ;;  %v1135_v37 = vunpack.c.l.bf16 %v941_v27 }
  0x1a   : > { %1562 = vst [vmem:[#allocation7_spill] sm:$0xff] %v1097_v12  ;;  %v369_v38 = vmul.f32 %v1117_v24, %v1117_v24  ;;  %v1140_v41 = vunpack.c.l.bf16 %v955_v31  ;;  %v448_v42 = vmul.f32 %v1122_v28, %v1122_v28  ;;  %v1144_v44 = vunpack.c.h.bf16 %v941_v27 }
  0x1b   : > { %1563 = vst [vmem:[#allocation8_spill] sm:$0xff] %v1099_v13  ;;  %v397_v33 = vadd.f32 %v396_v26, %v366_v19  ;;  %v477_v43 = vadd.f32 %v476_v36, %v446_v29  ;;  %v370_v46 = vmul.f32 %v1126_v30, %v1126_v30  ;;  %v1149_v48 = vunpack.c.h.bf16 %v955_v31  ;;  %v945_v31 = vld [vmem:[%s1071_s21 + $0x40] sm:$0xff]  }
  0x1c   : > { %1564 = vst [vmem:[#allocation9_spill] sm:$0xff] %v1104_v16  ;;  %v449_v49 = vmul.f32 %v1131_v34, %v1131_v34  ;;  %v1153_v51 = vunpack.c.l.bf16 %v942_v40  ;;  %v371_v52 = vmul.f32 %v1135_v37, %v1135_v37  ;;  %v1158_v55 = vunpack.c.l.bf16 %v956_v45 }
  0x1d   : > { %1565 = vst [vmem:[#allocation10_spill] sm:$0xff] %v1111_v21  ;;  %v398_v39 = vadd.f32 %v397_v33, %v367_v25  ;;  %v478_v50 = vadd.f32 %v477_v43, %v447_v35  ;;  %v450_v56 = vmul.f32 %v1140_v41, %v1140_v41  ;;  %v1162_v58 = vunpack.c.h.bf16 %v942_v40 }
  0x1e   : > { %1566 = vst [vmem:[#allocation11_spill] sm:$0xff] %v1122_v28  ;;  %v372_v60 = vmul.f32 %v1144_v44, %v1144_v44  ;;  %v1167_v62 = vunpack.c.h.bf16 %v956_v45  ;;  %v451_v63 = vmul.f32 %v1149_v48, %v1149_v48  ;;  %v1171_v1 = vunpack.c.l.bf16 %v943_v54 }
  0x1f   : > { %1567 = vst [vmem:[#allocation12_spill] sm:$0xff] %v1131_v34  ;;  %v399_v47 = vadd.f32 %v398_v39, %v368_v32  ;;  %v479_v57 = vadd.f32 %v478_v50, %v448_v42  ;;  %v373_v5 = vmul.f32 %v1153_v51, %v1153_v51  ;;  %v1176_v9 = vunpack.c.l.bf16 %v957_v59  ;;  %v946_v50 = vld [vmem:[%s1071_s21 + $0x48] sm:$0xff]  }
  0x20   : > { %v452_v10 = vmul.f32 %v1158_v55, %v1158_v55  ;;  %v1180_v15 = vunpack.c.h.bf16 %v943_v54  ;;  %v374_v19 = vmul.f32 %v1162_v58, %v1162_v58  ;;  %v1185_v22 = vunpack.c.h.bf16 %v957_v59 }
  0x21   : > { %v400_v53 = vadd.f32 %v399_v47, %v369_v38  ;;  %v480_v0 = vadd.f32 %v479_v57, %v449_v49  ;;  %v453_v23 = vmul.f32 %v1167_v62, %v1167_v62  ;;  %v1189_v26 = vunpack.c.l.bf16 %v944_v8  ;;  %v959_v38 = vld [vmem:[%s1077_s25 + $0x38] sm:$0xff]   ;;  %v960_v57 = vld [vmem:[%s1077_s25 + $0x40] sm:$0xff]  }
  0x22   : > { %v375_v27 = vmul.f32 %v1171_v1, %v1171_v1  ;;  %v1194_v32 = vunpack.c.l.bf16 %v958_v18  ;;  %v454_v33 = vmul.f32 %v1176_v9, %v1176_v9  ;;  %v1198_v36 = vunpack.c.h.bf16 %v944_v8 }
  0x23   : > { %v401_v61 = vadd.f32 %v400_v53, %v370_v46  ;;  %v481_v14 = vadd.f32 %v480_v0, %v450_v56  ;;  %v376_v39 = vmul.f32 %v1180_v15, %v1180_v15  ;;  %v1203_v42 = vunpack.c.h.bf16 %v958_v18 }
  0x24   : > { %v455_v43 = vmul.f32 %v1185_v22, %v1185_v22  ;;  %v1207_v46 = vunpack.c.l.bf16 %v945_v31  ;;  %v377_v47 = vmul.f32 %v1189_v26, %v1189_v26  ;;  %v456_v53 = vmul.f32 %v1194_v32, %v1194_v32 }
  0x25   : > { %v402_v6 = vadd.f32 %v401_v61, %v371_v52  ;;  %v482_v25 = vadd.f32 %v481_v14, %v451_v63  ;;  %v1212_v52 = vunpack.c.l.bf16 %v959_v38  ;;  %v1216_v56 = vunpack.c.h.bf16 %v945_v31 }
  0x26   : > { %1568 = vst [vmem:[#allocation13_spill] sm:$0xff] %v1207_v46  ;;  %v378_v59 = vmul.f32 %v1198_v36, %v1198_v36  ;;  %v1221_v61 = vunpack.c.h.bf16 %v959_v38  ;;  %v457_v63 = vmul.f32 %v1203_v42, %v1203_v42  ;;  %v1230_v14 = vunpack.c.l.bf16 %v960_v57 }
  0x27   : > { %v403_v20 = vadd.f32 %v402_v6, %v372_v60  ;;  %v483_v35 = vadd.f32 %v482_v25, %v452_v10  ;;  %1569 = vst [vmem:[#allocation14_spill] sm:$0xff] %v1216_v56  ;;  %v379_v6 = vmul.f32 %v1207_v46, %v1207_v46  ;;  %v947_v10 = vld [vmem:[%s1071_s21 + $0x50] sm:$0xff]   ;;  %v458_v18 = vmul.f32 %v1212_v52, %v1212_v52 }
  0x28   : > { %1571 = vst [vmem:[#allocation16_spill] sm:$0xff] %v1230_v14  ;;  %v380_v25 = vmul.f32 %v1216_v56, %v1216_v56  ;;  %v459_v31 = vmul.f32 %v1221_v61, %v1221_v61 }
  0x29   : > { %v404_v29 = vadd.f32 %v403_v20, %v373_v5  ;;  %v484_v45 = vadd.f32 %v483_v35, %v453_v23  ;;  %v1225_v5 = vunpack.c.l.bf16 %v946_v50  ;;  %v1234_v20 = vunpack.c.h.bf16 %v946_v50  ;;  %v961_v23 = vld [vmem:[%s1077_s25 + $0x48] sm:$0xff]   ;;  %v962_v50 = vld [vmem:[%s1077_s25 + $0x50] sm:$0xff]  }
  0x2a   : > { %v1243_v35 = vunpack.c.l.bf16 %v947_v10 }
  0x2b   : > { %v405_v40 = vadd.f32 %v404_v29, %v374_v19  ;;  %v485_v54 = vadd.f32 %v484_v45, %v454_v33  ;;  %1570 = vst [vmem:[#allocation15_spill] sm:$0xff] %v1225_v5  ;;  %v1239_v29 = vunpack.c.h.bf16 %v960_v57  ;;  %v381_v38 = vmul.f32 %v1225_v5, %v1225_v5 }
  0x2c   : > { %1572 = vst [vmem:[#allocation17_spill] sm:$0xff] %v1234_v20  ;;  %v460_v45 = vmul.f32 %v1230_v14, %v1230_v14  ;;  %v1257_v57 = vunpack.c.h.bf16 %v961_v23 }
  0x2d   : > { %v406_v49 = vadd.f32 %v405_v40, %v375_v27  ;;  %v486_v0 = vadd.f32 %v485_v54, %v455_v43  ;;  %1573 = vst [vmem:[#allocation18_spill] sm:$0xff] %v1239_v29  ;;  %v948_v40 = vld [vmem:[%s1071_s21 + $0x58] sm:$0xff]   ;;  %v1248_v43 = vunpack.c.l.bf16 %v961_v23 }
  0x2e   : > { %1574 = vst [vmem:[#allocation19_spill] sm:$0xff] %v1243_v35  ;;  %v1270_v23 = vunpack.c.h.bf16 %v948_v40 }
  0x2f   : > { %v407_v60 = vadd.f32 %v406_v49, %v376_v39  ;;  %v487_v19 = vadd.f32 %v486_v0, %v456_v53  ;;  %1575 = vst [vmem:[#allocation20_spill] sm:$0xff] %v1248_v43  ;;  %v1252_v49 = vunpack.c.h.bf16 %v947_v10  ;;  %v382_v53 = vmul.f32 %v1234_v20, %v1234_v20 }
  0x30   : > { %1577 = vst [vmem:[#allocation22_spill] sm:$0xff] %v1257_v57  ;;  %v383_v0 = vmul.f32 %v1243_v35, %v1243_v35  ;;  %v1266_v10 = vunpack.c.l.bf16 %v962_v50 }
  0x31   : > { %v408_v8 = vadd.f32 %v407_v60, %v377_v47  ;;  %v488_v33 = vadd.f32 %v487_v19, %v457_v63  ;;  %1576 = vst [vmem:[#allocation21_spill] sm:$0xff] %v1252_v49  ;;  %v1261_v63 = vunpack.c.l.bf16 %v948_v40  ;;  %v950_v40 = vld [vmem:[%s1071_s21 + $0x68] sm:$0xff]  }
  0x32   : > { %1578 = vst [vmem:[#allocation23_spill] sm:$0xff] %v1266_v10  ;;  %v464_v14 = vmul.f32 %v1266_v10, %v1266_v10  ;;  %v1297_v11 = vunpack.c.l.bf16 %v950_v40 }
  0x33   : > { %v409_v27 = vadd.f32 %v408_v8, %v378_v59  ;;  %v489_v47 = vadd.f32 %v488_v33, %v458_v18  ;;  %v461_v59 = vmul.f32 %v1239_v29, %v1239_v29  ;;  %v949_v8 = vld [vmem:[%s1071_s21 + $0x60] sm:$0xff]   ;;  %v462_v18 = vmul.f32 %v1248_v43, %v1248_v43 }
  0x34   : > { %v1275_v33 = vunpack.c.h.bf16 %v962_v50  ;;  %v1288_v50 = vunpack.c.h.bf16 %v949_v8  ;;  %v389_v3 = vmul.f32 %v1297_v11, %v1297_v11 }
  0x35   : > { %v410_v39 = vadd.f32 %v409_v27, %v379_v6  ;;  %v490_v60 = vadd.f32 %v489_v47, %v459_v31  ;;  %v384_v27 = vmul.f32 %v1252_v49, %v1252_v49  ;;  %v1279_v47 = vunpack.c.l.bf16 %v949_v8  ;;  %v951_v8 = vld [vmem:[%s1071_s21 + $0x70] sm:$0xff]  }
  0x36   : > { %1579 = vst [vmem:[#allocation24_spill] sm:$0xff] %v1275_v33  ;;  %v1315_v12 = vunpack.c.l.bf16 %v951_v8 }
  0x37   : > { %v411_v54 = vadd.f32 %v410_v39, %v380_v25  ;;  %v491_v19 = vadd.f32 %v490_v60, %v460_v45  ;;  %v963_v25 = vld [vmem:[%s1077_s25 + $0x58] sm:$0xff]   ;;  %v387_v2 = vmul.f32 %v1279_v47, %v1279_v47 }
  0x38   : > { %v1284_v60 = vunpack.c.l.bf16 %v963_v25  ;;  %v1293_v46 = vunpack.c.h.bf16 %v963_v25  ;;  %v1306_v25 = vunpack.c.h.bf16 %v950_v40  ;;  %v391_v4 = vmul.f32 %v1315_v12, %v1315_v12 }
  0x39   : > { %v412_v6 = vadd.f32 %v411_v54, %v381_v38  ;;  %v463_v38 = vmul.f32 %v1257_v57, %v1257_v57  ;;  %v492_v39 = vadd.f32 %v491_v19, %v461_v59  ;;  %v385_v54 = vmul.f32 %v1261_v63, %v1261_v63 }
  0x3a   : > { %v386_v59 = vmul.f32 %v1270_v23, %v1270_v23  ;;  %v466_v29 = vmul.f32 %v1284_v60, %v1284_v60 }
  0x3b   : > { %v413_v31 = vadd.f32 %v412_v6, %v382_v53  ;;  %v493_v53 = vadd.f32 %v492_v39, %v462_v18  ;;  %v964_v6 = vld [vmem:[%s1077_s25 + $0x60] sm:$0xff]  }
  0x3c   : > { %v1302_v39 = vunpack.c.l.bf16 %v964_v6  ;;  %v1311_v56 = vunpack.c.h.bf16 %v964_v6  ;;  %v1324_v6 = vunpack.c.h.bf16 %v951_v8 }
  0x3d   : > { %v414_v45 = vadd.f32 %v413_v31, %v383_v0  ;;  %v465_v0 = vmul.f32 %v1275_v33, %v1275_v33  ;;  %v494_v31 = vadd.f32 %v493_v53, %v463_v38  ;;  %v388_v38 = vmul.f32 %v1288_v50, %v1288_v50 }
  0x3e   : > { %v468_v43 = vmul.f32 %v1302_v39, %v1302_v39 }
  0x3f   : > { %v415_v19 = vadd.f32 %v414_v45, %v384_v27  ;;  %v495_v27 = vadd.f32 %v494_v31, %v464_v14  ;;  %v965_v45 = vld [vmem:[%s1077_s25 + $0x68] sm:$0xff]   ;;  %v952_v31 = vld [vmem:[%s1071_s21 + $0x78] sm:$0xff]  }
  0x40   : > { %v1320_v40 = vunpack.c.l.bf16 %v965_v45  ;;  %v1329_v5 = vunpack.c.h.bf16 %v965_v45  ;;  %v1333_v16 = vunpack.c.l.bf16 %v952_v31  ;;  %v1341_v20 = vunpack.c.h.bf16 %v952_v31  ;;  %v967_v45 = vld [vmem:[%s1077_s25 + $0x78] sm:$0xff]  }
  0x41   : > { %v416_v18 = vadd.f32 %v415_v19, %v385_v54  ;;  %v467_v54 = vmul.f32 %v1293_v46, %v1293_v46  ;;  %v496_v19 = vadd.f32 %v495_v27, %v465_v0  ;;  %v390_v0 = vmul.f32 %v1306_v25, %v1306_v25 }
  0x42   : > { %v470_v8 = vmul.f32 %v1320_v40, %v1320_v40  ;;  %v1352_v7 = vunpack.c.l.bf16 %v967_v45 }
  0x43   : > { %v417_v53 = vadd.f32 %v416_v18, %v386_v59  ;;  %v497_v59 = vadd.f32 %v496_v19, %v466_v29  ;;  %v966_v18 = vld [vmem:[%s1077_s25 + $0x70] sm:$0xff]  }
  0x44   : > { %v1337_v29 = vunpack.c.l.bf16 %v966_v18 }
  0x45   : > { %v418_v14 = vadd.f32 %v417_v53, %v387_v2  ;;  %v469_v2 = vmul.f32 %v1311_v56, %v1311_v56  ;;  %v498_v53 = vadd.f32 %v497_v59, %v467_v54  ;;  %v1346_v54 = vunpack.c.h.bf16 %v966_v18 }
  0x46   : > { %v471_v59 = vmul.f32 %v1329_v5, %v1329_v5  ;;  %v1358_v18 = vunpack.c.h.bf16 %v967_v45 }
  0x47   : > { %v419_v27 = vadd.f32 %v418_v14, %v388_v38  ;;  %v499_v19 = vadd.f32 %v498_v53, %v468_v43  ;;  %v392_v38 = vmul.f32 %v1324_v6, %v1324_v6  ;;  %v472_v43 = vmul.f32 %v1337_v29, %v1337_v29 }
  0x48   : > { %v394_v53 = vmul.f32 %v1341_v20, %v1341_v20  ;;  %v475_v35 = vmul.f32 %v1358_v18, %v1358_v18 }
  0x49   : > { %v420_v57 = vadd.f32 %v419_v27, %v389_v3  ;;  %v500_v21 = vadd.f32 %v499_v19, %v469_v2  ;;  %v393_v3 = vmul.f32 %v1333_v16, %v1333_v16 }
  0x4b   : > { %v421_v14 = vadd.f32 %v420_v57, %v390_v0  ;;  %v501_v31 = vadd.f32 %v500_v21, %v470_v8  ;;  %v473_v0 = vmul.f32 %v1346_v54, %v1346_v54 }
  0x4d   : > { %v422_v27 = vadd.f32 %v421_v14, %v391_v4  ;;  %v502_v2 = vadd.f32 %v501_v31, %v471_v59  ;;  %v474_v4 = vmul.f32 %v1352_v7, %v1352_v7 }
  0x4f   : > { %v423_v57 = vadd.f32 %v422_v27, %v392_v38  ;;  %v503_v14 = vadd.f32 %v502_v2, %v472_v43 }
  0x51   : > { %v424_v19 = vadd.f32 %v423_v57, %v393_v3  ;;  %v504_v21 = vadd.f32 %v503_v14, %v473_v0 }
  0x53   : > { %v425_v10 = vadd.f32 %v424_v19, %v394_v53  ;;  %v505_v28 = vadd.f32 %v504_v21, %v474_v4 }
  0x55   : > { %v426_v8 = vrot.slane %v425_v10, 4  ;;  %v506_v38 = vadd.f32 %v505_v28, %v475_v35 }
  0x57   : > { %v427_v13 = vadd.f32 %v426_v8, %v425_v10  ;;  %v507_v27 = vrot.slane %v506_v38, 4 }
  0x59   : > { %v428_v45 = vrot.slane %v427_v13, 2  ;;  %v508_v49 = vadd.f32 %v507_v27, %v506_v38 }
  0x5b   : > { %v429_v33 = vadd.f32 %v428_v45, %v427_v13  ;;  %v509_v59 = vrot.slane %v508_v49, 2 }
  0x5d   : > { %v430_v34 = vrot.slane %v429_v33, 1  ;;  %v510_v31 = vadd.f32 %v509_v59, %v508_v49 }
  0x5f   : > { %v431_v3 = vadd.f32 %v430_v34, %v429_v33  ;;  %v511_v57 = vrot.slane %v510_v31, 1 }
  0x61   : > { %993 = vrsqrt.f32 %v431_v3  ;;  %v512_v43 = vadd.f32 %v511_v57, %v510_v31  ;;  %vm439_vm0 = vcmp.eq.f32.partialorder %v431_v3, inf  ;;  %v442_v13 = vand.u32 2147483648, %v431_v3 }
  0x62   : > { %vm441_vm1 = vcmp.eq.f32.partialorder %v431_v3, 0.0 }
  0x63   : > { %995 = vrsqrt.f32 %v512_v43  ;;  %vm520_vm2 = vcmp.eq.f32.partialorder %v512_v43, inf  ;;  %v523_v45 = vand.u32 2147483648, %v512_v43  ;;  %vm522_vm3 = vcmp.eq.f32.partialorder %v512_v43, 0.0 }
  0x67   : > { %v994_v53 = vpop.eup %993 }
  0x68   : > { %v433_v2 = vmul.f32 %v994_v53, %v431_v3 }
  0x69   : > { %v996_v0 = vpop.eup %995 }
  0x6a   : > { %v434_v19 = vmul.f32 %v994_v53, %v433_v2  ;;  %v514_v4 = vmul.f32 %v996_v0, %v512_v43 }
  0x6c   : > { %v435_v14 = vmul.f32 0.5, %v434_v19  ;;  %v515_v28 = vmul.f32 %v996_v0, %v514_v4 }
  0x6e   : > { %v436_v10 = vsub.f32 1.5, %v435_v14  ;;  %v516_v21 = vmul.f32 0.5, %v515_v28 }
  0x70   : > { %v437_v35 = vmul.f32 %v994_v53, %v436_v10  ;;  %v517_v34 = vsub.f32 1.5, %v516_v21 }
  0x72   : > { %v438_v8 = vmul.f32 %v437_v35, %v431_v3  ;;  %v518_v38 = vmul.f32 %v996_v0, %v517_v34 }
  0x74   : > { %v440_v49 = vsel %vm439_vm0, %v431_v3, %v438_v8  ;;  %v519_v59 = vmul.f32 %v518_v38, %v512_v43 }
  0x75   : > { %v443_v33 = vsel %vm441_vm1, %v442_v13, %v440_v49 }
  0x76   : > { %v525_v27 = vadd.f32 1e-10, %v443_v33  ;;  %v521_v31 = vsel %vm520_vm2, %v512_v43, %v519_v59 }
  0x77   : > { %v524_v57 = vsel %vm522_vm3, %v523_v45, %v521_v31 }
  0x78   : > { %997 = vrcp.f32 %v525_v27  ;;  %v527_v2 = vadd.f32 1e-10, %v524_v57 }
  0x7a   : > { %999 = vrcp.f32 %v527_v2 }
  0x7e   : > { %v1366_v53 = vpop.eup %997 }
  0x7f   : > { %v544_v19 = vmul.f32 %v1366_v53, %v1198_v36  ;;  %v560_v3 = vmul.f32 %v1366_v53, %v1341_v20  ;;  %v543_v0 = vmul.f32 %v1366_v53, %v1189_v26  ;;  %v559_v14 = vmul.f32 %v1366_v53, %v1333_v16 }
  0x80   : > { %v542_v43 = vmul.f32 %v1366_v53, %v1180_v15  ;;  %v558_v4 = vmul.f32 %v1366_v53, %v1324_v6  ;;  %v541_v10 = vmul.f32 %v1366_v53, %v1171_v1  ;;  %v557_v36 = vmul.f32 %v1366_v53, %v1315_v12  ;;  %v1398_v28 = vpop.eup %999 }
  0x81   : > { %v540_v20 = vmul.f32 %v1366_v53, %v1162_v58  ;;  %v556_v26 = vmul.f32 %v1366_v53, %v1306_v25  ;;  %v539_v16 = vmul.f32 %v1366_v53, %v1153_v51  ;;  %v555_v15 = vmul.f32 %v1366_v53, %v1297_v11 }
  0x82   : > { %v538_v6 = vmul.f32 %v1366_v53, %v1144_v44  ;;  %v554_v1 = vmul.f32 %v1366_v53, %v1288_v50  ;;  %v537_v12 = vmul.f32 %v1366_v53, %v1135_v37  ;;  %v1402_v58 = vmul.f32 %v1366_v53, %v1279_v47 }
  0x83   : > { %v1406_v51 = vmul.f32 %v1366_v53, %v1126_v30  ;;  %v1410_v11 = vmul.f32 %v1366_v53, %v1270_v23  ;;  %v1414_v44 = vmul.f32 %v1366_v53, %v1117_v24  ;;  %v576_v37 = vmul.f32 %v1398_v28, %v1221_v61 }
  0x84   : > { %v592_v50 = vmul.f32 %v1398_v28, %v1358_v18  ;;  %v575_v47 = vmul.f32 %v1398_v28, %v1212_v52  ;;  %v591_v30 = vmul.f32 %v1398_v28, %v1352_v7  ;;  %v574_v23 = vmul.f32 %v1398_v28, %v1203_v42 }
  0x85   : > { %v590_v25 = vmul.f32 %v1398_v28, %v1346_v54  ;;  %v573_v24 = vmul.f32 %v1398_v28, %v1194_v32  ;;  %v589_v61 = vmul.f32 %v1398_v28, %v1337_v29  ;;  %v608_v35 = vsub.f32 %v544_v19, %v576_v37 }
  0x86   : > { %v624_v18 = vsub.f32 %v560_v3, %v592_v50  ;;  %v607_v13 = vsub.f32 %v543_v0, %v575_v47  ;;  %v623_v21 = vsub.f32 %v559_v14, %v591_v30  ;;  %v606_v52 = vsub.f32 %v542_v43, %v574_v23  ;;  %v1581_v30 = vld [vmem:[#allocation21_spill] sm:$0xff] }
  0x87   : > { %v622_v8 = vsub.f32 %v558_v4, %v590_v25  ;;  %v605_v34 = vsub.f32 %v541_v10, %v573_v24  ;;  %v621_v7 = vsub.f32 %v557_v36, %v589_v61  ;;  %v640_v49 = vmul.f32 %v608_v35, %v608_v35 }
  0x88   : > { %v656_v33 = vmul.f32 %v624_v18, %v624_v18  ;;  %v639_v42 = vmul.f32 %v607_v13, %v607_v13  ;;  %v655_v38 = vmul.f32 %v623_v21, %v623_v21  ;;  %v638_v45 = vmul.f32 %v606_v52, %v606_v52  ;;  %v1584_v18 = vld [vmem:[#allocation11_spill] sm:$0xff] }
  0x89   : > { %v654_v54 = vmul.f32 %v622_v8, %v622_v8  ;;  %v637_v27 = vmul.f32 %v605_v34, %v605_v34  ;;  %v653_v59 = vmul.f32 %v621_v7, %v621_v7  ;;  %659 = vmatpush.msra.mxu0 %v640_v49  ;;  %v572_v32 = vmul.f32 %v1398_v28, %v1185_v22  ;;  %v1585_v21 = vld [vmem:[#allocation19_spill] sm:$0xff]  ;;  %v1587_v49 = vld [vmem:[#allocation5_spill] sm:$0xff] }
  0x8a   : > { %679 = vmatpush.msra.mxu1 %v656_v33  ;;  %v588_v29 = vmul.f32 %v1398_v28, %v1329_v5  ;;  %v571_v31 = vmul.f32 %v1398_v28, %v1176_v9  ;;  %v587_v57 = vmul.f32 %v1398_v28, %v1320_v40  ;;  %v570_v2 = vmul.f32 %v1398_v28, %v1167_v62  ;;  %v1586_v34 = vld [vmem:[#allocation23_spill] sm:$0xff] }
  0x8b   : > { %v586_v19 = vmul.f32 %v1398_v28, %v1311_v56  ;;  %v569_v3 = vmul.f32 %v1398_v28, %v1158_v55  ;;  %660 = vmatpush.msra.mxu0 %v639_v42  ;;  %v604_v22 = vsub.f32 %v540_v20, %v572_v32  ;;  %v551_v40 = vmul.f32 %v1366_v53, %v1261_v63  ;;  %v1588_v42 = vld [vmem:[#allocation10_spill] sm:$0xff] }
  0x8c   : > { %680 = vmatpush.msra.mxu1 %v655_v38  ;;  %v620_v0 = vsub.f32 %v556_v26, %v588_v29  ;;  %v603_v5 = vsub.f32 %v539_v16, %v571_v31  ;;  %v619_v14 = vsub.f32 %v555_v15, %v587_v57  ;;  %v602_v43 = vsub.f32 %v538_v6, %v570_v2  ;;  %v1591_v2 = vld [vmem:[#allocation4_spill] sm:$0xff] }
  0x8d   : > { %v618_v9 = vsub.f32 %v554_v1, %v586_v19  ;;  %661 = vmatpush.msra.mxu0 %v638_v45  ;;  %v636_v62 = vmul.f32 %v604_v22, %v604_v22  ;;  %v601_v10 = vsub.f32 %v537_v12, %v569_v3  ;;  %v585_v20 = vmul.f32 %v1398_v28, %v1302_v39  ;;  %v1580_v1 = vld [vmem:[#allocation12_spill] sm:$0xff] }
  0x8e   : > { %681 = vmatpush.msra.mxu1 %v654_v54  ;;  %v652_v4 = vmul.f32 %v620_v0, %v620_v0  ;;  %v635_v56 = vmul.f32 %v603_v5, %v603_v5  ;;  %v651_v36 = vmul.f32 %v619_v14, %v619_v14  ;;  %v634_v37 = vmul.f32 %v602_v43, %v602_v43  ;;  %v1589_v54 = vld [vmem:[#allocation17_spill] sm:$0xff] }
  0x8f   : > { %v650_v55 = vmul.f32 %v618_v9, %v618_v9  ;;  %662 = vmatpush.msra.mxu0 %v637_v27  ;;  %v568_v26 = vmul.f32 %v1398_v28, %v1149_v48  ;;  %v584_v63 = vmul.f32 %v1398_v28, %v1293_v46  ;;  %v567_v16 = vmul.f32 %v1398_v28, %v1140_v41  ;;  %v1592_v0 = vld [vmem:[#allocation9_spill] sm:$0xff]  ;;  %v1593_v9 = vld [vmem:[#allocation15_spill] sm:$0xff] }
  0x90   : > { %682 = vmatpush.msra.mxu1 %v653_v59  ;;  %v583_v15 = vmul.f32 %v1398_v28, %v1284_v60  ;;  %v534_v6 = vmul.f32 %v1366_v53, %v1106_v17  ;;  %v566_v12 = vmul.f32 %v1398_v28, %v1580_v1  ;;  %v617_v39 = vsub.f32 %v1402_v58, %v585_v20  ;;  %v1582_v58 = vld [vmem:[#allocation24_spill] sm:$0xff]  ;;  %v1590_v59 = vld [vmem:[#allocation22_spill] sm:$0xff]  ;;  %v1596_v20 = vld [vmem:[#allocation7_spill] sm:$0xff] }
  0x91   : > { %663 = vmatpush.msra.mxu0 %v636_v62  ;;  %v600_v48 = vsub.f32 %v1406_v51, %v568_v26  ;;  %v616_v46 = vsub.f32 %v1410_v11, %v584_v63  ;;  %v633_v50 = vmul.f32 %v601_v10, %v601_v10  ;;  %v599_v41 = vsub.f32 %v1414_v44, %v567_v16  ;;  %v1583_v11 = vld [vmem:[#allocation8_spill] sm:$0xff]  ;;  %v1597_v63 = vld [vmem:[#allocation14_spill] sm:$0xff] }
  0x92   : > { %683 = vmatpush.msra.mxu1 %v652_v4  ;;  %v615_v47 = vsub.f32 %v551_v40, %v583_v15  ;;  %v550_v60 = vmul.f32 %v1366_v53, %v1581_v30  ;;  %v649_v17 = vmul.f32 %v617_v39, %v617_v39  ;;  %v598_v25 = vsub.f32 %v534_v6, %v566_v12  ;;  %v1594_v62 = vld [vmem:[#allocation20_spill] sm:$0xff]  ;;  %v1598_v15 = vld [vmem:[#allocation18_spill] sm:$0xff]  ;;  %v1601_v30 = vld [vmem:[#allocation13_spill] sm:$0xff] }
  0x93   : > { %664 = vmatpush.msra.mxu0 %v635_v56  ;;  %v632_v23 = vmul.f32 %v600_v48, %v600_v48  ;;  %v648_v24 = vmul.f32 %v616_v46, %v616_v46  ;;  %v631_v61 = vmul.f32 %v599_v41, %v599_v41  ;;  %v582_v51 = vmul.f32 %v1398_v28, %v1582_v58  ;;  %v1599_v12 = vld [vmem:[#allocation2_spill] sm:$0xff] }
  0x94   : > { %684 = vmatpush.msra.mxu1 %v651_v36  ;;  %v647_v35 = vmul.f32 %v615_v47, %v615_v47  ;;  %v533_v44 = vmul.f32 %v1366_v53, %v1583_v11  ;;  %v565_v13 = vmul.f32 %v1398_v28, %v1584_v18  ;;  %v549_v52 = vmul.f32 %v1366_v53, %v1585_v21  ;;  %v1595_v36 = vld [vmem:[#allocation3_spill] sm:$0xff]  ;;  %v1600_v48 = vld [vmem:[#allocation6_spill] sm:$0xff] }
  0x95   : > { %665 = vmatpush.msra.mxu0 %v634_v37  ;;  %v614_v8 = vsub.f32 %v550_v60, %v582_v51  ;;  %v581_v7 = vmul.f32 %v1398_v28, %v1586_v34  ;;  %v532_v33 = vmul.f32 %v1366_v53, %v1587_v49  ;;  %v564_v38 = vmul.f32 %v1398_v28, %v1588_v42 }
  0x96   : > { %685 = vmatpush.msra.mxu1 %v650_v55  ;;  %v597_v45 = vsub.f32 %v533_v44, %v565_v13  ;;  %v548_v27 = vmul.f32 %v1366_v53, %v1589_v54  ;;  %v580_v32 = vmul.f32 %v1398_v28, %v1590_v59  ;;  %v630_v29 = vmul.f32 %v598_v25, %v598_v25  ;;  %v1602_v25 = vld [vmem:[#allocation16_spill] sm:$0xff] }
  0x97   : > { %666 = vmatpush.msra.mxu0 %v633_v50  ;;  %v613_v31 = vsub.f32 %v549_v52, %v581_v7  ;;  %v596_v57 = vsub.f32 %v532_v33, %v564_v38  ;;  %v531_v19 = vmul.f32 %v1366_v53, %v1591_v2  ;;  %v646_v3 = vmul.f32 %v614_v8, %v614_v8 }
  0x98   : > { %686 = vmatpush.msra.mxu1 %v649_v17  ;;  %v612_v22 = vsub.f32 %v548_v27, %v580_v32  ;;  %v563_v5 = vmul.f32 %v1398_v28, %v1592_v0  ;;  %v629_v14 = vmul.f32 %v597_v45, %v597_v45  ;;  %v547_v40 = vmul.f32 %v1366_v53, %v1593_v9 }
  0x99   : > { %667 = vmatpush.msra.mxu0 %v632_v23  ;;  %v645_v43 = vmul.f32 %v613_v31, %v613_v31  ;;  %v579_v4 = vmul.f32 %v1398_v28, %v1594_v62  ;;  %v628_v10 = vmul.f32 %v596_v57, %v596_v57  ;;  %v530_v37 = vmul.f32 %v1366_v53, %v1595_v36 }
  0x9a   : > { %687 = vmatpush.msra.mxu1 %v648_v24  ;;  %v595_v56 = vsub.f32 %v531_v19, %v563_v5  ;;  %v562_v26 = vmul.f32 %v1398_v28, %v1596_v20  ;;  %v546_v16 = vmul.f32 %v1366_v53, %v1597_v63  ;;  %v578_v6 = vmul.f32 %v1398_v28, %v1598_v15 }
  0x9b   : > { %668 = vmatpush.msra.mxu0 %v631_v61  ;;  %v611_v55 = vsub.f32 %v547_v40, %v579_v4  ;;  %v644_v1 = vmul.f32 %v612_v22, %v612_v22  ;;  %v529_v39 = vmul.f32 %v1366_v53, %v1599_v12  ;;  %v561_v46 = vmul.f32 %v1398_v28, %v1600_v48 }
  0x9c   : > { %688 = vmatpush.msra.mxu1 %v647_v35  ;;  %v627_v50 = vmul.f32 %v595_v56, %v595_v56  ;;  %v594_v41 = vsub.f32 %v530_v37, %v562_v26  ;;  %v610_v47 = vsub.f32 %v546_v16, %v578_v6  ;;  %v545_v60 = vmul.f32 %v1366_v53, %v1601_v30  ;;  %v657_v53 = vld [vmem:[%s1532_s2] sm:$0xff] }
  0x9d   : > { %669 = vmatpush.msra.mxu0 %v630_v29  ;;  %v643_v17 = vmul.f32 %v611_v55, %v611_v55  ;;  %v593_v23 = vsub.f32 %v529_v39, %v561_v46  ;;  %v577_v24 = vmul.f32 %v1398_v28, %v1602_v25  ;;  %v658_v28 = vld [vmem:[%s1532_s2 + $0x8] sm:$0xff]  ;;  %v699_v44 = vlaneseq }
  0x9e   : > { %689 = vmatpush.msra.mxu1 %v646_v3  ;;  %v626_v61 = vmul.f32 %v594_v41, %v594_v41  ;;  %v642_v35 = vmul.f32 %v610_v47, %v610_v47 }
  0x9f   : > { %670 = vmatpush.msra.mxu0 %v629_v14  ;;  %v609_v58 = vsub.f32 %v545_v60, %v577_v24  ;;  %v625_v51 = vmul.f32 %v593_v23, %v593_v23  ;;  %v700_v18 = vand.u32 127, %v699_v44 }
  0xa0   : > { %690 = vmatpush.msra.mxu1 %v645_v43 }
  0xa1   : > { %671 = vmatpush.msra.mxu0 %v628_v10  ;;  %v641_v11 = vmul.f32 %v609_v58, %v609_v58  ;;  %vm704_vm4 = vcmp.lt.s32.totalorder %v700_v18, 9 }
  0xa2   : > { %691 = vmatpush.msra.mxu1 %v644_v1 }
  0xa3   : > { %672 = vmatpush.msra.mxu0 %v627_v50 }
  0xa4   : > { %692 = vmatpush.msra.mxu1 %v643_v17 }
  0xa5   : > { %673 = vmatpush.msra.mxu0 %v626_v61 }
  0xa6   : > { %693 = vmatpush.msra.mxu1 %v642_v35 }
  0xa7   : > { %674 = vmatpush.msra.mxu0 %v625_v51 }
  0xa8   : > { %694 = vmatpush.msra.mxu1 %v641_v11  ;;  %675 = vmatmul.f32.vlgmr.msra.gmra.mxu0 %v657_v53 }
  0xa9   : > { %695 = vmatmul.f32.vlgmr.msra.gmra.mxu1 %v658_v28 }
 0x125   : > { %v676_v13 = vpop.f32.mrf.mxu0 }
 0x126   : > { %v696_v21 = vpop.f32.mrf.mxu1 }
 0x127   : > { %v697_v52 = vadd.f32 %v696_v21, %v676_v13 }
 0x129   : > { %v707_v8 = vsel %vm704_vm4, %v697_v52, 0.0 }
 0x12a   : > { %710 = vst [vmem:[%s229_s6] sm:$0xff] %v707_v8 }
 0x12b PF: > { %s13_s14 = sadd.s32 1, %s1023_s14   ;;  %s1603_s12 = smov %s1019_s13 }
 0x12c   : > { %p10_p7 = scmp.ge.s32.totalorder %s13_s14, 4   ;;  %s1604_s13 = smov %s1606_s15 }
 0x12e   :  { %12 = sbr.rel (!%p10_p7) target bundleno = 2 (0x2), region = 69 }

// kernel: lpips_forward.7
= control target key start
LH: loop header
LB: loop body
LE: loop exit
PB: predicated region body
PF: predicated region fallthrough
CT: control target
= control target key end

     0   :  { %s1336_s12 = smov 0   ;;  %s1338_s13 = smov 0   ;;  %s2032_s0 = inlined_call_operand.vmem [shape: bf16[4,384,128], index: 0, kind: input, shape index: {}, may-alias: {0,1}]   ;;  %s2033_s1 = inlined_call_operand.vmem [shape: bf16[4,384,128], index: 1, kind: input, shape index: {}, may-alias: {0,1}]   ;;  %s2034_s2 = inlined_call_operand.vmem [shape: f32[8,384], index: 2, kind: input, shape index: {}]   ;;  %s2035_s3 = inlined_call_operand.vmem [shape: f32[2,8,128], index: 3, kind: output, shape index: {}]  }
   0x1   :  { %s1340_s14 = smov 0  }
   0x2 LB: > { %s25_s15 = sadd.s32 1, %s1310_s13  ;;  %p1013_p0 = scmp.ge.s32.totalorder %s1314_s14, 1  ;;  %s1314_s14 = sphi %s1340_s14, %s13_s14   ;;  %s1310_s13 = sphi %s1338_s13, %s2202_s13   ;;  %s1306_s12 = sphi %s1336_s12, %s2201_s12  }
   0x3   : > { %p27_p1 = scmp.ge.s32.totalorder %s25_s15, 2  ;;  %p173_p2 = scmp.lt.s32.totalorder %s1314_s14, 3 }
   0x5   : > { %s2204_s15 = smov (%p27_p1, %s25_s15), 0  ;;  %p174_p3 = pnand %p1013_p0, %p173_p2 }
   0x7   : > { %177 = sbr.rel (%p174_p3) target bundleno = 347 (0x15b), region = 32 }
   0xc   : > { %p208_p4 = scmp.lt.s32.totalorder %s1306_s12, 3  ;;  %s216_s16 = sadd.s32 2, %s1306_s12 }
   0xd   : > { %p217_p5 = scmp.lt.s32.totalorder %s216_s16, 3  ;;  %p226_p6 = scmp.lt.s32.totalorder %s1306_s12, 1 }
   0xe   : > { %s209_s17 = scalar_select %p208_p4, %s1306_s12, 3 }
   0xf   : > { %s2206_s16 = smov (!%p217_p5, %s216_s16), 3  ;;  %s2208_s12 = smov (!%p226_p6, %s1306_s12), 1 }
  0x10   : > { %s1257_s18 = smul.u32 192, %s209_s17  ;;  %s1016_s5 = sshll.u32 %s2208_s12, 3 }
  0x11   : > { %s1258_s22 = smul.u32 192, %s2206_s16  ;;  %s229_s8 = scalar_lea.vmem %s2035_s3, %s1016_s5 }
  0x12   : > { %s1362_s21 = scalar_lea.vmem %s2032_s0, %s1257_s18 }
  0x13   : > { %v1020_v0 = vld [vmem:[%s1362_s21] sm:$0xff]   ;;  %s1368_s25 = scalar_lea.vmem %s2033_s1, %s1258_s22  ;;  %v1211_v1 = vld [vmem:[%s1362_s21 + $0x8] sm:$0xff]   ;;  %v1212_v6 = vld [vmem:[%s1362_s21 + $0x10] sm:$0xff]  }
  0x14   : > { %v1371_v2 = vunpack.c.l.bf16 %v1020_v0  ;;  %v1373_v3 = vunpack.c.h.bf16 %v1020_v0  ;;  %v1375_v4 = vunpack.c.l.bf16 %v1211_v1  ;;  %v1116_v5 = vld [vmem:[%s1368_s25] sm:$0xff]   ;;  %v1379_v7 = vunpack.c.h.bf16 %v1211_v1  ;;  %v1234_v8 = vld [vmem:[%s1368_s25 + $0x8] sm:$0xff]   ;;  %v1213_v15 = vld [vmem:[%s1362_s21 + $0x18] sm:$0xff]  }
  0x15   : > { %v1386_v11 = vunpack.c.l.bf16 %v1116_v5  ;;  %v1388_v12 = vunpack.c.h.bf16 %v1116_v5  ;;  %v1390_v13 = vunpack.c.l.bf16 %v1212_v6  ;;  %v1395_v16 = vunpack.c.l.bf16 %v1234_v8  ;;  %v1235_v18 = vld [vmem:[%s1368_s25 + $0x10] sm:$0xff]   ;;  %v1214_v27 = vld [vmem:[%s1362_s21 + $0x20] sm:$0xff]   ;;  %v1236_v31 = vld [vmem:[%s1368_s25 + $0x18] sm:$0xff]  }
  0x16   : > { %2091 = vst [vmem:[#allocation2_spill] sm:$0xff] %v1371_v2  ;;  %v427_v9 = vmul.f32 %v1371_v2, %v1371_v2  ;;  %v428_v10 = vmul.f32 %v1373_v3, %v1373_v3  ;;  %v429_v14 = vmul.f32 %v1375_v4, %v1375_v4  ;;  %v1397_v17 = vunpack.c.h.bf16 %v1212_v6  ;;  %v1215_v40 = vld [vmem:[%s1362_s21 + $0x28] sm:$0xff]   ;;  %v1237_v45 = vld [vmem:[%s1368_s25 + $0x20] sm:$0xff]   ;;  %v1216_v54 = vld [vmem:[%s1362_s21 + $0x30] sm:$0xff]  }
  0x17   : > { %2092 = vst [vmem:[#allocation3_spill] sm:$0xff] %v1373_v3  ;;  %v430_v19 = vmul.f32 %v1379_v7, %v1379_v7  ;;  %v1402_v21 = vunpack.c.h.bf16 %v1234_v8  ;;  %v540_v22 = vmul.f32 %v1386_v11, %v1386_v11  ;;  %v541_v23 = vmul.f32 %v1388_v12, %v1388_v12  ;;  %v1238_v59 = vld [vmem:[%s1368_s25 + $0x28] sm:$0xff]   ;;  %v1217_v8 = vld [vmem:[%s1362_s21 + $0x38] sm:$0xff]  }
  0x18   : > { %2093 = vst [vmem:[#allocation4_spill] sm:$0xff] %v1375_v4  ;;  %v475_v20 = vadd.f32 %v428_v10, %v427_v9  ;;  %v1408_v24 = vunpack.c.l.bf16 %v1213_v15  ;;  %v431_v25 = vmul.f32 %v1390_v13, %v1390_v13  ;;  %v1413_v28 = vunpack.c.l.bf16 %v1235_v18 }
  0x19   : > { %2094 = vst [vmem:[#allocation5_spill] sm:$0xff] %v1379_v7  ;;  %v542_v29 = vmul.f32 %v1395_v16, %v1395_v16  ;;  %v1417_v30 = vunpack.c.h.bf16 %v1213_v15  ;;  %v432_v32 = vmul.f32 %v1397_v17, %v1397_v17  ;;  %v1422_v34 = vunpack.c.h.bf16 %v1235_v18  ;;  %v1239_v18 = vld [vmem:[%s1368_s25 + $0x30] sm:$0xff]  }
  0x1a   : > { %2095 = vst [vmem:[#allocation6_spill] sm:$0xff] %v1386_v11  ;;  %v476_v26 = vadd.f32 %v475_v20, %v429_v14  ;;  %v543_v35 = vmul.f32 %v1402_v21, %v1402_v21  ;;  %v588_v36 = vadd.f32 %v541_v23, %v540_v22  ;;  %v1426_v37 = vunpack.c.l.bf16 %v1214_v27 }
  0x1b   : > { %2096 = vst [vmem:[#allocation7_spill] sm:$0xff] %v1388_v12  ;;  %v433_v38 = vmul.f32 %v1408_v24, %v1408_v24  ;;  %v1431_v41 = vunpack.c.l.bf16 %v1236_v31  ;;  %v544_v42 = vmul.f32 %v1413_v28, %v1413_v28  ;;  %v1435_v44 = vunpack.c.h.bf16 %v1214_v27 }
  0x1c   : > { %2097 = vst [vmem:[#allocation8_spill] sm:$0xff] %v1390_v13  ;;  %v477_v33 = vadd.f32 %v476_v26, %v430_v19  ;;  %v589_v43 = vadd.f32 %v588_v36, %v542_v29  ;;  %v434_v46 = vmul.f32 %v1417_v30, %v1417_v30  ;;  %v1440_v48 = vunpack.c.h.bf16 %v1236_v31  ;;  %v1218_v31 = vld [vmem:[%s1362_s21 + $0x40] sm:$0xff]  }
  0x1d   : > { %2098 = vst [vmem:[#allocation9_spill] sm:$0xff] %v1395_v16  ;;  %v545_v49 = vmul.f32 %v1422_v34, %v1422_v34  ;;  %v1444_v51 = vunpack.c.l.bf16 %v1215_v40  ;;  %v435_v52 = vmul.f32 %v1426_v37, %v1426_v37  ;;  %v1449_v55 = vunpack.c.l.bf16 %v1237_v45 }
  0x1e   : > { %2099 = vst [vmem:[#allocation10_spill] sm:$0xff] %v1397_v17  ;;  %v478_v39 = vadd.f32 %v477_v33, %v431_v25  ;;  %v590_v50 = vadd.f32 %v589_v43, %v543_v35  ;;  %v546_v56 = vmul.f32 %v1431_v41, %v1431_v41  ;;  %v1453_v58 = vunpack.c.h.bf16 %v1215_v40 }
  0x1f   : > { %2100 = vst [vmem:[#allocation11_spill] sm:$0xff] %v1402_v21  ;;  %v436_v60 = vmul.f32 %v1435_v44, %v1435_v44  ;;  %v1458_v62 = vunpack.c.h.bf16 %v1237_v45  ;;  %v547_v63 = vmul.f32 %v1440_v48, %v1440_v48  ;;  %v1462_v1 = vunpack.c.l.bf16 %v1216_v54 }
  0x20   : > { %2101 = vst [vmem:[#allocation12_spill] sm:$0xff] %v1408_v24  ;;  %v479_v47 = vadd.f32 %v478_v39, %v432_v32  ;;  %v591_v57 = vadd.f32 %v590_v50, %v544_v42  ;;  %v437_v5 = vmul.f32 %v1444_v51, %v1444_v51  ;;  %v1467_v9 = vunpack.c.l.bf16 %v1238_v59  ;;  %v1219_v50 = vld [vmem:[%s1362_s21 + $0x48] sm:$0xff]  }
  0x21   : > { %2102 = vst [vmem:[#allocation13_spill] sm:$0xff] %v1413_v28  ;;  %v548_v10 = vmul.f32 %v1449_v55, %v1449_v55  ;;  %v1471_v15 = vunpack.c.h.bf16 %v1216_v54  ;;  %v438_v19 = vmul.f32 %v1453_v58, %v1453_v58  ;;  %v1476_v22 = vunpack.c.h.bf16 %v1238_v59 }
  0x22   : > { %2103 = vst [vmem:[#allocation14_spill] sm:$0xff] %v1417_v30  ;;  %v480_v53 = vadd.f32 %v479_v47, %v433_v38  ;;  %v592_v0 = vadd.f32 %v591_v57, %v545_v49  ;;  %v549_v23 = vmul.f32 %v1458_v62, %v1458_v62  ;;  %v1480_v26 = vunpack.c.l.bf16 %v1217_v8  ;;  %v1240_v38 = vld [vmem:[%s1368_s25 + $0x38] sm:$0xff]   ;;  %v1241_v57 = vld [vmem:[%s1368_s25 + $0x40] sm:$0xff]  }
  0x23   : > { %2104 = vst [vmem:[#allocation15_spill] sm:$0xff] %v1422_v34  ;;  %v439_v27 = vmul.f32 %v1462_v1, %v1462_v1  ;;  %v1485_v32 = vunpack.c.l.bf16 %v1239_v18  ;;  %v550_v33 = vmul.f32 %v1467_v9, %v1467_v9  ;;  %v1489_v36 = vunpack.c.h.bf16 %v1217_v8 }
  0x24   : > { %2105 = vst [vmem:[#allocation16_spill] sm:$0xff] %v1426_v37  ;;  %v481_v61 = vadd.f32 %v480_v53, %v434_v46  ;;  %v593_v14 = vadd.f32 %v592_v0, %v546_v56  ;;  %v440_v39 = vmul.f32 %v1471_v15, %v1471_v15  ;;  %v1494_v42 = vunpack.c.h.bf16 %v1239_v18 }
  0x25   : > { %2106 = vst [vmem:[#allocation17_spill] sm:$0xff] %v1431_v41  ;;  %v551_v43 = vmul.f32 %v1476_v22, %v1476_v22  ;;  %v1498_v46 = vunpack.c.l.bf16 %v1218_v31  ;;  %v441_v47 = vmul.f32 %v1480_v26, %v1480_v26  ;;  %v552_v53 = vmul.f32 %v1485_v32, %v1485_v32 }
  0x26   : > { %2107 = vst [vmem:[#allocation18_spill] sm:$0xff] %v1440_v48  ;;  %v482_v6 = vadd.f32 %v481_v61, %v435_v52  ;;  %v594_v25 = vadd.f32 %v593_v14, %v547_v63  ;;  %v1503_v52 = vunpack.c.l.bf16 %v1240_v38  ;;  %v1507_v56 = vunpack.c.h.bf16 %v1218_v31 }
  0x27   : > { %2108 = vst [vmem:[#allocation19_spill] sm:$0xff] %v1449_v55  ;;  %v442_v59 = vmul.f32 %v1489_v36, %v1489_v36  ;;  %v1512_v61 = vunpack.c.h.bf16 %v1240_v38  ;;  %v553_v63 = vmul.f32 %v1494_v42, %v1494_v42  ;;  %v1521_v14 = vunpack.c.l.bf16 %v1241_v57 }
  0x28   : > { %2109 = vst [vmem:[#allocation20_spill] sm:$0xff] %v1458_v62  ;;  %v483_v20 = vadd.f32 %v482_v6, %v436_v60  ;;  %v595_v35 = vadd.f32 %v594_v25, %v548_v10  ;;  %v443_v6 = vmul.f32 %v1498_v46, %v1498_v46  ;;  %v1220_v10 = vld [vmem:[%s1362_s21 + $0x50] sm:$0xff]   ;;  %v554_v18 = vmul.f32 %v1503_v52, %v1503_v52 }
  0x29   : > { %2110 = vst [vmem:[#allocation21_spill] sm:$0xff] %v1498_v46  ;;  %v444_v25 = vmul.f32 %v1507_v56, %v1507_v56  ;;  %v555_v31 = vmul.f32 %v1512_v61, %v1512_v61 }
  0x2a   : > { %v484_v29 = vadd.f32 %v483_v20, %v437_v5  ;;  %v596_v45 = vadd.f32 %v595_v35, %v549_v23  ;;  %2111 = vst [vmem:[#allocation22_spill] sm:$0xff] %v1507_v56  ;;  %v1516_v5 = vunpack.c.l.bf16 %v1219_v50  ;;  %v1525_v20 = vunpack.c.h.bf16 %v1219_v50  ;;  %v1242_v23 = vld [vmem:[%s1368_s25 + $0x48] sm:$0xff]   ;;  %v1243_v50 = vld [vmem:[%s1368_s25 + $0x50] sm:$0xff]  }
  0x2b   : > { %2113 = vst [vmem:[#allocation24_spill] sm:$0xff] %v1521_v14  ;;  %v1534_v35 = vunpack.c.l.bf16 %v1220_v10 }
  0x2c   : > { %v485_v40 = vadd.f32 %v484_v29, %v438_v19  ;;  %v597_v54 = vadd.f32 %v596_v45, %v550_v33  ;;  %2112 = vst [vmem:[#allocation23_spill] sm:$0xff] %v1516_v5  ;;  %v1530_v29 = vunpack.c.h.bf16 %v1241_v57  ;;  %v445_v38 = vmul.f32 %v1516_v5, %v1516_v5 }
  0x2d   : > { %2114 = vst [vmem:[#allocation25_spill] sm:$0xff] %v1525_v20  ;;  %v556_v45 = vmul.f32 %v1521_v14, %v1521_v14  ;;  %v1548_v57 = vunpack.c.h.bf16 %v1242_v23 }
  0x2e   : > { %v486_v49 = vadd.f32 %v485_v40, %v439_v27  ;;  %v598_v0 = vadd.f32 %v597_v54, %v551_v43  ;;  %2115 = vst [vmem:[#allocation26_spill] sm:$0xff] %v1530_v29  ;;  %v1221_v40 = vld [vmem:[%s1362_s21 + $0x58] sm:$0xff]   ;;  %v1539_v43 = vunpack.c.l.bf16 %v1242_v23 }
  0x2f   : > { %2116 = vst [vmem:[#allocation27_spill] sm:$0xff] %v1534_v35  ;;  %v1561_v23 = vunpack.c.h.bf16 %v1221_v40 }
  0x30   : > { %v487_v60 = vadd.f32 %v486_v49, %v440_v39  ;;  %v599_v19 = vadd.f32 %v598_v0, %v552_v53  ;;  %2117 = vst [vmem:[#allocation28_spill] sm:$0xff] %v1539_v43  ;;  %v1543_v49 = vunpack.c.h.bf16 %v1220_v10  ;;  %v446_v53 = vmul.f32 %v1525_v20, %v1525_v20 }
  0x31   : > { %2119 = vst [vmem:[#allocation30_spill] sm:$0xff] %v1548_v57  ;;  %v447_v0 = vmul.f32 %v1534_v35, %v1534_v35  ;;  %v1557_v10 = vunpack.c.l.bf16 %v1243_v50 }
  0x32   : > { %v488_v8 = vadd.f32 %v487_v60, %v441_v47  ;;  %v600_v33 = vadd.f32 %v599_v19, %v553_v63  ;;  %2118 = vst [vmem:[#allocation29_spill] sm:$0xff] %v1543_v49  ;;  %v1552_v63 = vunpack.c.l.bf16 %v1221_v40  ;;  %v1223_v40 = vld [vmem:[%s1362_s21 + $0x68] sm:$0xff]  }
  0x33   : > { %2121 = vst [vmem:[#allocation32_spill] sm:$0xff] %v1557_v10  ;;  %v560_v14 = vmul.f32 %v1557_v10, %v1557_v10  ;;  %v1588_v11 = vunpack.c.l.bf16 %v1223_v40 }
  0x34   : > { %v489_v27 = vadd.f32 %v488_v8, %v442_v59  ;;  %v601_v47 = vadd.f32 %v600_v33, %v554_v18  ;;  %v557_v59 = vmul.f32 %v1530_v29, %v1530_v29  ;;  %2120 = vst [vmem:[#allocation31_spill] sm:$0xff] %v1552_v63  ;;  %v1222_v8 = vld [vmem:[%s1362_s21 + $0x60] sm:$0xff]   ;;  %v558_v18 = vmul.f32 %v1539_v43, %v1539_v43 }
  0x35   : > { %2122 = vst [vmem:[#allocation33_spill] sm:$0xff] %v1561_v23  ;;  %v1566_v33 = vunpack.c.h.bf16 %v1243_v50  ;;  %v1579_v50 = vunpack.c.h.bf16 %v1222_v8  ;;  %v453_v3 = vmul.f32 %v1588_v11, %v1588_v11 }
  0x36   : > { %v490_v39 = vadd.f32 %v489_v27, %v443_v6  ;;  %v602_v60 = vadd.f32 %v601_v47, %v555_v31  ;;  %v448_v27 = vmul.f32 %v1543_v49, %v1543_v49  ;;  %v1570_v47 = vunpack.c.l.bf16 %v1222_v8  ;;  %v1224_v8 = vld [vmem:[%s1362_s21 + $0x70] sm:$0xff]  }
  0x37   : > { %2123 = vst [vmem:[#allocation34_spill] sm:$0xff] %v1566_v33  ;;  %v1606_v12 = vunpack.c.l.bf16 %v1224_v8 }
  0x38   : > { %v491_v54 = vadd.f32 %v490_v39, %v444_v25  ;;  %v603_v19 = vadd.f32 %v602_v60, %v556_v45  ;;  %v1244_v25 = vld [vmem:[%s1368_s25 + $0x58] sm:$0xff]   ;;  %2124 = vst [vmem:[#allocation35_spill] sm:$0xff] %v1570_v47  ;;  %v451_v2 = vmul.f32 %v1570_v47, %v1570_v47 }
  0x39   : > { %v1575_v60 = vunpack.c.l.bf16 %v1244_v25  ;;  %2126 = vst [vmem:[#allocation37_spill] sm:$0xff] %v1579_v50  ;;  %v1584_v46 = vunpack.c.h.bf16 %v1244_v25  ;;  %v1597_v25 = vunpack.c.h.bf16 %v1223_v40  ;;  %v1225_v40 = vld [vmem:[%s1362_s21 + $0x78] sm:$0xff]   ;;  %v455_v4 = vmul.f32 %v1606_v12, %v1606_v12 }
  0x3a   : > { %v492_v6 = vadd.f32 %v491_v54, %v445_v38  ;;  %v559_v38 = vmul.f32 %v1548_v57, %v1548_v57  ;;  %v604_v39 = vadd.f32 %v603_v19, %v557_v59  ;;  %v449_v54 = vmul.f32 %v1552_v63, %v1552_v63 }
  0x3b   : > { %2125 = vst [vmem:[#allocation36_spill] sm:$0xff] %v1575_v60  ;;  %v450_v59 = vmul.f32 %v1561_v23, %v1561_v23  ;;  %v562_v29 = vmul.f32 %v1575_v60, %v1575_v60  ;;  %v1624_v16 = vunpack.c.l.bf16 %v1225_v40 }
  0x3c   : > { %v493_v31 = vadd.f32 %v492_v6, %v446_v53  ;;  %v605_v53 = vadd.f32 %v604_v39, %v558_v18  ;;  %v1245_v6 = vld [vmem:[%s1368_s25 + $0x60] sm:$0xff]   ;;  %2127 = vst [vmem:[#allocation38_spill] sm:$0xff] %v1584_v46 }
  0x3d   : > { %v1593_v39 = vunpack.c.l.bf16 %v1245_v6  ;;  %v1602_v56 = vunpack.c.h.bf16 %v1245_v6  ;;  %v1615_v6 = vunpack.c.h.bf16 %v1224_v8  ;;  %v1226_v8 = vld [vmem:[%s1362_s21 + $0x80] sm:$0xff]   ;;  %v457_v7 = vmul.f32 %v1624_v16, %v1624_v16 }
  0x3e   : > { %v494_v45 = vadd.f32 %v493_v31, %v447_v0  ;;  %v561_v0 = vmul.f32 %v1566_v33, %v1566_v33  ;;  %v606_v31 = vadd.f32 %v605_v53, %v559_v38  ;;  %v452_v38 = vmul.f32 %v1579_v50, %v1579_v50 }
  0x3f   : > { %2128 = vst [vmem:[#allocation39_spill] sm:$0xff] %v1593_v39  ;;  %v564_v43 = vmul.f32 %v1593_v39, %v1593_v39  ;;  %v1642_v21 = vunpack.c.l.bf16 %v1226_v8 }
  0x40   : > { %v495_v19 = vadd.f32 %v494_v45, %v448_v27  ;;  %v607_v27 = vadd.f32 %v606_v31, %v560_v14  ;;  %v1246_v45 = vld [vmem:[%s1368_s25 + $0x68] sm:$0xff]   ;;  %2129 = vst [vmem:[#allocation40_spill] sm:$0xff] %v1602_v56 }
  0x41   : > { %v1611_v31 = vunpack.c.l.bf16 %v1246_v45  ;;  %v1620_v5 = vunpack.c.h.bf16 %v1246_v45  ;;  %v1633_v45 = vunpack.c.h.bf16 %v1225_v40  ;;  %2130 = vst [vmem:[#allocation41_spill] sm:$0xff] %v1642_v21  ;;  %v1227_v40 = vld [vmem:[%s1362_s21 + $0x88] sm:$0xff]   ;;  %v459_v13 = vmul.f32 %v1642_v21, %v1642_v21 }
  0x42   : > { %v496_v18 = vadd.f32 %v495_v19, %v449_v54  ;;  %v563_v54 = vmul.f32 %v1584_v46, %v1584_v46  ;;  %v608_v19 = vadd.f32 %v607_v27, %v561_v0  ;;  %v454_v0 = vmul.f32 %v1597_v25, %v1597_v25 }
  0x43   : > { %v566_v57 = vmul.f32 %v1611_v31, %v1611_v31  ;;  %v1660_v28 = vunpack.c.l.bf16 %v1227_v40 }
  0x44   : > { %v497_v53 = vadd.f32 %v496_v18, %v450_v59  ;;  %v609_v59 = vadd.f32 %v608_v19, %v562_v29  ;;  %v1247_v18 = vld [vmem:[%s1368_s25 + $0x70] sm:$0xff]  }
  0x45   : > { %v1629_v19 = vunpack.c.l.bf16 %v1247_v18  ;;  %v1638_v20 = vunpack.c.h.bf16 %v1247_v18  ;;  %v1651_v18 = vunpack.c.h.bf16 %v1226_v8  ;;  %2132 = vst [vmem:[#allocation43_spill] sm:$0xff] %v1660_v28  ;;  %v1228_v8 = vld [vmem:[%s1362_s21 + $0x90] sm:$0xff]   ;;  %v461_v34 = vmul.f32 %v1660_v28, %v1660_v28 }
  0x46   : > { %v498_v14 = vadd.f32 %v497_v53, %v451_v2  ;;  %v565_v2 = vmul.f32 %v1602_v56, %v1602_v56  ;;  %v610_v53 = vadd.f32 %v609_v59, %v563_v54  ;;  %v456_v54 = vmul.f32 %v1615_v6, %v1615_v6 }
  0x47   : > { %v568_v10 = vmul.f32 %v1629_v19, %v1629_v19  ;;  %2131 = vst [vmem:[#allocation42_spill] sm:$0xff] %v1651_v18  ;;  %v1678_v21 = vunpack.c.l.bf16 %v1228_v8 }
  0x48   : > { %v499_v27 = vadd.f32 %v498_v14, %v452_v38  ;;  %v611_v38 = vadd.f32 %v610_v53, %v564_v43  ;;  %v1248_v14 = vld [vmem:[%s1368_s25 + $0x78] sm:$0xff]  }
  0x49   : > { %v1647_v53 = vunpack.c.l.bf16 %v1248_v14  ;;  %v1656_v35 = vunpack.c.h.bf16 %v1248_v14  ;;  %v1669_v14 = vunpack.c.h.bf16 %v1227_v40  ;;  %2136 = vst [vmem:[#allocation47_spill] sm:$0xff] %v1678_v21  ;;  %v1229_v40 = vld [vmem:[%s1362_s21 + $0x98] sm:$0xff]  }
  0x4a   : > { %v500_v29 = vadd.f32 %v499_v27, %v453_v3  ;;  %v567_v3 = vmul.f32 %v1620_v5, %v1620_v5  ;;  %v612_v27 = vadd.f32 %v611_v38, %v565_v2  ;;  %v458_v2 = vmul.f32 %v1633_v45, %v1633_v45 }
  0x4b   : > { %v570_v33 = vmul.f32 %v1647_v53, %v1647_v53  ;;  %2134 = vst [vmem:[#allocation45_spill] sm:$0xff] %v1669_v14  ;;  %v1696_v28 = vunpack.c.l.bf16 %v1229_v40 }
  0x4c   : > { %v501_v59 = vadd.f32 %v500_v29, %v454_v0  ;;  %v613_v0 = vadd.f32 %v612_v27, %v566_v57  ;;  %v1249_v29 = vld [vmem:[%s1368_s25 + $0x80] sm:$0xff]  }
  0x4d   : > { %v1665_v27 = vunpack.c.l.bf16 %v1249_v29  ;;  %v1674_v49 = vunpack.c.h.bf16 %v1249_v29  ;;  %v1687_v29 = vunpack.c.h.bf16 %v1228_v8  ;;  %2140 = vst [vmem:[#allocation51_spill] sm:$0xff] %v1696_v28  ;;  %v1230_v8 = vld [vmem:[%s1362_s21 + $0xa0] sm:$0xff]  }
  0x4e   : > { %v502_v43 = vadd.f32 %v501_v59, %v455_v4  ;;  %v569_v4 = vmul.f32 %v1638_v20, %v1638_v20  ;;  %v614_v59 = vadd.f32 %v613_v0, %v567_v3  ;;  %v460_v3 = vmul.f32 %v1651_v18, %v1651_v18 }
  0x4f   : > { %2133 = vst [vmem:[#allocation44_spill] sm:$0xff] %v1665_v27  ;;  %v572_v18 = vmul.f32 %v1665_v27, %v1665_v27  ;;  %v463_v27 = vmul.f32 %v1678_v21, %v1678_v21  ;;  %v1714_v21 = vunpack.c.l.bf16 %v1230_v8 }
  0x50   : > { %v503_v38 = vadd.f32 %v502_v43, %v456_v54  ;;  %v615_v54 = vadd.f32 %v614_v59, %v568_v10  ;;  %v1250_v43 = vld [vmem:[%s1368_s25 + $0x88] sm:$0xff]   ;;  %2135 = vst [vmem:[#allocation46_spill] sm:$0xff] %v1674_v49 }
  0x51   : > { %v1683_v59 = vunpack.c.l.bf16 %v1250_v43  ;;  %2138 = vst [vmem:[#allocation49_spill] sm:$0xff] %v1687_v29  ;;  %v1692_v17 = vunpack.c.h.bf16 %v1250_v43  ;;  %v1705_v43 = vunpack.c.h.bf16 %v1229_v40  ;;  %v1231_v40 = vld [vmem:[%s1362_s21 + $0xa8] sm:$0xff]  }
  0x52   : > { %v504_v57 = vadd.f32 %v503_v38, %v457_v7  ;;  %v571_v7 = vmul.f32 %v1656_v35, %v1656_v35  ;;  %v616_v38 = vadd.f32 %v615_v54, %v569_v4  ;;  %v462_v4 = vmul.f32 %v1669_v14, %v1669_v14 }
  0x53   : > { %2137 = vst [vmem:[#allocation48_spill] sm:$0xff] %v1683_v59  ;;  %v574_v14 = vmul.f32 %v1683_v59, %v1683_v59  ;;  %v465_v59 = vmul.f32 %v1696_v28, %v1696_v28  ;;  %v1732_v63 = vunpack.c.l.bf16 %v1231_v40 }
  0x54   : > { %v505_v0 = vadd.f32 %v504_v57, %v458_v2  ;;  %v617_v2 = vadd.f32 %v616_v38, %v570_v33  ;;  %v1251_v57 = vld [vmem:[%s1368_s25 + $0x90] sm:$0xff]   ;;  %2139 = vst [vmem:[#allocation50_spill] sm:$0xff] %v1692_v17 }
  0x55   : > { %v1701_v38 = vunpack.c.l.bf16 %v1251_v57  ;;  %2142 = vst [vmem:[#allocation53_spill] sm:$0xff] %v1705_v43 }
  0x56   : > { %v506_v10 = vadd.f32 %v505_v0, %v459_v13  ;;  %v573_v13 = vmul.f32 %v1674_v49, %v1674_v49  ;;  %v618_v0 = vadd.f32 %v617_v2, %v571_v7  ;;  %v464_v7 = vmul.f32 %v1687_v29, %v1687_v29 }
  0x57   : > { %2141 = vst [vmem:[#allocation52_spill] sm:$0xff] %v1701_v38  ;;  %v1710_v49 = vunpack.c.h.bf16 %v1251_v57  ;;  %v576_v60 = vmul.f32 %v1701_v38, %v1701_v38  ;;  %v1723_v57 = vunpack.c.h.bf16 %v1230_v8  ;;  %v467_v38 = vmul.f32 %v1714_v21, %v1714_v21  ;;  %v1232_v8 = vld [vmem:[%s1362_s21 + $0xb0] sm:$0xff]  }
  0x58   : > { %v507_v54 = vadd.f32 %v506_v10, %v460_v3  ;;  %v619_v3 = vadd.f32 %v618_v0, %v572_v18  ;;  %v1252_v10 = vld [vmem:[%s1368_s25 + $0x98] sm:$0xff]   ;;  %v469_v29 = vmul.f32 %v1732_v63, %v1732_v63 }
  0x59   : > { %2143 = vst [vmem:[#allocation54_spill] sm:$0xff] %v1710_v49  ;;  %v1719_v0 = vunpack.c.l.bf16 %v1252_v10 }
  0x5a   : > { %v508_v33 = vadd.f32 %v507_v54, %v461_v34  ;;  %v575_v34 = vmul.f32 %v1692_v17, %v1692_v17  ;;  %v620_v54 = vadd.f32 %v619_v3, %v573_v13  ;;  %v466_v13 = vmul.f32 %v1705_v43, %v1705_v43 }
  0x5b   : > { %2144 = vst [vmem:[#allocation55_spill] sm:$0xff] %v1719_v0  ;;  %v1728_v17 = vunpack.c.h.bf16 %v1252_v10  ;;  %v578_v41 = vmul.f32 %v1719_v0, %v1719_v0  ;;  %v1741_v10 = vunpack.c.h.bf16 %v1231_v40 }
  0x5c   : > { %v509_v2 = vadd.f32 %v508_v33, %v462_v4  ;;  %v621_v4 = vadd.f32 %v620_v54, %v574_v14  ;;  %v1253_v33 = vld [vmem:[%s1368_s25 + $0xa0] sm:$0xff]  }
  0x5d   : > { %2145 = vst [vmem:[#allocation56_spill] sm:$0xff] %v1728_v17  ;;  %v1737_v54 = vunpack.c.l.bf16 %v1253_v33  ;;  %v1746_v24 = vunpack.c.h.bf16 %v1253_v33  ;;  %v1759_v33 = vunpack.c.h.bf16 %v1232_v8 }
  0x5e   : > { %v510_v18 = vadd.f32 %v509_v2, %v463_v27  ;;  %v577_v27 = vmul.f32 %v1710_v49, %v1710_v49  ;;  %v622_v2 = vadd.f32 %v621_v4, %v575_v34  ;;  %v468_v34 = vmul.f32 %v1723_v57, %v1723_v57 }
  0x5f   : > { %v1750_v49 = vunpack.c.l.bf16 %v1232_v8  ;;  %v580_v46 = vmul.f32 %v1737_v54, %v1737_v54 }
  0x60   : > { %v511_v3 = vadd.f32 %v510_v18, %v464_v7  ;;  %v623_v7 = vadd.f32 %v622_v2, %v576_v60  ;;  %v1254_v18 = vld [vmem:[%s1368_s25 + $0xa8] sm:$0xff]   ;;  %v1233_v2 = vld [vmem:[%s1362_s21 + $0xb8] sm:$0xff]  }
  0x61   : > { %v1755_v40 = vunpack.c.l.bf16 %v1254_v18  ;;  %v1764_v23 = vunpack.c.h.bf16 %v1254_v18  ;;  %v1768_v48 = vunpack.c.l.bf16 %v1233_v2  ;;  %v471_v30 = vmul.f32 %v1750_v49, %v1750_v49  ;;  %v1256_v18 = vld [vmem:[%s1368_s25 + $0xb8] sm:$0xff]  }
  0x62   : > { %v512_v14 = vadd.f32 %v511_v3, %v465_v59  ;;  %v579_v59 = vmul.f32 %v1728_v17, %v1728_v17  ;;  %v624_v3 = vadd.f32 %v623_v7, %v577_v27  ;;  %v470_v27 = vmul.f32 %v1741_v10, %v1741_v10 }
  0x63   : > { %v582_v8 = vmul.f32 %v1755_v40, %v1755_v40  ;;  %v1776_v28 = vunpack.c.h.bf16 %v1233_v2  ;;  %v1787_v47 = vunpack.c.l.bf16 %v1256_v18 }
  0x64   : > { %v513_v4 = vadd.f32 %v512_v14, %v466_v13  ;;  %v625_v13 = vadd.f32 %v624_v3, %v578_v41  ;;  %v1255_v14 = vld [vmem:[%s1368_s25 + $0xb0] sm:$0xff]  }
  0x65   : > { %v1772_v41 = vunpack.c.l.bf16 %v1255_v14 }
  0x66   : > { %v514_v60 = vadd.f32 %v513_v4, %v467_v38  ;;  %v581_v38 = vmul.f32 %v1746_v24, %v1746_v24  ;;  %v626_v4 = vadd.f32 %v625_v13, %v579_v59  ;;  %v1781_v59 = vunpack.c.h.bf16 %v1255_v14 }
  0x67   : > { %v583_v13 = vmul.f32 %v1764_v23, %v1764_v23  ;;  %v1793_v14 = vunpack.c.h.bf16 %v1256_v18 }
  0x68   : > { %v515_v7 = vadd.f32 %v514_v60, %v468_v34  ;;  %v627_v3 = vadd.f32 %v626_v4, %v580_v46  ;;  %v472_v34 = vmul.f32 %v1759_v33, %v1759_v33  ;;  %v584_v46 = vmul.f32 %v1772_v41, %v1772_v41 }
  0x69   : > { %v474_v4 = vmul.f32 %v1776_v28, %v1776_v28  ;;  %v587_v37 = vmul.f32 %v1793_v14, %v1793_v14 }
  0x6a   : > { %v516_v0 = vadd.f32 %v515_v7, %v469_v29  ;;  %v628_v39 = vadd.f32 %v627_v3, %v581_v38  ;;  %v473_v29 = vmul.f32 %v1768_v48, %v1768_v48 }
  0x6c   : > { %v517_v60 = vadd.f32 %v516_v0, %v470_v27  ;;  %v629_v2 = vadd.f32 %v628_v39, %v582_v8  ;;  %v585_v27 = vmul.f32 %v1781_v59, %v1781_v59 }
  0x6e   : > { %v518_v7 = vadd.f32 %v517_v60, %v471_v30  ;;  %v630_v38 = vadd.f32 %v629_v2, %v583_v13  ;;  %v586_v30 = vmul.f32 %v1787_v47, %v1787_v47 }
  0x70   : > { %v519_v0 = vadd.f32 %v518_v7, %v472_v34  ;;  %v631_v60 = vadd.f32 %v630_v38, %v584_v46 }
  0x72   : > { %v520_v3 = vadd.f32 %v519_v0, %v473_v29  ;;  %v632_v39 = vadd.f32 %v631_v60, %v585_v27 }
  0x74   : > { %v521_v55 = vadd.f32 %v520_v3, %v474_v4  ;;  %v633_v17 = vadd.f32 %v632_v39, %v586_v30 }
  0x76   : > { %v522_v8 = vrot.slane %v521_v55, 4  ;;  %v634_v34 = vadd.f32 %v633_v17, %v587_v37 }
  0x78   : > { %v523_v43 = vadd.f32 %v522_v8, %v521_v55  ;;  %v635_v7 = vrot.slane %v634_v34, 4 }
  0x7a   : > { %v524_v18 = vrot.slane %v523_v43, 2  ;;  %v636_v50 = vadd.f32 %v635_v7, %v634_v34 }
  0x7c   : > { %v525_v56 = vadd.f32 %v524_v18, %v523_v43  ;;  %v637_v13 = vrot.slane %v636_v50, 2 }
  0x7e   : > { %v526_v62 = vrot.slane %v525_v56, 1  ;;  %v638_v2 = vadd.f32 %v637_v13, %v636_v50 }
  0x80   : > { %v527_v29 = vadd.f32 %v526_v62, %v525_v56  ;;  %v639_v0 = vrot.slane %v638_v2, 1 }
  0x82   : > { %1284 = vrsqrt.f32 %v527_v29  ;;  %v640_v46 = vadd.f32 %v639_v0, %v638_v2  ;;  %vm535_vm0 = vcmp.eq.f32.partialorder %v527_v29, inf  ;;  %v538_v43 = vand.u32 2147483648, %v527_v29 }
  0x83   : > { %vm537_vm1 = vcmp.eq.f32.partialorder %v527_v29, 0.0 }
  0x84   : > { %1286 = vrsqrt.f32 %v640_v46  ;;  %vm648_vm2 = vcmp.eq.f32.partialorder %v640_v46, inf  ;;  %v651_v18 = vand.u32 2147483648, %v640_v46  ;;  %vm650_vm3 = vcmp.eq.f32.partialorder %v640_v46, 0.0 }
  0x88   : > { %v1285_v4 = vpop.eup %1284 }
  0x89   : > { %v529_v38 = vmul.f32 %v1285_v4, %v527_v29 }
  0x8a   : > { %v1287_v27 = vpop.eup %1286 }
  0x8b   : > { %v530_v3 = vmul.f32 %v1285_v4, %v529_v38  ;;  %v642_v30 = vmul.f32 %v1287_v27, %v640_v46 }
  0x8d   : > { %v531_v60 = vmul.f32 0.5, %v530_v3  ;;  %v643_v17 = vmul.f32 %v1287_v27, %v642_v30 }
  0x8f   : > { %v532_v55 = vsub.f32 1.5, %v531_v60  ;;  %v644_v39 = vmul.f32 0.5, %v643_v17 }
  0x91   : > { %v533_v37 = vmul.f32 %v1285_v4, %v532_v55  ;;  %v645_v62 = vsub.f32 1.5, %v644_v39 }
  0x93   : > { %v534_v8 = vmul.f32 %v533_v37, %v527_v29  ;;  %v646_v34 = vmul.f32 %v1287_v27, %v645_v62 }
  0x95   : > { %v536_v56 = vsel %vm535_vm0, %v527_v29, %v534_v8  ;;  %v647_v13 = vmul.f32 %v646_v34, %v640_v46 }
  0x96   : > { %v539_v50 = vsel %vm537_vm1, %v538_v43, %v536_v56 }
  0x97   : > { %v653_v7 = vadd.f32 1e-10, %v539_v50  ;;  %v649_v2 = vsel %vm648_vm2, %v640_v46, %v647_v13 }
  0x98   : > { %v652_v0 = vsel %vm650_vm3, %v651_v18, %v649_v2 }
  0x99   : > { %1288 = vrcp.f32 %v653_v7  ;;  %v655_v38 = vadd.f32 1e-10, %v652_v0 }
  0x9b   : > { %1290 = vrcp.f32 %v655_v38 }
  0x9f   : > { %v1801_v4 = vpop.eup %1288 }
  0xa0   : > { %v704_v3 = vmul.f32 %v1801_v4, %v1776_v28  ;;  %v703_v29 = vmul.f32 %v1801_v4, %v1768_v48  ;;  %v672_v27 = vmul.f32 %v1801_v4, %v1489_v36  ;;  %v688_v60 = vmul.f32 %v1801_v4, %v1633_v45 }
  0xa1   : > { %v702_v46 = vmul.f32 %v1801_v4, %v1759_v33  ;;  %v671_v30 = vmul.f32 %v1801_v4, %v1480_v26  ;;  %v687_v55 = vmul.f32 %v1801_v4, %v1624_v16  ;;  %v701_v28 = vmul.f32 %v1801_v4, %v1750_v49  ;;  %v1835_v17 = vpop.eup %1290 }
  0xa2   : > { %v670_v48 = vmul.f32 %v1801_v4, %v1471_v15  ;;  %v686_v36 = vmul.f32 %v1801_v4, %v1615_v6  ;;  %v700_v45 = vmul.f32 %v1801_v4, %v1741_v10  ;;  %v669_v33 = vmul.f32 %v1801_v4, %v1462_v1 }
  0xa3   : > { %v685_v26 = vmul.f32 %v1801_v4, %v1606_v12  ;;  %v699_v16 = vmul.f32 %v1801_v4, %v1732_v63  ;;  %v668_v49 = vmul.f32 %v1801_v4, %v1453_v58  ;;  %v684_v15 = vmul.f32 %v1801_v4, %v1597_v25 }
  0xa4   : > { %v1839_v6 = vmul.f32 %v1801_v4, %v1723_v57  ;;  %v1843_v1 = vmul.f32 %v1801_v4, %v1444_v51  ;;  %v1847_v12 = vmul.f32 %v1801_v4, %v1588_v11  ;;  %v1851_v58 = vmul.f32 %v1801_v4, %v1714_v21 }
  0xa5   : > { %v752_v63 = vmul.f32 %v1835_v17, %v1793_v14  ;;  %v751_v25 = vmul.f32 %v1835_v17, %v1787_v47  ;;  %v720_v57 = vmul.f32 %v1835_v17, %v1512_v61  ;;  %v736_v51 = vmul.f32 %v1835_v17, %v1656_v35 }
  0xa6   : > { %v750_v11 = vmul.f32 %v1835_v17, %v1781_v59  ;;  %v719_v10 = vmul.f32 %v1835_v17, %v1503_v52  ;;  %v735_v21 = vmul.f32 %v1835_v17, %v1647_v53  ;;  %v749_v14 = vmul.f32 %v1835_v17, %v1772_v41 }
  0xa7   : > { %v800_v37 = vsub.f32 %v704_v3, %v752_v63  ;;  %v799_v47 = vsub.f32 %v703_v29, %v751_v25  ;;  %v768_v43 = vsub.f32 %v672_v27, %v720_v57  ;;  %v784_v39 = vsub.f32 %v688_v60, %v736_v51 }
  0xa8   : > { %v798_v61 = vsub.f32 %v702_v46, %v750_v11  ;;  %v767_v8 = vsub.f32 %v671_v30, %v719_v10  ;;  %v783_v62 = vsub.f32 %v687_v55, %v735_v21  ;;  %v797_v35 = vsub.f32 %v701_v28, %v749_v14  ;;  %v2148_v21 = vld [vmem:[#allocation40_spill] sm:$0xff] }
  0xa9   : > { %v848_v56 = vmul.f32 %v800_v37, %v800_v37  ;;  %v847_v50 = vmul.f32 %v799_v47, %v799_v47  ;;  %v816_v59 = vmul.f32 %v768_v43, %v768_v43  ;;  %v832_v34 = vmul.f32 %v784_v39, %v784_v39  ;;  %v2149_v47 = vld [vmem:[#allocation53_spill] sm:$0xff]  ;;  %v2150_v43 = vld [vmem:[#allocation56_spill] sm:$0xff] }
  0xaa   : > { %v846_v18 = vmul.f32 %v798_v61, %v798_v61  ;;  %v815_v52 = vmul.f32 %v767_v8, %v767_v8  ;;  %v831_v7 = vmul.f32 %v783_v62, %v783_v62  ;;  %v845_v13 = vmul.f32 %v797_v35, %v797_v35  ;;  %v2151_v61 = vld [vmem:[#allocation16_spill] sm:$0xff]  ;;  %v2152_v62 = vld [vmem:[#allocation19_spill] sm:$0xff] }
  0xab   : > { %892 = vmatpush.msra.mxu2 %v848_v56  ;;  %852 = vmatpush.msra.mxu0 %v816_v59  ;;  %v718_v53 = vmul.f32 %v1835_v17, %v1494_v42  ;;  %v734_v41 = vmul.f32 %v1835_v17, %v1638_v20  ;;  %v748_v2 = vmul.f32 %v1835_v17, %v1764_v23  ;;  %v2153_v56 = vld [vmem:[#allocation35_spill] sm:$0xff] }
  0xac   : > { %872 = vmatpush.msra.mxu1 %v832_v34  ;;  %v717_v0 = vmul.f32 %v1835_v17, %v1485_v32  ;;  %v733_v38 = vmul.f32 %v1835_v17, %v1629_v19  ;;  %v747_v3 = vmul.f32 %v1835_v17, %v1755_v40  ;;  %v716_v29 = vmul.f32 %v1835_v17, %v1476_v22  ;;  %v2154_v59 = vld [vmem:[#allocation39_spill] sm:$0xff] }
  0xad   : > { %893 = vmatpush.msra.mxu2 %v847_v50  ;;  %853 = vmatpush.msra.mxu0 %v815_v52  ;;  %v766_v42 = vsub.f32 %v670_v48, %v718_v53  ;;  %v782_v20 = vsub.f32 %v686_v36, %v734_v41  ;;  %v796_v27 = vsub.f32 %v700_v45, %v748_v2  ;;  %v2156_v53 = vld [vmem:[#allocation55_spill] sm:$0xff] }
  0xae   : > { %873 = vmatpush.msra.mxu1 %v831_v7  ;;  %v765_v23 = vsub.f32 %v669_v33, %v717_v0  ;;  %v781_v60 = vsub.f32 %v685_v26, %v733_v38  ;;  %v795_v46 = vsub.f32 %v699_v16, %v747_v3  ;;  %v764_v30 = vsub.f32 %v668_v49, %v716_v29  ;;  %v2146_v16 = vld [vmem:[#allocation20_spill] sm:$0xff]  ;;  %v2157_v38 = vld [vmem:[#allocation14_spill] sm:$0xff] }
  0xaf   : > { %894 = vmatpush.msra.mxu2 %v846_v18  ;;  %v814_v32 = vmul.f32 %v766_v42, %v766_v42  ;;  %v830_v55 = vmul.f32 %v782_v20, %v782_v20  ;;  %v844_v19 = vmul.f32 %v796_v27, %v796_v27  ;;  %v732_v40 = vmul.f32 %v1835_v17, %v1620_v5  ;;  %v2155_v18 = vld [vmem:[#allocation51_spill] sm:$0xff]  ;;  %v2158_v29 = vld [vmem:[#allocation18_spill] sm:$0xff] }
  0xb0   : > { %v813_v28 = vmul.f32 %v765_v23, %v765_v23  ;;  %v829_v63 = vmul.f32 %v781_v60, %v781_v60  ;;  %v843_v22 = vmul.f32 %v795_v46, %v795_v46  ;;  %v812_v25 = vmul.f32 %v764_v30, %v764_v30  ;;  %v2159_v23 = vld [vmem:[#allocation33_spill] sm:$0xff]  ;;  %v2160_v46 = vld [vmem:[#allocation38_spill] sm:$0xff] }
  0xb1   : > { %895 = vmatpush.msra.mxu2 %v845_v13  ;;  %854 = vmatpush.msra.mxu0 %v814_v32  ;;  %v780_v48 = vsub.f32 %v684_v15, %v732_v40  ;;  %v746_v36 = vmul.f32 %v1835_v17, %v1746_v24  ;;  %v715_v45 = vmul.f32 %v1835_v17, %v1467_v9  ;;  %v2161_v40 = vld [vmem:[#allocation49_spill] sm:$0xff] }
  0xb2   : > { %874 = vmatpush.msra.mxu1 %v830_v55  ;;  %v731_v33 = vmul.f32 %v1835_v17, %v1611_v31  ;;  %v745_v5 = vmul.f32 %v1835_v17, %v1737_v54  ;;  %v666_v26 = vmul.f32 %v1801_v4, %v1435_v44  ;;  %v714_v49 = vmul.f32 %v1835_v17, %v2146_v16  ;;  %v2147_v54 = vld [vmem:[#allocation37_spill] sm:$0xff]  ;;  %v2165_v16 = vld [vmem:[#allocation31_spill] sm:$0xff] }
  0xb3   : > { %896 = vmatpush.msra.mxu2 %v844_v19  ;;  %855 = vmatpush.msra.mxu0 %v813_v28  ;;  %v828_v15 = vmul.f32 %v780_v48, %v780_v48  ;;  %v794_v24 = vsub.f32 %v1839_v6, %v746_v36  ;;  %v763_v9 = vsub.f32 %v1843_v1, %v715_v45  ;;  %v2163_v36 = vld [vmem:[#allocation12_spill] sm:$0xff] }
  0xb4   : > { %875 = vmatpush.msra.mxu1 %v829_v63  ;;  %v779_v57 = vsub.f32 %v1847_v12, %v731_v33  ;;  %v793_v31 = vsub.f32 %v1851_v58, %v745_v5  ;;  %v762_v51 = vsub.f32 %v666_v26, %v714_v49  ;;  %v682_v11 = vmul.f32 %v1801_v4, %v2147_v54  ;;  %v2164_v5 = vld [vmem:[#allocation17_spill] sm:$0xff] }
  0xb5   : > { %897 = vmatpush.msra.mxu2 %v843_v22  ;;  %856 = vmatpush.msra.mxu0 %v812_v25  ;;  %v842_v44 = vmul.f32 %v794_v24, %v794_v24  ;;  %v811_v10 = vmul.f32 %v763_v9, %v763_v9  ;;  %v730_v14 = vmul.f32 %v1835_v17, %v2148_v21  ;;  %v2162_v25 = vld [vmem:[#allocation54_spill] sm:$0xff]  ;;  %v2166_v9 = vld [vmem:[#allocation36_spill] sm:$0xff] }
  0xb6   : > { %876 = vmatpush.msra.mxu1 %v828_v15  ;;  %v827_v6 = vmul.f32 %v779_v57, %v779_v57  ;;  %v841_v37 = vmul.f32 %v793_v31, %v793_v31  ;;  %v810_v1 = vmul.f32 %v762_v51, %v762_v51  ;;  %v696_v12 = vmul.f32 %v1801_v4, %v2149_v47  ;;  %v2167_v31 = vld [vmem:[#allocation47_spill] sm:$0xff]  ;;  %v2171_v47 = vld [vmem:[#allocation29_spill] sm:$0xff] }
  0xb7   : > { %898 = vmatpush.msra.mxu2 %v842_v44  ;;  %857 = vmatpush.msra.mxu0 %v811_v10  ;;  %v778_v58 = vsub.f32 %v682_v11, %v730_v14  ;;  %v744_v39 = vmul.f32 %v1835_v17, %v2150_v43  ;;  %v665_v8 = vmul.f32 %v1801_v4, %v2151_v61  ;;  %v2168_v11 = vld [vmem:[#allocation52_spill] sm:$0xff]  ;;  %v2169_v10 = vld [vmem:[#allocation10_spill] sm:$0xff]  ;;  %v2170_v14 = vld [vmem:[#allocation15_spill] sm:$0xff] }
  0xb8   : > { %877 = vmatpush.msra.mxu1 %v827_v6  ;;  %v713_v35 = vmul.f32 %v1835_v17, %v2152_v62  ;;  %v681_v50 = vmul.f32 %v1801_v4, %v2153_v56  ;;  %v729_v34 = vmul.f32 %v1835_v17, %v2154_v59  ;;  %v695_v52 = vmul.f32 %v1801_v4, %v2155_v18  ;;  %v2173_v62 = vld [vmem:[#allocation45_spill] sm:$0xff]  ;;  %v2174_v59 = vld [vmem:[#allocation50_spill] sm:$0xff]  ;;  %v2175_v18 = vld [vmem:[#allocation8_spill] sm:$0xff] }
  0xb9   : > { %899 = vmatpush.msra.mxu2 %v841_v37  ;;  %858 = vmatpush.msra.mxu0 %v810_v1  ;;  %v826_v7 = vmul.f32 %v778_v58, %v778_v58  ;;  %v792_v13 = vsub.f32 %v696_v12, %v744_v39  ;;  %v743_v41 = vmul.f32 %v1835_v17, %v2156_v53  ;;  %v2172_v58 = vld [vmem:[#allocation34_spill] sm:$0xff]  ;;  %v2176_v53 = vld [vmem:[#allocation13_spill] sm:$0xff] }
  0xba   : > { %v761_v2 = vsub.f32 %v665_v8, %v713_v35  ;;  %v777_v0 = vsub.f32 %v681_v50, %v729_v34  ;;  %v664_v3 = vmul.f32 %v1801_v4, %v2157_v38  ;;  %v712_v42 = vmul.f32 %v1835_v17, %v2158_v29  ;;  %v2178_v29 = vld [vmem:[#allocation32_spill] sm:$0xff] }
  0xbb   : > { %878 = vmatpush.msra.mxu1 %v826_v7  ;;  %v840_v20 = vmul.f32 %v792_v13, %v792_v13  ;;  %v791_v27 = vsub.f32 %v695_v52, %v743_v41  ;;  %v680_v60 = vmul.f32 %v1801_v4, %v2159_v23  ;;  %v728_v30 = vmul.f32 %v1835_v17, %v2160_v46 }
  0xbc   : > { %v809_v32 = vmul.f32 %v761_v2, %v761_v2  ;;  %v825_v55 = vmul.f32 %v777_v0, %v777_v0  ;;  %v760_v19 = vsub.f32 %v664_v3, %v712_v42  ;;  %v694_v28 = vmul.f32 %v1801_v4, %v2161_v40  ;;  %v2177_v2 = vld [vmem:[#allocation27_spill] sm:$0xff] }
  0xbd   : > { %900 = vmatpush.msra.mxu2 %v840_v20  ;;  %v839_v63 = vmul.f32 %v791_v27, %v791_v27  ;;  %v776_v22 = vsub.f32 %v680_v60, %v728_v30  ;;  %v742_v48 = vmul.f32 %v1835_v17, %v2162_v25  ;;  %v663_v45 = vmul.f32 %v1801_v4, %v2163_v36  ;;  %v2179_v20 = vld [vmem:[#allocation43_spill] sm:$0xff]  ;;  %v2180_v60 = vld [vmem:[#allocation48_spill] sm:$0xff]  ;;  %v2181_v30 = vld [vmem:[#allocation5_spill] sm:$0xff] }
  0xbe   : > { %859 = vmatpush.msra.mxu0 %v809_v32  ;;  %879 = vmatpush.msra.mxu1 %v825_v55  ;;  %v808_v33 = vmul.f32 %v760_v19, %v760_v19  ;;  %v711_v26 = vmul.f32 %v1835_v17, %v2164_v5  ;;  %v679_v49 = vmul.f32 %v1801_v4, %v2165_v16  ;;  %v2182_v40 = vld [vmem:[#allocation11_spill] sm:$0xff]  ;;  %v2184_v36 = vld [vmem:[#allocation30_spill] sm:$0xff] }
  0xbf   : > { %901 = vmatpush.msra.mxu2 %v839_v63  ;;  %v824_v15 = vmul.f32 %v776_v22, %v776_v22  ;;  %v790_v24 = vsub.f32 %v694_v28, %v742_v48  ;;  %v727_v57 = vmul.f32 %v1835_v17, %v2166_v9  ;;  %v693_v51 = vmul.f32 %v1801_v4, %v2167_v31  ;;  %v2183_v63 = vld [vmem:[#allocation25_spill] sm:$0xff] }
  0xc0   : > { %860 = vmatpush.msra.mxu0 %v808_v33  ;;  %v759_v54 = vsub.f32 %v663_v45, %v711_v26  ;;  %v741_v44 = vmul.f32 %v1835_v17, %v2168_v11  ;;  %v662_v21 = vmul.f32 %v1801_v4, %v2169_v10  ;;  %v710_v6 = vmul.f32 %v1835_v17, %v2170_v14  ;;  %v2185_v33 = vld [vmem:[#allocation42_spill] sm:$0xff]  ;;  %v2189_v11 = vld [vmem:[#allocation23_spill] sm:$0xff]  ;;  %v2190_v14 = vld [vmem:[#allocation28_spill] sm:$0xff] }
  0xc1   : > { %880 = vmatpush.msra.mxu1 %v824_v15  ;;  %v838_v37 = vmul.f32 %v790_v24, %v790_v24  ;;  %v775_v1 = vsub.f32 %v679_v49, %v727_v57  ;;  %v678_v12 = vmul.f32 %v1801_v4, %v2171_v47  ;;  %v726_v43 = vmul.f32 %v1835_v17, %v2172_v58  ;;  %v2186_v49 = vld [vmem:[#allocation46_spill] sm:$0xff]  ;;  %v2187_v24 = vld [vmem:[#allocation4_spill] sm:$0xff] }
  0xc2   : > { %v807_v39 = vmul.f32 %v759_v54, %v759_v54  ;;  %v789_v61 = vsub.f32 %v693_v51, %v741_v44  ;;  %v758_v8 = vsub.f32 %v662_v21, %v710_v6  ;;  %v692_v35 = vmul.f32 %v1801_v4, %v2173_v62  ;;  %v2188_v51 = vld [vmem:[#allocation9_spill] sm:$0xff]  ;;  %v2192_v58 = vld [vmem:[#allocation44_spill] sm:$0xff] }
  0xc3   : > { %902 = vmatpush.msra.mxu2 %v838_v37  ;;  %v823_v56 = vmul.f32 %v775_v1, %v775_v1  ;;  %v774_v50 = vsub.f32 %v678_v12, %v726_v43  ;;  %v740_v34 = vmul.f32 %v1835_v17, %v2174_v59  ;;  %v661_v52 = vmul.f32 %v1801_v4, %v2175_v18  ;;  %v2191_v37 = vld [vmem:[#allocation41_spill] sm:$0xff] }
  0xc4   : > { %861 = vmatpush.msra.mxu0 %v807_v39  ;;  %v837_v7 = vmul.f32 %v789_v61, %v789_v61  ;;  %v806_v13 = vmul.f32 %v758_v8, %v758_v8  ;;  %v709_v41 = vmul.f32 %v1835_v17, %v2176_v53  ;;  %v677_v0 = vmul.f32 %v1801_v4, %v2177_v2  ;;  %v2193_v39 = vld [vmem:[#allocation3_spill] sm:$0xff] }
  0xc5   : > { %881 = vmatpush.msra.mxu1 %v823_v56  ;;  %v822_v38 = vmul.f32 %v774_v50, %v774_v50  ;;  %v788_v3 = vsub.f32 %v692_v35, %v740_v34  ;;  %v725_v42 = vmul.f32 %v1835_v17, %v2178_v29  ;;  %v691_v27 = vmul.f32 %v1801_v4, %v2179_v20  ;;  %v2194_v35 = vld [vmem:[#allocation7_spill] sm:$0xff]  ;;  %v2195_v50 = vld [vmem:[#allocation22_spill] sm:$0xff]  ;;  %v851_v20 = vld [vmem:[%s2034_s2 + $0x10] sm:$0xff] }
  0xc6   : > { %903 = vmatpush.msra.mxu2 %v837_v7  ;;  %862 = vmatpush.msra.mxu0 %v806_v13  ;;  %v757_v23 = vsub.f32 %v661_v52, %v709_v41  ;;  %v739_v46 = vmul.f32 %v1835_v17, %v2180_v60  ;;  %v660_v32 = vmul.f32 %v1801_v4, %v2181_v30  ;;  %v2196_v52 = vld [vmem:[#allocation26_spill] sm:$0xff] }
  0xc7   : > { %882 = vmatpush.msra.mxu1 %v822_v38  ;;  %v836_v55 = vmul.f32 %v788_v3, %v788_v3  ;;  %v773_v19 = vsub.f32 %v677_v0, %v725_v42  ;;  %v708_v28 = vmul.f32 %v1835_v17, %v2182_v40  ;;  %v676_v22 = vmul.f32 %v1801_v4, %v2183_v63  ;;  %v2197_v13 = vld [vmem:[#allocation2_spill] sm:$0xff]  ;;  %v2199_v3 = vld [vmem:[#allocation21_spill] sm:$0xff] }
  0xc8   : > { %v805_v25 = vmul.f32 %v757_v23, %v757_v23  ;;  %v787_v48 = vsub.f32 %v691_v27, %v739_v46  ;;  %v724_v45 = vmul.f32 %v1835_v17, %v2184_v36  ;;  %v690_v5 = vmul.f32 %v1801_v4, %v2185_v33  ;;  %v2198_v0 = vld [vmem:[#allocation6_spill] sm:$0xff]  ;;  %v2200_v23 = vld [vmem:[#allocation24_spill] sm:$0xff] }
  0xc9   : > { %904 = vmatpush.msra.mxu2 %v836_v55  ;;  %v821_v26 = vmul.f32 %v773_v19, %v773_v19  ;;  %v756_v16 = vsub.f32 %v660_v32, %v708_v28  ;;  %v738_v15 = vmul.f32 %v1835_v17, %v2186_v49  ;;  %v659_v9 = vmul.f32 %v1801_v4, %v2187_v24  ;;  %v849_v19 = vld [vmem:[%s2034_s2] sm:$0xff] }
  0xca   : > { %863 = vmatpush.msra.mxu0 %v805_v25  ;;  %v835_v57 = vmul.f32 %v787_v48, %v787_v48  ;;  %v772_v31 = vsub.f32 %v676_v22, %v724_v45  ;;  %v707_v54 = vmul.f32 %v1835_v17, %v2188_v51  ;;  %v675_v44 = vmul.f32 %v1801_v4, %v2189_v11 }
  0xcb   : > { %883 = vmatpush.msra.mxu1 %v821_v26  ;;  %v804_v10 = vmul.f32 %v756_v16, %v756_v16  ;;  %v786_v21 = vsub.f32 %v690_v5, %v738_v15  ;;  %v723_v6 = vmul.f32 %v1835_v17, %v2190_v14  ;;  %v689_v1 = vmul.f32 %v1801_v4, %v2191_v37 }
  0xcc   : > { %905 = vmatpush.msra.mxu2 %v835_v57  ;;  %v820_v47 = vmul.f32 %v772_v31, %v772_v31  ;;  %v755_v12 = vsub.f32 %v659_v9, %v707_v54  ;;  %v737_v43 = vmul.f32 %v1835_v17, %v2192_v58  ;;  %v658_v61 = vmul.f32 %v1801_v4, %v2193_v39 }
  0xcd   : > { %864 = vmatpush.msra.mxu0 %v804_v10  ;;  %v834_v8 = vmul.f32 %v786_v21, %v786_v21  ;;  %v771_v62 = vsub.f32 %v675_v44, %v723_v6  ;;  %v706_v56 = vmul.f32 %v1835_v17, %v2194_v35  ;;  %v674_v59 = vmul.f32 %v1801_v4, %v2195_v50 }
  0xce   : > { %884 = vmatpush.msra.mxu1 %v820_v47  ;;  %v803_v34 = vmul.f32 %v755_v12, %v755_v12  ;;  %v785_v18 = vsub.f32 %v689_v1, %v737_v43  ;;  %v722_v7 = vmul.f32 %v1835_v17, %v2196_v52  ;;  %v657_v53 = vmul.f32 %v1801_v4, %v2197_v13 }
  0xcf   : > { %906 = vmatpush.msra.mxu2 %v834_v8  ;;  %v819_v41 = vmul.f32 %v771_v62, %v771_v62  ;;  %v754_v2 = vsub.f32 %v658_v61, %v706_v56  ;;  %v705_v38 = vmul.f32 %v1835_v17, %v2198_v0  ;;  %v673_v29 = vmul.f32 %v1801_v4, %v2199_v3 }
  0xd0   : > { %865 = vmatpush.msra.mxu0 %v803_v34  ;;  %v833_v42 = vmul.f32 %v785_v18, %v785_v18  ;;  %v770_v27 = vsub.f32 %v674_v59, %v722_v7  ;;  %v721_v60 = vmul.f32 %v1835_v17, %v2200_v23  ;;  %v850_v17 = vld [vmem:[%s2034_s2 + $0x8] sm:$0xff]  ;;  %v912_v28 = vlaneseq }
  0xd1   : > { %885 = vmatpush.msra.mxu1 %v819_v41  ;;  %v802_v46 = vmul.f32 %v754_v2, %v754_v2  ;;  %v753_v30 = vsub.f32 %v657_v53, %v705_v38 }
  0xd2   : > { %907 = vmatpush.msra.mxu2 %v833_v42  ;;  %v818_v32 = vmul.f32 %v770_v27, %v770_v27  ;;  %v769_v55 = vsub.f32 %v673_v29, %v721_v60  ;;  %v913_v63 = vand.u32 127, %v912_v28 }
  0xd3   : > { %908 = vmatmul.f32.vlgmr.msra.gmra.mxu2 %v851_v20  ;;  %866 = vmatpush.msra.mxu0 %v802_v46  ;;  %v801_v4 = vmul.f32 %v753_v30, %v753_v30 }
  0xd4   : > { %886 = vmatpush.msra.mxu1 %v818_v32  ;;  %v817_v40 = vmul.f32 %v769_v55, %v769_v55  ;;  %vm917_vm4 = vcmp.lt.s32.totalorder %v913_v63, 9 }
  0xd5   : > { %867 = vmatpush.msra.mxu0 %v801_v4 }
  0xd6   : > { %887 = vmatpush.msra.mxu1 %v817_v40  ;;  %868 = vmatmul.f32.vlgmr.msra.gmra.mxu0 %v849_v19 }
  0xd7   : > { %888 = vmatmul.f32.vlgmr.msra.gmra.mxu1 %v850_v17 }
 0x153   : > { %v869_v22 = vpop.f32.mrf.mxu0 }
 0x154   : > { %v889_v25 = vpop.f32.mrf.mxu1 }
 0x155   : > { %v890_v48 = vadd.f32 %v889_v25, %v869_v22 }
 0x156   : > { %v909_v36 = vpop.f32.mrf.mxu2 }
 0x157   : > { %v910_v45 = vadd.f32 %v909_v36, %v890_v48 }
 0x159   : > { %v920_v33 = vsel %vm917_vm4, %v910_v45, 0.0 }
 0x15a   : > { %923 = vst [vmem:[%s229_s8] sm:$0xff] %v920_v33 }
 0x15b PF: > { %s13_s14 = sadd.s32 1, %s1314_s14   ;;  %s2201_s12 = smov %s1310_s13 }
 0x15c   : > { %p10_p7 = scmp.ge.s32.totalorder %s13_s14, 4   ;;  %s2202_s13 = smov %s2204_s15 }
 0x15e   :  { %12 = sbr.rel (!%p10_p7) target bundleno = 2 (0x2), region = 69 }

// kernel: lpips_forward.5
= control target key start
LH: loop header
LB: loop body
LE: loop exit
PB: predicated region body
PF: predicated region fallthrough
CT: control target
= control target key end

     0   :  { %s863_s12 = smov 0   ;;  %s865_s13 = smov 0   ;;  %s1085_s0 = inlined_call_operand.vmem [shape: bf16[4,64,225], index: 0, kind: input, shape index: {}, may-alias: {0,1}]   ;;  %s1086_s1 = inlined_call_operand.vmem [shape: bf16[4,64,225], index: 1, kind: input, shape index: {}, may-alias: {0,1}]   ;;  %s1087_s2 = inlined_call_operand.vmem [shape: f32[8,64], index: 2, kind: input, shape index: {}]   ;;  %s1088_s3 = inlined_call_operand.vmem [shape: f32[2,8,128], index: 3, kind: output, shape index: {}]  }
   0x1   :  { %s867_s14 = smov 0   ;;  %s869_s15 = smov 0  }
   0x2   :  { %s871_s16 = smov 0   ;;  %s873_s17 = smov 0  }
   0x3   :  { %s875_s18 = smov 0   ;;  %s877_s19 = smov 0  }
   0x4   :  { %s879_s20 = smov 0  }
   0x5 LB: > { %s22_s21 = sadd.s32 1, %s832_s18  ;;  %s25_s22 = sadd.s32 1, %s836_s19  ;;  %s840_s20 = sphi %s879_s20, %s13_s20   ;;  %s836_s19 = sphi %s877_s19, %s1098_s19   ;;  %s832_s18 = sphi %s875_s18, %s1097_s18   ;;  %s828_s17 = sphi %s873_s17, %s1096_s17   ;;  %s824_s16 = sphi %s871_s16, %s1095_s16   ;;  %s820_s15 = sphi %s869_s15, %s1094_s15   ;;  %s816_s14 = sphi %s867_s14, %s1093_s14   ;;  %s812_s13 = sphi %s865_s13, %s1092_s13   ;;  %s808_s12 = sphi %s863_s12, %s1091_s12  }
   0x6   : > { %p23_p0 = scmp.ge.s32.totalorder %s22_s21, 2  ;;  %p41_p1 = scmp.ne.s32.totalorder %s820_s15, %s816_s14 }
   0x7   : > { %p42_p2 = scmp.eq.s32.totalorder %s840_s20, 0  ;;  %s34_s23 = sadd.s32 1, %s820_s15 }
   0x8   : > { %s1100_s21 = smov (%p23_p0, %s22_s21), 0  ;;  %s1102_s22 = smov (!%p23_p0, %s25_s22), %s836_s19 }
   0x9   : > { %p917_p3 = por %p42_p2, %p41_p1  ;;  %p27_p4 = scmp.ge.s32.totalorder %s1102_s22, 2 }
   0xa   : > { %s30_s25 = ssub.s32 %s832_s18, %s1100_s21  ;;  %s57_s26 = sadd.s32 2, %s836_s19 }
   0xb   : > { %p71_p5 = scmp.ne.s32.totalorder %s812_s13, %s808_s12  ;;  %s1104_s22 = smov (%p27_p4, %s1102_s22), 0 }
   0xc   : > { %s64_s27 = sadd.s32 1, %s812_s13  ;;  %s29_s29 = ssub.s32 %s836_s19, %s1104_s22 }
   0xd   : > { %p929_p6 = por %p71_p5, %p42_p2  ;;  %s58_s30 = sadd.s32 2, %s1104_s22 }
   0xe   : > { %s31_s4 = sor.u32 %s30_s25, %s29_s29  ;;  %s59_s5 = ssub.s32 %s57_s26, %s58_s30 }
   0xf   : > { %p32_p7 = scmp.eq.s32.totalorder %s31_s4, 0  ;;  %s61_s6 = sor.u32 %s59_s5, %s30_s25 }
  0x10   : > { %p62_p8 = scmp.eq.s32.totalorder %s61_s6, 0  ;;  %p627_p9 = scmp.ge.s32.totalorder %s840_s20, 4 }
  0x11   : > { %s937_s7 = scalar_select %p32_p7, %s820_s15, %s34_s23  }
  0x12   : > { %s940_s8 = scalar_select %p62_p8, %s812_s13, %s64_s27  }
  0x13   : > { %147 = sbr.rel (%p627_p9) target bundleno = 52 (0x34), region = 20 }
  0x18   : > { %150 = sbr.rel (!%p917_p3) target bundleno = 38 (0x26), region = 24  ;;  %s152_s9 = sand.u32 (%p917_p3), 1, %s820_s15  }
  0x19   : > { %s629_s10 = sshll.u32 (%p917_p3), %s836_s19, 4  ;;  %s628_s11 = sshll.u32 (%p917_p3), %s152_s9, 5 }
  0x1a   : > { %s156_s26 = sadd.s32 (%p917_p3), %s832_s18, %s629_s10  ;;  %s154_s27 = scalar_lea.vmem (%p917_p3), [#allocation2], %s628_s11 }
  0x1b   : > { %s630_s29 = sshll.u32 (%p917_p3), %s156_s26, 2 }
  0x1c   : > { %s158_s23 = scalar_lea.vmem (%p917_p3), %s1085_s0, %s630_s29 }
  0x1d   : > { %v175_v0 = vld [vmem:[%s158_s23] sm:$0xf]  ;;  %v177_v1 = vld [vmem:[%s158_s23 + $0x8] sm:$0xf]  ;;  %v179_v2 = vld [vmem:[%s158_s23 + $0x10] sm:$0xf] }
  0x1e   : > { %176 = vst [vmem:[%s154_s27] sm:$0xf] %v175_v0  ;;  %v181_v3 = vld [vmem:[%s158_s23 + $0x18] sm:$0xf]  ;;  %v183_v4 = vld [vmem:[%s158_s23 + $0x20] sm:$0xf] }
  0x1f   : > { %178 = vst [vmem:[%s154_s27 + $0x4] sm:$0xf] %v177_v1  ;;  %v185_v5 = vld [vmem:[%s158_s23 + $0x28] sm:$0xf]  ;;  %v187_v6 = vld [vmem:[%s158_s23 + $0x30] sm:$0xf] }
  0x20   : > { %180 = vst [vmem:[%s154_s27 + $0x8] sm:$0xf] %v179_v2  ;;  %v189_v7 = vld [vmem:[%s158_s23 + $0x38] sm:$0xf] }
  0x21   : > { %182 = vst [vmem:[%s154_s27 + $0xc] sm:$0xf] %v181_v3 }
  0x22   : > { %184 = vst [vmem:[%s154_s27 + $0x10] sm:$0xf] %v183_v4 }
  0x23   : > { %186 = vst [vmem:[%s154_s27 + $0x14] sm:$0xf] %v185_v5 }
  0x24   : > { %188 = vst [vmem:[%s154_s27 + $0x18] sm:$0xf] %v187_v6 }
  0x25   : > { %190 = vst [vmem:[%s154_s27 + $0x1c] sm:$0xf] %v189_v7 }
  0x26 PF: > { %230 = sbr.rel (!%p929_p6) target bundleno = 52 (0x34), region = 65  ;;  %s232_s24 = sand.u32 (%p929_p6), 1, %s812_s13  }
  0x27   : > { %s632_s4 = sshll.u32 (%p929_p6), %s836_s19, 4  ;;  %s631_s5 = sshll.u32 (%p929_p6), %s232_s24, 5 }
  0x28   : > { %s559_s6 = sadd.s32 (%p929_p6), %s832_s18, %s632_s4  ;;  %s234_s29 = scalar_lea.vmem (%p929_p6), [#allocation3], %s631_s5 }
  0x29   : > { %s633_s9 = sshll.u32 (%p929_p6), %s559_s6, 2 }
  0x2a   : > { %s561_s26 = scalar_lea.vmem (%p929_p6), %s1086_s1, %s633_s9 }
  0x2b   : > { %v634_v8 = vld [vmem:[%s561_s26 + $0x80] sm:$0xf]  ;;  %v635_v9 = vld [vmem:[%s561_s26 + $0x88] sm:$0xf]  ;;  %v636_v10 = vld [vmem:[%s561_s26 + $0x90] sm:$0xf] }
  0x2c   : > { %257 = vst [vmem:[%s234_s29] sm:$0xf] %v634_v8  ;;  %v637_v11 = vld [vmem:[%s561_s26 + $0x98] sm:$0xf]  ;;  %v638_v12 = vld [vmem:[%s561_s26 + $0xa0] sm:$0xf] }
  0x2d   : > { %259 = vst [vmem:[%s234_s29 + $0x4] sm:$0xf] %v635_v9  ;;  %v639_v13 = vld [vmem:[%s561_s26 + $0xa8] sm:$0xf]  ;;  %v640_v14 = vld [vmem:[%s561_s26 + $0xb0] sm:$0xf] }
  0x2e   : > { %261 = vst [vmem:[%s234_s29 + $0x8] sm:$0xf] %v636_v10  ;;  %v641_v15 = vld [vmem:[%s561_s26 + $0xb8] sm:$0xf] }
  0x2f   : > { %263 = vst [vmem:[%s234_s29 + $0xc] sm:$0xf] %v637_v11 }
  0x30   : > { %265 = vst [vmem:[%s234_s29 + $0x10] sm:$0xf] %v638_v12 }
  0x31   : > { %267 = vst [vmem:[%s234_s29 + $0x14] sm:$0xf] %v639_v13 }
  0x32   : > { %269 = vst [vmem:[%s234_s29 + $0x18] sm:$0xf] %v640_v14 }
  0x33   : > { %271 = vst [vmem:[%s234_s29 + $0x1c] sm:$0xf] %v641_v15 }
  0x34 PF: > { %p642_p10 = scmp.ge.s32.totalorder %s840_s20, 1  ;;  %p310_p11 = scmp.lt.s32.totalorder %s840_s20, 5 }
  0x36   : > { %p311_p12 = pnand %p642_p10, %p310_p11 }
  0x37   : > { %s317_s28 = sand.u32 (!%p311_p12), 1, %s816_s14   ;;  %s324_s25 = sand.u32 (!%p311_p12), 1, %s808_s12  }
  0x38   : > { %314 = sbr.rel (%p311_p12) target bundleno = 282 (0x11a), region = 106  ;;  %s643_s30 = sshll.u32 (!%p311_p12), %s317_s28, 5 }
  0x39   : > { %s644_s23 = sshll.u32 (!%p311_p12), %s324_s25, 5  ;;  %p351_p13 = scmp.lt.s32.totalorder (!%p311_p12), %s828_s17, 1 }
  0x3a   : > { %s319_s6 = scalar_lea.vmem (!%p311_p12), [#allocation2], %s643_s30  ;;  %s326_s9 = scalar_lea.vmem (!%p311_p12), [#allocation3], %s644_s23 }
  0x3b   : > { %p646_p0 = scmp.ne.s32.totalorder (!%p311_p12), %s824_s16, 0 }
  0x3d   : > { %s1106_s17 = smov (!%p351_p13, %s828_s17), 1  ;;  %358 = sbr.rel (%p646_p0) target bundleno = 68 (0x44), region = 118 }
  0x3e   : > { %s645_s27 = sshll.u32 %s1106_s17, 3 }
  0x3f   : > { %s968_s5 = scalar_lea.vmem %s1088_s3, %s645_s27 }
  0x42   : > { %v842_v16 = vmov 0.0  }
  0x43   : > { %359 = vst [vmem:[%s968_s5] sm:$0xff] %v842_v16 }
  0x44 PF: > { %v652_v17 = vld [vmem:[%s319_s6] sm:$0xff]   ;;  %v683_v18 = vld [vmem:[%s319_s6 + $0x8] sm:$0xff]   ;;  %v684_v22 = vld [vmem:[%s319_s6 + $0x10] sm:$0xff]   ;;  %vm495_vm4 = vcmask 523264   ;;  %s648_s17 = sshll.u32 %s824_s16, 7 }
  0x45   : > { %v972_v19 = vunpack.c.l.bf16 %v652_v17  ;;  %v974_v20 = vunpack.c.h.bf16 %v652_v17  ;;  %v976_v21 = vunpack.c.l.bf16 %v683_v18  ;;  %v668_v23 = vld [vmem:[%s326_s9] sm:$0xff]   ;;  %v686_v24 = vld [vmem:[%s326_s9 + $0x8] sm:$0xff]   ;;  %v978_v25 = vunpack.c.h.bf16 %v683_v18  ;;  %v687_v29 = vld [vmem:[%s326_s9 + $0x10] sm:$0xff]   ;;  %s522_s10 = ssub.s32 225, %s648_s17 }
  0x46   : > { %v980_v26 = vunpack.c.l.bf16 %v668_v23  ;;  %v982_v27 = vunpack.c.h.bf16 %v668_v23  ;;  %v984_v28 = vunpack.c.l.bf16 %v686_v24  ;;  %v986_v30 = vunpack.c.l.bf16 %v684_v22  ;;  %v685_v31 = vld [vmem:[%s319_s6 + $0x18] sm:$0xff]  }
  0x47   : > { %v988_v32 = vunpack.c.h.bf16 %v686_v24  ;;  %v392_v33 = vmul.f32 %v972_v19, %v972_v19  ;;  %v393_v34 = vmul.f32 %v974_v20, %v974_v20  ;;  %v394_v35 = vmul.f32 %v976_v21, %v976_v21  ;;  %v688_v39 = vld [vmem:[%s326_s9 + $0x18] sm:$0xff]  }
  0x48   : > { %v996_v36 = vunpack.c.h.bf16 %v684_v22  ;;  %v998_v37 = vunpack.c.l.bf16 %v687_v29  ;;  %v395_v38 = vmul.f32 %v978_v25, %v978_v25  ;;  %v425_v41 = vmul.f32 %v980_v26, %v980_v26 }
  0x49   : > { %v400_v40 = vadd.f32 %v393_v34, %v392_v33  ;;  %v426_v42 = vmul.f32 %v982_v27, %v982_v27  ;;  %v427_v43 = vmul.f32 %v984_v28, %v984_v28  ;;  %v1008_v44 = vunpack.c.l.bf16 %v685_v31 }
  0x4a   : > { %v1010_v45 = vunpack.c.h.bf16 %v687_v29  ;;  %v396_v46 = vmul.f32 %v986_v30, %v986_v30  ;;  %v428_v48 = vmul.f32 %v988_v32, %v988_v32  ;;  %v1016_v50 = vunpack.c.h.bf16 %v685_v31 }
  0x4b   : > { %v401_v47 = vadd.f32 %v400_v40, %v394_v35  ;;  %v433_v49 = vadd.f32 %v426_v42, %v425_v41  ;;  %v1018_v51 = vunpack.c.l.bf16 %v688_v39  ;;  %v397_v52 = vmul.f32 %v996_v36, %v996_v36 }
  0x4c   : > { %v429_v54 = vmul.f32 %v998_v37, %v998_v37  ;;  %v1024_v56 = vunpack.c.h.bf16 %v688_v39  ;;  %v398_v57 = vmul.f32 %v1008_v44, %v1008_v44  ;;  %v430_v59 = vmul.f32 %v1010_v45, %v1010_v45 }
  0x4d   : > { %v402_v53 = vadd.f32 %v401_v47, %v395_v38  ;;  %v434_v55 = vadd.f32 %v433_v49, %v427_v43  ;;  %v399_v61 = vmul.f32 %v1016_v50, %v1016_v50  ;;  %v431_v63 = vmul.f32 %v1018_v51, %v1018_v51 }
  0x4e   : > { %v432_v2 = vmul.f32 %v1024_v56, %v1024_v56 }
  0x4f   : > { %v403_v58 = vadd.f32 %v402_v53, %v396_v46  ;;  %v435_v60 = vadd.f32 %v434_v55, %v428_v48 }
  0x51   : > { %v404_v62 = vadd.f32 %v403_v58, %v397_v52  ;;  %v436_v0 = vadd.f32 %v435_v60, %v429_v54 }
  0x53   : > { %v405_v1 = vadd.f32 %v404_v62, %v398_v57  ;;  %v437_v3 = vadd.f32 %v436_v0, %v430_v59 }
  0x55   : > { %v406_v4 = vadd.f32 %v405_v1, %v399_v61  ;;  %v438_v5 = vadd.f32 %v437_v3, %v431_v63 }
  0x57   : > { %v407_v6 = vrot.slane %v406_v4, 4  ;;  %v439_v7 = vadd.f32 %v438_v5, %v432_v2 }
  0x59   : > { %v408_v8 = vadd.f32 %v407_v6, %v406_v4  ;;  %v440_v9 = vrot.slane %v439_v7, 4 }
  0x5b   : > { %v409_v10 = vrot.slane %v408_v8, 2  ;;  %v441_v11 = vadd.f32 %v440_v9, %v439_v7 }
  0x5d   : > { %v410_v12 = vadd.f32 %v409_v10, %v408_v8  ;;  %v442_v13 = vrot.slane %v441_v11, 2 }
  0x5f   : > { %v411_v14 = vrot.slane %v410_v12, 1  ;;  %v443_v15 = vadd.f32 %v442_v13, %v441_v11  ;;  %v494_v11 = vld [vmem:[%s1087_s2] sm:$0xff] }
  0x61   : > { %v412_v16 = vadd.f32 %v411_v14, %v410_v12  ;;  %v444_v17 = vrot.slane %v443_v15, 1  ;;  %v519_v12 = vlaneseq  ;;  %v523_v14 = vstv %s522_s10 }
  0x63   : > { %762 = vrsqrt.f32 %v412_v16  ;;  %v445_v18 = vadd.f32 %v444_v17, %v443_v15  ;;  %vm420_vm0 = vcmp.eq.f32.partialorder %v412_v16, inf  ;;  %v423_v40 = vand.u32 2147483648, %v412_v16  ;;  %v528_v15 = vld [vmem:[%s968_s5] sm:$0xff] }
  0x64   : > { %vm422_vm1 = vcmp.eq.f32.partialorder %v412_v16, 0.0  ;;  %v520_v13 = vand.u32 127, %v519_v12 }
  0x65   : > { %764 = vrsqrt.f32 %v445_v18  ;;  %vm453_vm2 = vcmp.eq.f32.partialorder %v445_v18, inf  ;;  %v456_v47 = vand.u32 2147483648, %v445_v18  ;;  %vm455_vm3 = vcmp.eq.f32.partialorder %v445_v18, 0.0 }
  0x66   : > { %vm524_vm5 = vcmp.lt.s32.totalorder %v520_v13, %v523_v14 }
  0x69   : > { %v763_v22 = vpop.eup %762 }
  0x6a   : > { %v414_v23 = vmul.f32 %v763_v22, %v412_v16 }
  0x6b   : > { %v765_v24 = vpop.eup %764 }
  0x6c   : > { %v415_v29 = vmul.f32 %v763_v22, %v414_v23  ;;  %v447_v31 = vmul.f32 %v765_v24, %v445_v18 }
  0x6e   : > { %v416_v33 = vmul.f32 0.5, %v415_v29  ;;  %v448_v34 = vmul.f32 %v765_v24, %v447_v31 }
  0x70   : > { %v417_v35 = vsub.f32 1.5, %v416_v33  ;;  %v449_v38 = vmul.f32 0.5, %v448_v34 }
  0x72   : > { %v418_v39 = vmul.f32 %v763_v22, %v417_v35  ;;  %v450_v41 = vsub.f32 1.5, %v449_v38 }
  0x74   : > { %v419_v42 = vmul.f32 %v418_v39, %v412_v16  ;;  %v451_v43 = vmul.f32 %v765_v24, %v450_v41 }
  0x76   : > { %v421_v46 = vsel %vm420_vm0, %v412_v16, %v419_v42  ;;  %v452_v49 = vmul.f32 %v451_v43, %v445_v18 }
  0x77   : > { %v424_v48 = vsel %vm422_vm1, %v423_v40, %v421_v46 }
  0x78   : > { %v458_v52 = vadd.f32 1e-10, %v424_v48  ;;  %v454_v53 = vsel %vm453_vm2, %v445_v18, %v452_v49 }
  0x79   : > { %v457_v54 = vsel %vm455_vm3, %v456_v47, %v454_v53 }
  0x7a   : > { %766 = vrcp.f32 %v458_v52  ;;  %v460_v55 = vadd.f32 1e-10, %v457_v54 }
  0x7c   : > { %768 = vrcp.f32 %v460_v55 }
  0x80   : > { %v767_v57 = vpop.eup %766 }
  0x81   : > { %v469_v58 = vmul.f32 %v767_v57, %v1016_v50  ;;  %v468_v59 = vmul.f32 %v767_v57, %v1008_v44  ;;  %v467_v60 = vmul.f32 %v767_v57, %v996_v36  ;;  %v466_v62 = vmul.f32 %v767_v57, %v986_v30 }
  0x82   : > { %v769_v61 = vpop.eup %768  ;;  %v464_v63 = vmul.f32 %v767_v57, %v976_v21  ;;  %v463_v0 = vmul.f32 %v767_v57, %v974_v20  ;;  %v462_v1 = vmul.f32 %v767_v57, %v972_v19  ;;  %v465_v44 = vmul.f32 %v767_v57, %v978_v25 }
  0x83   : > { %v477_v2 = vmul.f32 %v769_v61, %v1024_v56  ;;  %v476_v3 = vmul.f32 %v769_v61, %v1018_v51  ;;  %v475_v4 = vmul.f32 %v769_v61, %v1010_v45  ;;  %v474_v50 = vmul.f32 %v769_v61, %v998_v37 }
  0x84   : > { %v472_v36 = vmul.f32 %v769_v61, %v984_v28  ;;  %v471_v30 = vmul.f32 %v769_v61, %v982_v27  ;;  %v470_v21 = vmul.f32 %v769_v61, %v980_v26  ;;  %v473_v19 = vmul.f32 %v769_v61, %v988_v32 }
  0x85   : > { %v485_v5 = vsub.f32 %v469_v58, %v477_v2  ;;  %v484_v20 = vsub.f32 %v468_v59, %v476_v3  ;;  %v483_v6 = vsub.f32 %v467_v60, %v475_v4  ;;  %v482_v9 = vsub.f32 %v466_v62, %v474_v50 }
  0x86   : > { %v480_v56 = vsub.f32 %v464_v63, %v472_v36  ;;  %v479_v7 = vsub.f32 %v463_v0, %v471_v30  ;;  %v478_v51 = vsub.f32 %v462_v1, %v470_v21  ;;  %v481_v25 = vsub.f32 %v465_v44, %v473_v19 }
  0x87   : > { %v493_v8 = vmul.f32 %v485_v5, %v485_v5  ;;  %v492_v45 = vmul.f32 %v484_v20, %v484_v20  ;;  %v491_v37 = vmul.f32 %v483_v6, %v483_v6  ;;  %v490_v28 = vmul.f32 %v482_v9, %v482_v9 }
  0x88   : > { %v489_v27 = vmul.f32 %v481_v25, %v481_v25  ;;  %v488_v26 = vmul.f32 %v480_v56, %v480_v56  ;;  %v487_v10 = vmul.f32 %v479_v7, %v479_v7  ;;  %v486_v32 = vmul.f32 %v478_v51, %v478_v51 }
  0x89   : > { %507 = vmatpush.msra.mxu0 %v493_v8 }
  0x8b   : > { %508 = vmatpush.msra.mxu0 %v492_v45 }
  0x8d   : > { %509 = vmatpush.msra.mxu0 %v491_v37 }
  0x8f   : > { %510 = vmatpush.msra.mxu0 %v490_v28 }
  0x91   : > { %511 = vmatpush.msra.mxu0 %v489_v27 }
  0x93   : > { %512 = vmatpush.msra.mxu0 %v488_v26 }
  0x95   : > { %513 = vmatpush.msra.mxu0 %v487_v10 }
  0x97   : > { %514 = vmatpush.msra.mxu0 %v486_v32 }
  0x98   : > { %647 = vmatmul.msk.f32.vlgmr.msra.gmra.mxu0 %vm495_vm4, %v494_v11 }
 0x115   : > { %v516_v16 = vpop.f32.mrf.mxu0 }
 0x116   : > { %v527_v17 = vsel %vm524_vm5, %v516_v16, 0.0 }
 0x117   : > { %v529_v18 = vadd.f32 %v528_v15, %v527_v17 }
 0x119   : > { %530 = vst [vmem:[%s968_s5] sm:$0xff] %v529_v18 }
 0x11a PF: > { %s13_s20 = sadd.s32 1, %s840_s20   ;;  %s1091_s12 = smov %s812_s13 }
 0x11b   : > { %p10_p1 = scmp.ge.s32.totalorder %s13_s20, 6   ;;  %s1092_s13 = smov %s940_s8 }
 0x11c   : > { %s1093_s14 = smov %s820_s15  ;;  %s1094_s15 = smov %s937_s7 }
 0x11d   : > { %s1095_s16 = smov %s832_s18  ;;  %s1096_s17 = smov %s836_s19 }
 0x11e   : > { %s1097_s18 = smov %s1100_s21  ;;  %s1098_s19 = smov %s1104_s22 }
 0x11f   :  { %12 = sbr.rel (!%p10_p1) target bundleno = 5 (0x5), region = 161 }

// kernel: lpips_forward.6
= control target key start
LH: loop header
LB: loop body
LE: loop exit
PB: predicated region body
PF: predicated region fallthrough
CT: control target
= control target key end

     0   :  { %s912_s12 = smov 0   ;;  %s914_s13 = smov 0   ;;  %s1281_s0 = inlined_call_operand.vmem [shape: bf16[4,192,128], index: 0, kind: input, shape index: {}, may-alias: {0,1}]   ;;  %s1282_s1 = inlined_call_operand.vmem [shape: bf16[4,192,128], index: 1, kind: input, shape index: {}, may-alias: {0,1}]   ;;  %s1283_s2 = inlined_call_operand.vmem [shape: f32[8,192], index: 2, kind: input, shape index: {}]   ;;  %s1284_s3 = inlined_call_operand.vmem [shape: f32[2,8,128], index: 3, kind: output, shape index: {}]  }
   0x1   :  { %s916_s14 = smov 0  }
   0x2 LB: > { %s25_s15 = sadd.s32 1, %s886_s13  ;;  %p708_p0 = scmp.ge.s32.totalorder %s890_s14, 1  ;;  %s890_s14 = sphi %s916_s14, %s13_s14   ;;  %s886_s13 = sphi %s914_s13, %s1307_s13   ;;  %s882_s12 = sphi %s912_s12, %s1306_s12  }
   0x3   : > { %p27_p1 = scmp.ge.s32.totalorder %s25_s15, 2  ;;  %p173_p2 = scmp.lt.s32.totalorder %s890_s14, 3 }
   0x5   : > { %s1309_s15 = smov (%p27_p1, %s25_s15), 0  ;;  %p174_p3 = pnand %p708_p0, %p173_p2 }
   0x7   : > { %177 = sbr.rel (%p174_p3) target bundleno = 281 (0x119), region = 32 }
   0xc   : > { %p208_p4 = scmp.lt.s32.totalorder %s882_s12, 3  ;;  %s216_s16 = sadd.s32 2, %s882_s12  ;;  %vm563_vm4 = vcmask 523264  }
   0xd   : > { %p217_p5 = scmp.lt.s32.totalorder %s216_s16, 3  ;;  %p226_p6 = scmp.lt.s32.totalorder %s882_s12, 1 }
   0xe   : > { %s209_s17 = scalar_select %p208_p4, %s882_s12, 3 }
   0xf   : > { %s1311_s16 = smov (!%p217_p5, %s216_s16), 3  ;;  %s1313_s12 = smov (!%p226_p6, %s882_s12), 1 }
  0x10   : > { %s833_s18 = smul.u32 96, %s209_s17  ;;  %s711_s30 = sshll.u32 %s1313_s12, 3 }
  0x11   : > { %s834_s22 = smul.u32 96, %s1311_s16  ;;  %s229_s6 = scalar_lea.vmem %s1284_s3, %s711_s30 }
  0x12   : > { %s938_s21 = scalar_lea.vmem %s1281_s0, %s833_s18 }
  0x13   : > { %v716_v0 = vld [vmem:[%s938_s21] sm:$0xff]   ;;  %s944_s25 = scalar_lea.vmem %s1282_s1, %s834_s22  ;;  %v811_v1 = vld [vmem:[%s938_s21 + $0x8] sm:$0xff]   ;;  %v812_v6 = vld [vmem:[%s938_s21 + $0x10] sm:$0xff]  }
  0x14   : > { %v947_v2 = vunpack.c.l.bf16 %v716_v0  ;;  %v949_v3 = vunpack.c.h.bf16 %v716_v0  ;;  %v951_v4 = vunpack.c.l.bf16 %v811_v1  ;;  %v764_v5 = vld [vmem:[%s944_s25] sm:$0xff]   ;;  %v955_v7 = vunpack.c.h.bf16 %v811_v1  ;;  %v822_v8 = vld [vmem:[%s944_s25 + $0x8] sm:$0xff]   ;;  %v813_v15 = vld [vmem:[%s938_s21 + $0x18] sm:$0xff]  }
  0x15   : > { %v962_v11 = vunpack.c.l.bf16 %v764_v5  ;;  %v964_v12 = vunpack.c.h.bf16 %v764_v5  ;;  %v966_v13 = vunpack.c.l.bf16 %v812_v6  ;;  %v971_v16 = vunpack.c.l.bf16 %v822_v8  ;;  %v823_v18 = vld [vmem:[%s944_s25 + $0x10] sm:$0xff]   ;;  %v814_v27 = vld [vmem:[%s938_s21 + $0x20] sm:$0xff]   ;;  %v824_v31 = vld [vmem:[%s944_s25 + $0x18] sm:$0xff]  }
  0x16   : > { %1292 = vst [vmem:[#allocation2_spill] sm:$0xff] %v947_v2  ;;  %v331_v9 = vmul.f32 %v947_v2, %v947_v2  ;;  %v332_v10 = vmul.f32 %v949_v3, %v949_v3  ;;  %v333_v14 = vmul.f32 %v951_v4, %v951_v4  ;;  %v973_v17 = vunpack.c.h.bf16 %v812_v6  ;;  %v815_v40 = vld [vmem:[%s938_s21 + $0x28] sm:$0xff]   ;;  %v825_v45 = vld [vmem:[%s944_s25 + $0x20] sm:$0xff]   ;;  %v816_v54 = vld [vmem:[%s938_s21 + $0x30] sm:$0xff]  }
  0x17   : > { %1293 = vst [vmem:[#allocation3_spill] sm:$0xff] %v949_v3  ;;  %v334_v19 = vmul.f32 %v955_v7, %v955_v7  ;;  %v978_v21 = vunpack.c.h.bf16 %v822_v8  ;;  %v396_v22 = vmul.f32 %v962_v11, %v962_v11  ;;  %v397_v23 = vmul.f32 %v964_v12, %v964_v12  ;;  %v826_v59 = vld [vmem:[%s944_s25 + $0x28] sm:$0xff]   ;;  %v817_v8 = vld [vmem:[%s938_s21 + $0x38] sm:$0xff]  }
  0x18   : > { %1294 = vst [vmem:[#allocation4_spill] sm:$0xff] %v951_v4  ;;  %v355_v20 = vadd.f32 %v332_v10, %v331_v9  ;;  %v984_v24 = vunpack.c.l.bf16 %v813_v15  ;;  %v335_v25 = vmul.f32 %v966_v13, %v966_v13  ;;  %v989_v28 = vunpack.c.l.bf16 %v823_v18 }
  0x19   : > { %1295 = vst [vmem:[#allocation5_spill] sm:$0xff] %v962_v11  ;;  %v398_v29 = vmul.f32 %v971_v16, %v971_v16  ;;  %v993_v30 = vunpack.c.h.bf16 %v813_v15  ;;  %v336_v32 = vmul.f32 %v973_v17, %v973_v17  ;;  %v998_v34 = vunpack.c.h.bf16 %v823_v18  ;;  %v827_v18 = vld [vmem:[%s944_s25 + $0x30] sm:$0xff]  }
  0x1a   : > { %1296 = vst [vmem:[#allocation6_spill] sm:$0xff] %v964_v12  ;;  %v356_v26 = vadd.f32 %v355_v20, %v333_v14  ;;  %v399_v35 = vmul.f32 %v978_v21, %v978_v21  ;;  %v420_v36 = vadd.f32 %v397_v23, %v396_v22  ;;  %v1002_v37 = vunpack.c.l.bf16 %v814_v27 }
  0x1b   : > { %1297 = vst [vmem:[#allocation7_spill] sm:$0xff] %v971_v16  ;;  %v337_v38 = vmul.f32 %v984_v24, %v984_v24  ;;  %v1007_v41 = vunpack.c.l.bf16 %v824_v31  ;;  %v400_v42 = vmul.f32 %v989_v28, %v989_v28  ;;  %v1011_v44 = vunpack.c.h.bf16 %v814_v27 }
  0x1c   : > { %v357_v33 = vadd.f32 %v356_v26, %v334_v19  ;;  %v421_v43 = vadd.f32 %v420_v36, %v398_v29  ;;  %v338_v46 = vmul.f32 %v993_v30, %v993_v30  ;;  %v1016_v48 = vunpack.c.h.bf16 %v824_v31  ;;  %v818_v31 = vld [vmem:[%s938_s21 + $0x40] sm:$0xff]  }
  0x1d   : > { %v401_v49 = vmul.f32 %v998_v34, %v998_v34  ;;  %v1020_v51 = vunpack.c.l.bf16 %v815_v40  ;;  %v339_v52 = vmul.f32 %v1002_v37, %v1002_v37  ;;  %v1025_v55 = vunpack.c.l.bf16 %v825_v45 }
  0x1e   : > { %v358_v39 = vadd.f32 %v357_v33, %v335_v25  ;;  %v422_v50 = vadd.f32 %v421_v43, %v399_v35  ;;  %v402_v56 = vmul.f32 %v1007_v41, %v1007_v41  ;;  %v1029_v58 = vunpack.c.h.bf16 %v815_v40 }
  0x1f   : > { %v340_v60 = vmul.f32 %v1011_v44, %v1011_v44  ;;  %v1034_v62 = vunpack.c.h.bf16 %v825_v45  ;;  %v403_v63 = vmul.f32 %v1016_v48, %v1016_v48  ;;  %v1038_v1 = vunpack.c.l.bf16 %v816_v54 }
  0x20   : > { %v359_v47 = vadd.f32 %v358_v39, %v336_v32  ;;  %v423_v57 = vadd.f32 %v422_v50, %v400_v42  ;;  %v341_v5 = vmul.f32 %v1020_v51, %v1020_v51  ;;  %v1043_v9 = vunpack.c.l.bf16 %v826_v59  ;;  %v819_v50 = vld [vmem:[%s938_s21 + $0x48] sm:$0xff]  }
  0x21   : > { %v404_v10 = vmul.f32 %v1025_v55, %v1025_v55  ;;  %v1047_v15 = vunpack.c.h.bf16 %v816_v54  ;;  %v342_v19 = vmul.f32 %v1029_v58, %v1029_v58  ;;  %v1052_v22 = vunpack.c.h.bf16 %v826_v59 }
  0x22   : > { %v360_v53 = vadd.f32 %v359_v47, %v337_v38  ;;  %v424_v0 = vadd.f32 %v423_v57, %v401_v49  ;;  %v405_v23 = vmul.f32 %v1034_v62, %v1034_v62  ;;  %v1056_v26 = vunpack.c.l.bf16 %v817_v8  ;;  %v828_v38 = vld [vmem:[%s944_s25 + $0x38] sm:$0xff]   ;;  %v829_v57 = vld [vmem:[%s944_s25 + $0x40] sm:$0xff]  }
  0x23   : > { %v343_v27 = vmul.f32 %v1038_v1, %v1038_v1  ;;  %v1061_v32 = vunpack.c.l.bf16 %v827_v18  ;;  %v406_v33 = vmul.f32 %v1043_v9, %v1043_v9  ;;  %v1065_v36 = vunpack.c.h.bf16 %v817_v8 }
  0x24   : > { %v361_v61 = vadd.f32 %v360_v53, %v338_v46  ;;  %v425_v14 = vadd.f32 %v424_v0, %v402_v56  ;;  %v344_v39 = vmul.f32 %v1047_v15, %v1047_v15  ;;  %v1070_v42 = vunpack.c.h.bf16 %v827_v18 }
  0x25   : > { %v407_v43 = vmul.f32 %v1052_v22, %v1052_v22  ;;  %v1074_v46 = vunpack.c.l.bf16 %v818_v31  ;;  %v345_v47 = vmul.f32 %v1056_v26, %v1056_v26  ;;  %v408_v53 = vmul.f32 %v1061_v32, %v1061_v32 }
  0x26   : > { %v362_v6 = vadd.f32 %v361_v61, %v339_v52  ;;  %v426_v25 = vadd.f32 %v425_v14, %v403_v63  ;;  %v1079_v52 = vunpack.c.l.bf16 %v828_v38  ;;  %v1083_v56 = vunpack.c.h.bf16 %v818_v31 }
  0x27   : > { %v346_v59 = vmul.f32 %v1065_v36, %v1065_v36  ;;  %v1088_v61 = vunpack.c.h.bf16 %v828_v38  ;;  %v409_v63 = vmul.f32 %v1070_v42, %v1070_v42  ;;  %v1097_v14 = vunpack.c.l.bf16 %v829_v57 }
  0x28   : > { %v363_v20 = vadd.f32 %v362_v6, %v340_v60  ;;  %v427_v35 = vadd.f32 %v426_v25, %v404_v10  ;;  %v347_v6 = vmul.f32 %v1074_v46, %v1074_v46  ;;  %v820_v10 = vld [vmem:[%s938_s21 + $0x50] sm:$0xff]   ;;  %v410_v18 = vmul.f32 %v1079_v52, %v1079_v52 }
  0x29   : > { %1298 = vst [vmem:[#allocation8_spill] sm:$0xff] %v1097_v14  ;;  %v348_v25 = vmul.f32 %v1083_v56, %v1083_v56  ;;  %v411_v31 = vmul.f32 %v1088_v61, %v1088_v61 }
  0x2a   : > { %v364_v29 = vadd.f32 %v363_v20, %v341_v5  ;;  %v428_v45 = vadd.f32 %v427_v35, %v405_v23  ;;  %v1092_v5 = vunpack.c.l.bf16 %v819_v50  ;;  %v1101_v20 = vunpack.c.h.bf16 %v819_v50  ;;  %v830_v23 = vld [vmem:[%s944_s25 + $0x48] sm:$0xff]   ;;  %v831_v50 = vld [vmem:[%s944_s25 + $0x50] sm:$0xff]  }
  0x2b   : > { %v1110_v35 = vunpack.c.l.bf16 %v820_v10 }
  0x2c   : > { %v365_v40 = vadd.f32 %v364_v29, %v342_v19  ;;  %v429_v54 = vadd.f32 %v428_v45, %v406_v33  ;;  %v1106_v29 = vunpack.c.h.bf16 %v829_v57  ;;  %v349_v38 = vmul.f32 %v1092_v5, %v1092_v5 }
  0x2d   : > { %v412_v45 = vmul.f32 %v1097_v14, %v1097_v14  ;;  %v1124_v57 = vunpack.c.h.bf16 %v830_v23 }
  0x2e   : > { %v366_v49 = vadd.f32 %v365_v40, %v343_v27  ;;  %v430_v0 = vadd.f32 %v429_v54, %v407_v43  ;;  %v821_v40 = vld [vmem:[%s938_s21 + $0x58] sm:$0xff]   ;;  %v1115_v43 = vunpack.c.l.bf16 %v830_v23 }
  0x2f   : > { %v832_v23 = vld [vmem:[%s944_s25 + $0x58] sm:$0xff]  }
  0x30   : > { %v367_v60 = vadd.f32 %v366_v49, %v344_v39  ;;  %v431_v19 = vadd.f32 %v430_v0, %v408_v53  ;;  %v1119_v49 = vunpack.c.h.bf16 %v820_v10  ;;  %v350_v53 = vmul.f32 %v1101_v20, %v1101_v20 }
  0x31   : > { %v351_v0 = vmul.f32 %v1110_v35, %v1110_v35  ;;  %v414_v10 = vmul.f32 %v1115_v43, %v1115_v43 }
  0x32   : > { %v368_v8 = vadd.f32 %v367_v60, %v345_v47  ;;  %v432_v33 = vadd.f32 %v431_v19, %v409_v63  ;;  %v1128_v63 = vunpack.c.l.bf16 %v821_v40  ;;  %v1136_v19 = vunpack.c.h.bf16 %v821_v40 }
  0x34   : > { %v369_v27 = vadd.f32 %v368_v8, %v346_v59  ;;  %v433_v47 = vadd.f32 %v432_v33, %v410_v18  ;;  %v413_v59 = vmul.f32 %v1106_v29, %v1106_v29  ;;  %v1132_v8 = vunpack.c.l.bf16 %v831_v50 }
  0x35   : > { %v415_v33 = vmul.f32 %v1124_v57, %v1124_v57 }
  0x36   : > { %v370_v39 = vadd.f32 %v369_v27, %v347_v6  ;;  %v434_v60 = vadd.f32 %v433_v47, %v411_v31  ;;  %v1141_v31 = vunpack.c.h.bf16 %v831_v50  ;;  %v416_v40 = vmul.f32 %v1132_v8, %v1132_v8 }
  0x37   : > { %v1153_v50 = vunpack.c.h.bf16 %v832_v23 }
  0x38   : > { %v371_v54 = vadd.f32 %v370_v39, %v348_v25  ;;  %v435_v18 = vadd.f32 %v434_v60, %v412_v45  ;;  %v352_v25 = vmul.f32 %v1119_v49, %v1119_v49  ;;  %v354_v60 = vmul.f32 %v1136_v19, %v1136_v19 }
  0x39   : > { %v419_v2 = vmul.f32 %v1153_v50, %v1153_v50 }
  0x3a   : > { %v372_v6 = vadd.f32 %v371_v54, %v349_v38  ;;  %v436_v39 = vadd.f32 %v435_v18, %v413_v59  ;;  %v353_v38 = vmul.f32 %v1128_v63, %v1128_v63  ;;  %v1147_v54 = vunpack.c.l.bf16 %v832_v23 }
  0x3c   : > { %v373_v27 = vadd.f32 %v372_v6, %v350_v53  ;;  %v437_v45 = vadd.f32 %v436_v39, %v414_v10  ;;  %v417_v6 = vmul.f32 %v1141_v31, %v1141_v31 }
  0x3e   : > { %v374_v47 = vadd.f32 %v373_v27, %v351_v0  ;;  %v438_v59 = vadd.f32 %v437_v45, %v415_v33  ;;  %v418_v0 = vmul.f32 %v1147_v54, %v1147_v54 }
  0x40   : > { %v375_v53 = vadd.f32 %v374_v47, %v352_v25  ;;  %v439_v27 = vadd.f32 %v438_v59, %v416_v40 }
  0x42   : > { %v376_v18 = vadd.f32 %v375_v53, %v353_v38  ;;  %v440_v10 = vadd.f32 %v439_v27, %v417_v6 }
  0x44   : > { %v377_v11 = vadd.f32 %v376_v18, %v354_v60  ;;  %v441_v12 = vadd.f32 %v440_v10, %v418_v0 }
  0x46   : > { %v378_v39 = vrot.slane %v377_v11, 4  ;;  %v442_v25 = vadd.f32 %v441_v12, %v419_v2 }
  0x48   : > { %v379_v3 = vadd.f32 %v378_v39, %v377_v11  ;;  %v443_v47 = vrot.slane %v442_v25, 4 }
  0x4a   : > { %v380_v23 = vrot.slane %v379_v3, 2  ;;  %v444_v4 = vadd.f32 %v443_v47, %v442_v25 }
  0x4c   : > { %v381_v16 = vadd.f32 %v380_v23, %v379_v3  ;;  %v445_v33 = vrot.slane %v444_v4, 2 }
  0x4e   : > { %v382_v14 = vrot.slane %v381_v16, 1  ;;  %v446_v45 = vadd.f32 %v445_v33, %v444_v4 }
  0x50   : > { %v383_v38 = vadd.f32 %v382_v14, %v381_v16  ;;  %v447_v53 = vrot.slane %v446_v45, 1 }
  0x52   : > { %860 = vrsqrt.f32 %v383_v38  ;;  %v448_v40 = vadd.f32 %v447_v53, %v446_v45  ;;  %vm391_vm0 = vcmp.eq.f32.partialorder %v383_v38, inf  ;;  %v394_v3 = vand.u32 2147483648, %v383_v38 }
  0x53   : > { %vm393_vm1 = vcmp.eq.f32.partialorder %v383_v38, 0.0 }
  0x54   : > { %862 = vrsqrt.f32 %v448_v40  ;;  %vm456_vm2 = vcmp.eq.f32.partialorder %v448_v40, inf  ;;  %v459_v23 = vand.u32 2147483648, %v448_v40  ;;  %vm458_vm3 = vcmp.eq.f32.partialorder %v448_v40, 0.0 }
  0x58   : > { %v861_v60 = vpop.eup %860 }
  0x59   : > { %v385_v59 = vmul.f32 %v861_v60, %v383_v38 }
  0x5a   : > { %v863_v6 = vpop.eup %862 }
  0x5b   : > { %v386_v18 = vmul.f32 %v861_v60, %v385_v59  ;;  %v450_v0 = vmul.f32 %v863_v6, %v448_v40 }
  0x5d   : > { %v387_v27 = vmul.f32 0.5, %v386_v18  ;;  %v451_v2 = vmul.f32 %v863_v6, %v450_v0 }
  0x5f   : > { %v388_v11 = vsub.f32 1.5, %v387_v27  ;;  %v452_v10 = vmul.f32 0.5, %v451_v2 }
  0x61   : > { %v389_v12 = vmul.f32 %v861_v60, %v388_v11  ;;  %v453_v16 = vsub.f32 1.5, %v452_v10 }
  0x63   : > { %v390_v39 = vmul.f32 %v389_v12, %v383_v38  ;;  %v454_v25 = vmul.f32 %v863_v6, %v453_v16 }
  0x65   : > { %v392_v4 = vsel %vm391_vm0, %v383_v38, %v390_v39  ;;  %v455_v33 = vmul.f32 %v454_v25, %v448_v40 }
  0x66   : > { %v395_v14 = vsel %vm393_vm1, %v394_v3, %v392_v4 }
  0x67   : > { %v461_v47 = vadd.f32 1e-10, %v395_v14  ;;  %v457_v45 = vsel %vm456_vm2, %v448_v40, %v455_v33 }
  0x68   : > { %v460_v53 = vsel %vm458_vm3, %v459_v23, %v457_v45 }
  0x69   : > { %864 = vrcp.f32 %v461_v47  ;;  %v463_v59 = vadd.f32 1e-10, %v460_v53 }
  0x6b   : > { %866 = vrcp.f32 %v463_v59 }
  0x6f   : > { %v1161_v60 = vpop.eup %864 }
  0x70   : > { %v480_v18 = vmul.f32 %v1161_v60, %v1065_v36  ;;  %v479_v38 = vmul.f32 %v1161_v60, %v1056_v26  ;;  %v478_v6 = vmul.f32 %v1161_v60, %v1047_v15  ;;  %v477_v40 = vmul.f32 %v1161_v60, %v1038_v1 }
  0x71   : > { %v1169_v27 = vpop.eup %866  ;;  %v476_v15 = vmul.f32 %v1161_v60, %v1029_v58  ;;  %v475_v2 = vmul.f32 %v1161_v60, %v1020_v51  ;;  %v474_v1 = vmul.f32 %v1161_v60, %v1011_v44  ;;  %v488_v58 = vmul.f32 %v1161_v60, %v1136_v19 }
  0x72   : > { %v504_v0 = vmul.f32 %v1169_v27, %v1088_v61  ;;  %v503_v11 = vmul.f32 %v1169_v27, %v1079_v52  ;;  %v502_v36 = vmul.f32 %v1169_v27, %v1070_v42  ;;  %v501_v26 = vmul.f32 %v1169_v27, %v1061_v32 }
  0x73   : > { %v500_v52 = vmul.f32 %v1169_v27, %v1052_v22  ;;  %v473_v42 = vmul.f32 %v1161_v60, %v1002_v37  ;;  %v472_v32 = vmul.f32 %v1161_v60, %v993_v30  ;;  %v487_v51 = vmul.f32 %v1161_v60, %v1128_v63 }
  0x74   : > { %v528_v12 = vsub.f32 %v480_v18, %v504_v0  ;;  %v527_v61 = vsub.f32 %v479_v38, %v503_v11  ;;  %v526_v3 = vsub.f32 %v478_v6, %v502_v36  ;;  %v525_v39 = vsub.f32 %v477_v40, %v501_v26 }
  0x75   : > { %v499_v16 = vmul.f32 %v1169_v27, %v1043_v9  ;;  %v498_v22 = vmul.f32 %v1169_v27, %v1034_v62  ;;  %v471_v37 = vmul.f32 %v1161_v60, %v984_v24  ;;  %v486_v30 = vmul.f32 %v1161_v60, %v1119_v49 }
  0x76   : > { %v552_v10 = vmul.f32 %v528_v12, %v528_v12  ;;  %v551_v44 = vmul.f32 %v527_v61, %v527_v61  ;;  %v485_v19 = vmul.f32 %v1161_v60, %v1110_v35  ;;  %v550_v63 = vmul.f32 %v526_v3, %v526_v3 }
  0x77   : > { %v524_v4 = vsub.f32 %v476_v15, %v500_v52  ;;  %v512_v14 = vmul.f32 %v1169_v27, %v1153_v50  ;;  %v511_v9 = vmul.f32 %v1169_v27, %v1147_v54  ;;  %v497_v62 = vmul.f32 %v1169_v27, %v1025_v55 }
  0x78   : > { %567 = vmatpush.msra.mxu0 %v552_v10  ;;  %v470_v24 = vmul.f32 %v1161_v60, %v973_v17  ;;  %v510_v49 = vmul.f32 %v1169_v27, %v1141_v31  ;;  %v509_v35 = vmul.f32 %v1169_v27, %v1132_v8  ;;  %v549_v25 = vmul.f32 %v525_v39, %v525_v39  ;;  %v1300_v10 = vld [vmem:[#allocation4_spill] sm:$0xff] }
  0x79   : > { %v523_v23 = vsub.f32 %v475_v2, %v499_v16  ;;  %v536_v47 = vsub.f32 %v488_v58, %v512_v14  ;;  %v535_v50 = vsub.f32 %v487_v51, %v511_v9  ;;  %v496_v54 = vmul.f32 %v1169_v27, %v1016_v48 }
  0x7a   : > { %568 = vmatpush.msra.mxu0 %v551_v44  ;;  %v534_v33 = vsub.f32 %v486_v30, %v510_v49  ;;  %v533_v45 = vsub.f32 %v485_v19, %v509_v35  ;;  %v484_v55 = vmul.f32 %v1161_v60, %v1101_v20  ;;  %v548_v17 = vmul.f32 %v524_v4, %v524_v4  ;;  %v1301_v44 = vld [vmem:[#allocation7_spill] sm:$0xff]  ;;  %v1303_v19 = vld [vmem:[#allocation6_spill] sm:$0xff]  ;;  %v1305_v49 = vld [vmem:[#allocation5_spill] sm:$0xff] }
  0x7b   : > { %v522_v53 = vsub.f32 %v474_v1, %v498_v22  ;;  %v560_v31 = vmul.f32 %v536_v47, %v536_v47  ;;  %v559_v59 = vmul.f32 %v535_v50, %v535_v50  ;;  %v521_v18 = vsub.f32 %v473_v42, %v497_v62  ;;  %v1304_v62 = vld [vmem:[#allocation2_spill] sm:$0xff] }
  0x7c   : > { %569 = vmatpush.msra.mxu0 %v550_v63  ;;  %v495_v8 = vmul.f32 %v1169_v27, %v1007_v41  ;;  %v469_v38 = vmul.f32 %v1161_v60, %v966_v13  ;;  %v483_v48 = vmul.f32 %v1161_v60, %v1092_v5  ;;  %v547_v6 = vmul.f32 %v523_v23, %v523_v23 }
  0x7d   : > { %595 = vmatpush.msra.mxu1 %v560_v31  ;;  %v558_v40 = vmul.f32 %v534_v33, %v534_v33  ;;  %v508_v20 = vmul.f32 %v1169_v27, %v1124_v57  ;;  %v520_v0 = vsub.f32 %v472_v32, %v496_v54  ;;  %v494_v11 = vmul.f32 %v1169_v27, %v998_v34 }
  0x7e   : > { %570 = vmatpush.msra.mxu0 %v549_v25  ;;  %v507_v41 = vmul.f32 %v1169_v27, %v1115_v43  ;;  %v482_v13 = vmul.f32 %v1161_v60, %v1083_v56  ;;  %v546_v36 = vmul.f32 %v522_v53, %v522_v53  ;;  %v557_v5 = vmul.f32 %v533_v45, %v533_v45  ;;  %v562_v25 = vld [vmem:[%s1283_s2 + $0x8] sm:$0xff] }
  0x7f   : > { %596 = vmatpush.msra.mxu1 %v559_v59  ;;  %v532_v26 = vsub.f32 %v484_v55, %v508_v20  ;;  %v519_v15 = vsub.f32 %v471_v37, %v495_v8  ;;  %v493_v2 = vmul.f32 %v1169_v27, %v989_v28  ;;  %v506_v1 = vmul.f32 %v1169_v27, %v1106_v29  ;;  %v1299_v29 = vld [vmem:[#allocation8_spill] sm:$0xff]  ;;  %v1302_v37 = vld [vmem:[#allocation3_spill] sm:$0xff] }
  0x80   : > { %571 = vmatpush.msra.mxu0 %v548_v17  ;;  %v531_v57 = vsub.f32 %v483_v48, %v507_v41  ;;  %v545_v34 = vmul.f32 %v521_v18, %v521_v18  ;;  %v468_v43 = vmul.f32 %v1161_v60, %v955_v7  ;;  %v544_v12 = vmul.f32 %v520_v0, %v520_v0 }
  0x81   : > { %597 = vmatpush.msra.mxu1 %v558_v40  ;;  %v556_v56 = vmul.f32 %v532_v26, %v532_v26  ;;  %v518_v61 = vsub.f32 %v470_v24, %v494_v11  ;;  %v492_v3 = vmul.f32 %v1169_v27, %v978_v21  ;;  %v530_v52 = vsub.f32 %v482_v13, %v506_v1 }
  0x82   : > { %572 = vmatpush.msra.mxu0 %v547_v6  ;;  %v555_v28 = vmul.f32 %v531_v57, %v531_v57  ;;  %v481_v42 = vmul.f32 %v1161_v60, %v1074_v46  ;;  %v505_v32 = vmul.f32 %v1169_v27, %v1299_v29  ;;  %v543_v58 = vmul.f32 %v519_v15, %v519_v15 }
  0x83   : > { %598 = vmatpush.msra.mxu1 %v557_v5  ;;  %v517_v51 = vsub.f32 %v469_v38, %v493_v2  ;;  %v467_v7 = vmul.f32 %v1161_v60, %v1300_v10  ;;  %v491_v21 = vmul.f32 %v1169_v27, %v1301_v44  ;;  %v554_v39 = vmul.f32 %v530_v52, %v530_v52 }
  0x84   : > { %573 = vmatpush.msra.mxu0 %v546_v36  ;;  %v529_v16 = vsub.f32 %v481_v42, %v505_v32  ;;  %v542_v22 = vmul.f32 %v518_v61, %v518_v61  ;;  %v466_v30 = vmul.f32 %v1161_v60, %v1302_v37  ;;  %v516_v46 = vsub.f32 %v468_v43, %v492_v3 }
  0x85   : > { %599 = vmatpush.msra.mxu1 %v556_v56  ;;  %v490_v63 = vmul.f32 %v1169_v27, %v1303_v19  ;;  %v541_v14 = vmul.f32 %v517_v51, %v517_v51  ;;  %v515_v9 = vsub.f32 %v467_v7, %v491_v21  ;;  %v465_v24 = vmul.f32 %v1161_v60, %v1304_v62 }
  0x86   : > { %574 = vmatpush.msra.mxu0 %v545_v34  ;;  %v553_v4 = vmul.f32 %v529_v16, %v529_v16  ;;  %v489_v35 = vmul.f32 %v1169_v27, %v1305_v49  ;;  %v540_v23 = vmul.f32 %v516_v46, %v516_v46  ;;  %v561_v27 = vld [vmem:[%s1283_s2] sm:$0xff]  ;;  %v607_v45 = vlaneseq }
  0x87   : > { %600 = vmatpush.msra.mxu1 %v555_v28  ;;  %v514_v47 = vsub.f32 %v466_v30, %v490_v63  ;;  %v539_v50 = vmul.f32 %v515_v9, %v515_v9 }
  0x88   : > { %575 = vmatpush.msra.mxu0 %v544_v12  ;;  %v513_v54 = vsub.f32 %v465_v24, %v489_v35  ;;  %v608_v55 = vand.u32 127, %v607_v45 }
  0x89   : > { %601 = vmatpush.msra.mxu1 %v554_v39  ;;  %v538_v60 = vmul.f32 %v514_v47, %v514_v47 }
  0x8a   : > { %576 = vmatpush.msra.mxu0 %v543_v58  ;;  %v537_v33 = vmul.f32 %v513_v54, %v513_v54  ;;  %vm612_vm5 = vcmp.lt.s32.totalorder %v608_v55, 49 }
  0x8b   : > { %602 = vmatpush.msra.mxu1 %v553_v4 }
  0x8c   : > { %577 = vmatpush.msra.mxu0 %v542_v22  ;;  %712 = vmatmul.msk.f32.vlgmr.msra.gmra.mxu1 %vm563_vm4, %v562_v25 }
  0x8e   : > { %578 = vmatpush.msra.mxu0 %v541_v14 }
  0x90   : > { %579 = vmatpush.msra.mxu0 %v540_v23 }
  0x92   : > { %580 = vmatpush.msra.mxu0 %v539_v50 }
  0x94   : > { %581 = vmatpush.msra.mxu0 %v538_v60 }
  0x96   : > { %582 = vmatpush.msra.mxu0 %v537_v33 }
  0x97   : > { %583 = vmatmul.f32.vlgmr.msra.gmra.mxu0 %v561_v27 }
 0x109   : > { %v604_v17 = vpop.f32.mrf.mxu1 }
 0x114   : > { %v584_v53 = vpop.f32.mrf.mxu0 }
 0x115   : > { %v605_v31 = vadd.f32 %v604_v17, %v584_v53 }
 0x117   : > { %v615_v59 = vsel %vm612_vm5, %v605_v31, 0.0 }
 0x118   : > { %618 = vst [vmem:[%s229_s6] sm:$0xff] %v615_v59 }
 0x119 PF: > { %s13_s14 = sadd.s32 1, %s890_s14   ;;  %s1306_s12 = smov %s886_s13 }
 0x11a   : > { %p10_p7 = scmp.ge.s32.totalorder %s13_s14, 4   ;;  %s1307_s13 = smov %s1309_s15 }
 0x11c   :  { %12 = sbr.rel (!%p10_p7) target bundleno = 2 (0x2), region = 69 }

</bundles_post_ra>
